<compile_context>
chip_gen: v7x
topology: tpu7x:2x2x1
jax: 0.10.0
libtpu: 0.0.40
codegen_flags: <defaults>
</compile_context>

<pallas_src>
import functools

import jax
import jax.numpy as jnp
from jax.experimental import pallas as pl
from jax.experimental.pallas import tpu as pltpu


def _round_up(x, m):
    return (x + m - 1) // m * m


def _zero_halo(ref, H, W):
    """Zero the 1-pixel halo (rows 0 / H+1, cols 0 / W+1) of a (H+2, Wp2, C) scratch."""
    Wp2 = ref.shape[1]
    C = ref.shape[2]
    zrow = jnp.zeros((1, Wp2, C), ref.dtype)
    ref[0:1, :, :] = zrow
    ref[H + 1:H + 2, :, :] = zrow
    zcol = jnp.zeros((H + 2, 1, C), ref.dtype)
    ref[:, 0:1, :] = zcol
    ref[:, W + 1:W + 2, :] = zcol


def _basic_block_kernel(x_ref, w1_ref, b1_ref, w2_ref, b2_ref, o_ref,
                        xpad, ypad, *, H, W, C):
    # x_ref : (1, H, W, C)    f32 input tile (one batch element), C padded to 128-mult
    # w*_ref: (3, 3C, C)      bf16 conv weights (BN scale folded), per-kh (kw,Cin)-major
    # b*_ref: (1, C)          f32 folded BN bias
    # o_ref : (1, H, W, C)    f32 output
    # xpad/ypad: (H+2, Wp2, C) f32 VMEM scratch; halo zeroed, interior rewritten per step

    _zero_halo(xpad, H, W)
    _zero_halo(ypad, H, W)

    x = x_ref[0]                                   # (H, W, C) f32, aligned full-block read
    xpad[1:1 + H, 1:1 + W, :] = x

    def conv3x3(src, w_ref):
        acc = None
        for kh in range(3):
            # K-folded im2col over kw: (H, W, 3C) -> (H*W, 3C); MXU contraction K = 3C.
            patch = jnp.concatenate(
                [src[kh:kh + H, kw:kw + W, :] for kw in range(3)], axis=-1)
            patch = patch.reshape(H * W, 3 * C).astype(jnp.bfloat16)
            d = jnp.dot(patch, w_ref[kh], preferred_element_type=jnp.float32)
            acc = d if acc is None else acc + d
        return acc                                  # (H*W, C) f32

    # conv1 + folded bn1 + relu
    out1 = jnp.maximum(conv3x3(xpad, w1_ref) + b1_ref[0], 0.0)
    ypad[1:1 + H, 1:1 + W, :] = out1.reshape(H, W, C)

    # conv2 + folded bn2 + residual + relu
    out2 = conv3x3(ypad, w2_ref) + b2_ref[0] + x.reshape(H * W, C)
    o_ref[...] = jnp.maximum(out2, 0.0).reshape(1, H, W, C).astype(o_ref.dtype)


def basic_block_pallas(x_nchw, w1, s1, b1, w2, s2, b2):
    """x_nchw: (N, C, H, W) f32. w*: (3,3,C,C) HWIO f32. s*/b*: (C,) folded BN scale/bias."""
    N, C, H, W = x_nchw.shape
    LANE = 128
    Cp = _round_up(C, LANE)            # lane-dense channel width
    Wp2 = _round_up(W + 2, 8)          # sublane-aligned padded scratch width

    def prep_w(w, s):
        wf = w * s[None, None, None, :]                                   # fold BN scale
        wf = jnp.pad(wf, ((0, 0), (0, 0), (0, Cp - C), (0, Cp - C)))
        # (3, 3, Cp, Cp) -> (3, 3*Cp, Cp): per-kh matrix indexed by kw*Cp + cin.
        return wf.reshape(3, 3 * Cp, Cp).astype(jnp.bfloat16)

    def prep_b(b):
        return jnp.pad(b, (0, Cp - C)).reshape(1, Cp).astype(jnp.float32)

    w1r, w2r = prep_w(w1, s1), prep_w(w2, s2)
    b1r, b2r = prep_b(b1), prep_b(b2)

    # NCHW -> NHWC, pad channels to Cp (no host-side spatial padding).
    x_nhwc = jnp.transpose(x_nchw, (0, 2, 3, 1))
    x_nhwc = jnp.pad(x_nhwc, ((0, 0), (0, 0), (0, 0), (0, Cp - C)))

    kernel = functools.partial(_basic_block_kernel, H=H, W=W, C=Cp)

    out_nhwc = pl.pallas_call(
        kernel,
        out_shape=jax.ShapeDtypeStruct((N, H, W, Cp), jnp.float32),
        grid_spec=pltpu.PrefetchScalarGridSpec(
            num_scalar_prefetch=0,
            grid=(N,),
            in_specs=[
                pl.BlockSpec((1, H, W, Cp), lambda n: (n, 0, 0, 0)),
                pl.BlockSpec((3, 3 * Cp, Cp), lambda n: (0, 0, 0)),
                pl.BlockSpec((1, Cp), lambda n: (0, 0)),
                pl.BlockSpec((3, 3 * Cp, Cp), lambda n: (0, 0, 0)),
                pl.BlockSpec((1, Cp), lambda n: (0, 0)),
            ],
            out_specs=pl.BlockSpec((1, H, W, Cp), lambda n: (n, 0, 0, 0)),
            scratch_shapes=[
                pltpu.VMEM((H + 2, Wp2, Cp), jnp.float32),   # padded input image
                pltpu.VMEM((H + 2, Wp2, Cp), jnp.float32),   # padded conv1 output
            ],
        ),
        compiler_params=pltpu.CompilerParams(
            dimension_semantics=("parallel",)),
    )(x_nhwc, w1r, b1r, w2r, b2r)

    # drop channel padding, NHWC -> NCHW
    return jnp.transpose(out_nhwc[..., :C], (0, 3, 1, 2))


def _reference_basic_block(x_nchw, w1, s1, b1, w2, s2, b2):
    """Pure-JAX f32 reference (lax conv, NCHW / OIHW) for correctness check."""
    def conv3x3(x, w_hwio):
        w_oihw = jnp.transpose(w_hwio, (3, 2, 0, 1))
        return jax.lax.conv_general_dilated(
            x, w_oihw, window_strides=(1, 1), padding=((1, 1), (1, 1)),
            dimension_numbers=("NCHW", "OIHW", "NCHW"))

    out = conv3x3(x_nchw, w1)
    out = out * s1[None, :, None, None] + b1[None, :, None, None]
    out = jnp.maximum(out, 0.0)
    out = conv3x3(out, w2)
    out = out * s2[None, :, None, None] + b2[None, :, None, None]
    out = out + x_nchw
    return jnp.maximum(out, 0.0)


if __name__ == "__main__":
    N, C, H, W = 2, 4, 16, 16  # inplanes == planes, stride=1, no downsample
    key = jax.random.PRNGKey(0)
    kx, kw1, kw2, kg1, kb1, kg2, kb2, km1, kv1, km2, kv2 = jax.random.split(key, 11)

    x = jax.random.normal(kx, (N, C, H, W), dtype=jnp.float32)

    # Conv weights, stored HWIO (3,3,Cin,Cout)
    w1 = jax.random.normal(kw1, (3, 3, C, C), dtype=jnp.float32) * 0.1
    w2 = jax.random.normal(kw2, (3, 3, C, C), dtype=jnp.float32) * 0.1

    # BatchNorm params (eval mode), folded into scale/bias
    eps = 1e-5
    gamma1 = 1.0 + 0.1 * jax.random.normal(kg1, (C,), dtype=jnp.float32)
    beta1 = 0.1 * jax.random.normal(kb1, (C,), dtype=jnp.float32)
    mean1 = 0.1 * jax.random.normal(km1, (C,), dtype=jnp.float32)
    var1 = jnp.abs(jax.random.normal(kv1, (C,), dtype=jnp.float32)) + 0.5
    gamma2 = 1.0 + 0.1 * jax.random.normal(kg2, (C,), dtype=jnp.float32)
    beta2 = 0.1 * jax.random.normal(kb2, (C,), dtype=jnp.float32)
    mean2 = 0.1 * jax.random.normal(km2, (C,), dtype=jnp.float32)
    var2 = jnp.abs(jax.random.normal(kv2, (C,), dtype=jnp.float32)) + 0.5

    s1 = gamma1 / jnp.sqrt(var1 + eps)
    b1 = beta1 - mean1 * s1
    s2 = gamma2 / jnp.sqrt(var2 + eps)
    b2 = beta2 - mean2 * s2

    out = basic_block_pallas(x, w1, s1, b1, w2, s2, b2)
    out = jax.block_until_ready(out)

    ref = _reference_basic_block(x, w1, s1, b1, w2, s2, b2)
    assert out.shape == (N, C, H, W)
    # bf16 MXU inputs (f32 accumulation) -> loosened tolerance vs. the f32 reference.
    assert jnp.allclose(out, ref, atol=5e-2, rtol=5e-2), "mismatch vs reference"

    print("KERNEL_OK")
</pallas_src>

<mosaic_0001>
module attributes {stable_mosaic.version = 11 : i64} {
  func.func @_basic_block_kernel(%arg0: i32, %arg1: memref<1x16x16x128xf32, #tpu.memory_space<vmem>>, %arg2: memref<3x384x128xbf16, #tpu.memory_space<vmem>>, %arg3: memref<1x128xf32, #tpu.memory_space<vmem>>, %arg4: memref<3x384x128xbf16, #tpu.memory_space<vmem>>, %arg5: memref<1x128xf32, #tpu.memory_space<vmem>>, %arg6: memref<1x16x16x128xf32, #tpu.memory_space<vmem>>, %arg7: memref<18x24x128xf32, #tpu.memory_space<vmem>>, %arg8: memref<18x24x128xf32, #tpu.memory_space<vmem>>) attributes {dimension_semantics = [#tpu.dimension_semantics<parallel>], iteration_bounds = array<i64: 2>, scalar_prefetch = 0 : i64, scratch_operands = 2 : i64, tpu.core_type = #tpu.core_type<tc>, window_params = [{transform_indices = @transform_0, window_bounds = array<i64: 1, 16, 16, 128>}, {pipeline_mode = #tpu.pipeline_mode<synchronous>, transform_indices = @transform_1, window_bounds = array<i64: 3, 384, 128>}, {pipeline_mode = #tpu.pipeline_mode<synchronous>, transform_indices = @transform_2, window_bounds = array<i64: 1, 128>}, {pipeline_mode = #tpu.pipeline_mode<synchronous>, transform_indices = @transform_3, window_bounds = array<i64: 3, 384, 128>}, {pipeline_mode = #tpu.pipeline_mode<synchronous>, transform_indices = @transform_4, window_bounds = array<i64: 1, 128>}, {transform_indices = @transform_5, window_bounds = array<i64: 1, 16, 16, 128>}]} {
    %cst = arith.constant 0.000000e+00 : f32
    %0 = vector.broadcast %cst : f32 to vector<1x24x128xf32>
    %c0 = arith.constant 0 : index
    %c0_0 = arith.constant 0 : index
    %c0_1 = arith.constant 0 : index
    %1 = vector.load %arg7[%c0, %c0_0, %c0_1] : memref<18x24x128xf32, #tpu.memory_space<vmem>>, vector<1x24x128xf32>
    tpu.vector_store %arg7[%c0, %c0_0, %c0_1], %0 {strides = array<i32>} : memref<18x24x128xf32, #tpu.memory_space<vmem>>, vector<1x24x128xf32>,
    %c17 = arith.constant 17 : index
    %c0_2 = arith.constant 0 : index
    %c0_3 = arith.constant 0 : index
    %2 = vector.load %arg7[%c17, %c0_2, %c0_3] : memref<18x24x128xf32, #tpu.memory_space<vmem>>, vector<1x24x128xf32>
    tpu.vector_store %arg7[%c17, %c0_2, %c0_3], %0 {strides = array<i32>} : memref<18x24x128xf32, #tpu.memory_space<vmem>>, vector<1x24x128xf32>,
    %cst_4 = arith.constant 0.000000e+00 : f32
    %3 = vector.broadcast %cst_4 : f32 to vector<18x1x128xf32>
    %c0_5 = arith.constant 0 : index
    %c0_6 = arith.constant 0 : index
    %c0_7 = arith.constant 0 : index
    %4 = vector.load %arg7[%c0_5, %c0_6, %c0_7] : memref<18x24x128xf32, #tpu.memory_space<vmem>>, vector<18x1x128xf32>
    tpu.vector_store %arg7[%c0_5, %c0_6, %c0_7], %3 {strides = array<i32>} : memref<18x24x128xf32, #tpu.memory_space<vmem>>, vector<18x1x128xf32>,
    %c0_8 = arith.constant 0 : index
    %c17_9 = arith.constant 17 : index
    %c0_10 = arith.constant 0 : index
    %5 = vector.load %arg7[%c0_8, %c17_9, %c0_10] : memref<18x24x128xf32, #tpu.memory_space<vmem>>, vector<18x1x128xf32>
    tpu.vector_store %arg7[%c0_8, %c17_9, %c0_10], %3 {strides = array<i32>} : memref<18x24x128xf32, #tpu.memory_space<vmem>>, vector<18x1x128xf32>,
    %cst_11 = arith.constant 0.000000e+00 : f32
    %6 = vector.broadcast %cst_11 : f32 to vector<1x24x128xf32>
    %c0_12 = arith.constant 0 : index
    %c0_13 = arith.constant 0 : index
    %c0_14 = arith.constant 0 : index
    %7 = vector.load %arg8[%c0_12, %c0_13, %c0_14] : memref<18x24x128xf32, #tpu.memory_space<vmem>>, vector<1x24x128xf32>
    tpu.vector_store %arg8[%c0_12, %c0_13, %c0_14], %6 {strides = array<i32>} : memref<18x24x128xf32, #tpu.memory_space<vmem>>, vector<1x24x128xf32>,
    %c17_15 = arith.constant 17 : index
    %c0_16 = arith.constant 0 : index
    %c0_17 = arith.constant 0 : index
    %8 = vector.load %arg8[%c17_15, %c0_16, %c0_17] : memref<18x24x128xf32, #tpu.memory_space<vmem>>, vector<1x24x128xf32>
    tpu.vector_store %arg8[%c17_15, %c0_16, %c0_17], %6 {strides = array<i32>} : memref<18x24x128xf32, #tpu.memory_space<vmem>>, vector<1x24x128xf32>,
    %cst_18 = arith.constant 0.000000e+00 : f32
    %9 = vector.broadcast %cst_18 : f32 to vector<18x1x128xf32>
    %c0_19 = arith.constant 0 : index
    %c0_20 = arith.constant 0 : index
    %c0_21 = arith.constant 0 : index
    %10 = vector.load %arg8[%c0_19, %c0_20, %c0_21] : memref<18x24x128xf32, #tpu.memory_space<vmem>>, vector<18x1x128xf32>
    tpu.vector_store %arg8[%c0_19, %c0_20, %c0_21], %9 {strides = array<i32>} : memref<18x24x128xf32, #tpu.memory_space<vmem>>, vector<18x1x128xf32>,
    %c0_22 = arith.constant 0 : index
    %c17_23 = arith.constant 17 : index
    %c0_24 = arith.constant 0 : index
    %11 = vector.load %arg8[%c0_22, %c17_23, %c0_24] : memref<18x24x128xf32, #tpu.memory_space<vmem>>, vector<18x1x128xf32>
    tpu.vector_store %arg8[%c0_22, %c17_23, %c0_24], %9 {strides = array<i32>} : memref<18x24x128xf32, #tpu.memory_space<vmem>>, vector<18x1x128xf32>,
    %c0_25 = arith.constant 0 : index
    %c0_26 = arith.constant 0 : index
    %c0_27 = arith.constant 0 : index
    %c0_28 = arith.constant 0 : index
    %12 = vector.load %arg1[%c0_25, %c0_26, %c0_27, %c0_28] : memref<1x16x16x128xf32, #tpu.memory_space<vmem>>, vector<1x16x16x128xf32>
    %13 = vector.shape_cast %12 : vector<1x16x16x128xf32> to vector<16x16x128xf32>
    %c1 = arith.constant 1 : index
    %c1_29 = arith.constant 1 : index
    %c0_30 = arith.constant 0 : index
    %14 = vector.load %arg7[%c1, %c1_29, %c0_30] : memref<18x24x128xf32, #tpu.memory_space<vmem>>, vector<16x16x128xf32>
    tpu.vector_store %arg7[%c1, %c1_29, %c0_30], %13 {strides = array<i32>} : memref<18x24x128xf32, #tpu.memory_space<vmem>>, vector<16x16x128xf32>,
    %c0_31 = arith.constant 0 : index
    %c0_32 = arith.constant 0 : index
    %c0_33 = arith.constant 0 : index
    %15 = vector.load %arg7[%c0_31, %c0_32, %c0_33] : memref<18x24x128xf32, #tpu.memory_space<vmem>>, vector<16x16x128xf32>
    %c0_34 = arith.constant 0 : index
    %c1_35 = arith.constant 1 : index
    %c0_36 = arith.constant 0 : index
    %16 = vector.load %arg7[%c0_34, %c1_35, %c0_36] : memref<18x24x128xf32, #tpu.memory_space<vmem>>, vector<16x16x128xf32>
    %c0_37 = arith.constant 0 : index
    %c2 = arith.constant 2 : index
    %c0_38 = arith.constant 0 : index
    %17 = vector.load %arg7[%c0_37, %c2, %c0_38] : memref<18x24x128xf32, #tpu.memory_space<vmem>>, vector<16x16x128xf32>
    %18 = tpu.concatenate %15, %16, %17 in 2 : vector<16x16x128xf32>, vector<16x16x128xf32>, vector<16x16x128xf32> -> vector<16x16x384xf32>
    %19 = vector.shape_cast %18 : vector<16x16x384xf32> to vector<256x384xf32>
    %20 = arith.truncf %19 : vector<256x384xf32> to vector<256x384xbf16>
    %c0_39 = arith.constant 0 : index
    %c0_40 = arith.constant 0 : index
    %c0_41 = arith.constant 0 : index
    %21 = vector.load %arg2[%c0_39, %c0_40, %c0_41] : memref<3x384x128xbf16, #tpu.memory_space<vmem>>, vector<1x384x128xbf16>
    %22 = vector.shape_cast %21 : vector<1x384x128xbf16> to vector<384x128xbf16>
    %cst_42 = arith.constant dense<0.000000e+00> : vector<256x128xf32>
    %23 = tpu.matmul %20, %22, %cst_42 {dimension_numbers = #tpu.dot_dimension_numbers<[1], [0], [0], [1], [0, 0, 1, 1], [], []>} : vector<256x384xbf16>, vector<384x128xbf16>, vector<256x128xf32> -> vector<256x128xf32>
    %c1_43 = arith.constant 1 : index
    %c0_44 = arith.constant 0 : index
    %c0_45 = arith.constant 0 : index
    %24 = vector.load %arg7[%c1_43, %c0_44, %c0_45] : memref<18x24x128xf32, #tpu.memory_space<vmem>>, vector<16x16x128xf32>
    %c1_46 = arith.constant 1 : index
    %c1_47 = arith.constant 1 : index
    %c0_48 = arith.constant 0 : index
    %25 = vector.load %arg7[%c1_46, %c1_47, %c0_48] : memref<18x24x128xf32, #tpu.memory_space<vmem>>, vector<16x16x128xf32>
    %c1_49 = arith.constant 1 : index
    %c2_50 = arith.constant 2 : index
    %c0_51 = arith.constant 0 : index
    %26 = vector.load %arg7[%c1_49, %c2_50, %c0_51] : memref<18x24x128xf32, #tpu.memory_space<vmem>>, vector<16x16x128xf32>
    %27 = tpu.concatenate %24, %25, %26 in 2 : vector<16x16x128xf32>, vector<16x16x128xf32>, vector<16x16x128xf32> -> vector<16x16x384xf32>
    %28 = vector.shape_cast %27 : vector<16x16x384xf32> to vector<256x384xf32>
    %29 = arith.truncf %28 : vector<256x384xf32> to vector<256x384xbf16>
    %c1_52 = arith.constant 1 : index
    %c0_53 = arith.constant 0 : index
    %c0_54 = arith.constant 0 : index
    %30 = vector.load %arg2[%c1_52, %c0_53, %c0_54] : memref<3x384x128xbf16, #tpu.memory_space<vmem>>, vector<1x384x128xbf16>
    %31 = vector.shape_cast %30 : vector<1x384x128xbf16> to vector<384x128xbf16>
    %cst_55 = arith.constant dense<0.000000e+00> : vector<256x128xf32>
    %32 = tpu.matmul %29, %31, %cst_55 {dimension_numbers = #tpu.dot_dimension_numbers<[1], [0], [0], [1], [0, 0, 1, 1], [], []>} : vector<256x384xbf16>, vector<384x128xbf16>, vector<256x128xf32> -> vector<256x128xf32>
    %33 = arith.addf %23, %32 : vector<256x128xf32>
    %c2_56 = arith.constant 2 : index
    %c0_57 = arith.constant 0 : index
    %c0_58 = arith.constant 0 : index
    %34 = vector.load %arg7[%c2_56, %c0_57, %c0_58] : memref<18x24x128xf32, #tpu.memory_space<vmem>>, vector<16x16x128xf32>
    %c2_59 = arith.constant 2 : index
    %c1_60 = arith.constant 1 : index
    %c0_61 = arith.constant 0 : index
    %35 = vector.load %arg7[%c2_59, %c1_60, %c0_61] : memref<18x24x128xf32, #tpu.memory_space<vmem>>, vector<16x16x128xf32>
    %c2_62 = arith.constant 2 : index
    %c2_63 = arith.constant 2 : index
    %c0_64 = arith.constant 0 : index
    %36 = vector.load %arg7[%c2_62, %c2_63, %c0_64] : memref<18x24x128xf32, #tpu.memory_space<vmem>>, vector<16x16x128xf32>
    %37 = tpu.concatenate %34, %35, %36 in 2 : vector<16x16x128xf32>, vector<16x16x128xf32>, vector<16x16x128xf32> -> vector<16x16x384xf32>
    %38 = vector.shape_cast %37 : vector<16x16x384xf32> to vector<256x384xf32>
    %39 = arith.truncf %38 : vector<256x384xf32> to vector<256x384xbf16>
    %c2_65 = arith.constant 2 : index
    %c0_66 = arith.constant 0 : index
    %c0_67 = arith.constant 0 : index
    %40 = vector.load %arg2[%c2_65, %c0_66, %c0_67] : memref<3x384x128xbf16, #tpu.memory_space<vmem>>, vector<1x384x128xbf16>
    %41 = vector.shape_cast %40 : vector<1x384x128xbf16> to vector<384x128xbf16>
    %cst_68 = arith.constant dense<0.000000e+00> : vector<256x128xf32>
    %42 = tpu.matmul %39, %41, %cst_68 {dimension_numbers = #tpu.dot_dimension_numbers<[1], [0], [0], [1], [0, 0, 1, 1], [], []>} : vector<256x384xbf16>, vector<384x128xbf16>, vector<256x128xf32> -> vector<256x128xf32>
    %43 = arith.addf %33, %42 : vector<256x128xf32>
    %c0_69 = arith.constant 0 : index
    %c0_70 = arith.constant 0 : index
    %44 = vector.load %arg3[%c0_69, %c0_70] : memref<1x128xf32, #tpu.memory_space<vmem>>, vector<1x128xf32>
    %45 = vector.shape_cast %44 : vector<1x128xf32> to vector<128xf32>
    %46 = vector.shape_cast %45 : vector<128xf32> to vector<1x128xf32>
    %47 = vector.broadcast %46 : vector<1x128xf32> to vector<256x128xf32>
    %48 = arith.addf %43, %47 : vector<256x128xf32>
    %cst_71 = arith.constant 0.000000e+00 : f32
    %49 = vector.broadcast %cst_71 : f32 to vector<256x128xf32>
    %50 = arith.maximumf %48, %49 : vector<256x128xf32>
    %51 = vector.shape_cast %50 : vector<256x128xf32> to vector<16x16x128xf32>
    %c1_72 = arith.constant 1 : index
    %c1_73 = arith.constant 1 : index
    %c0_74 = arith.constant 0 : index
    %52 = vector.load %arg8[%c1_72, %c1_73, %c0_74] : memref<18x24x128xf32, #tpu.memory_space<vmem>>, vector<16x16x128xf32>
    tpu.vector_store %arg8[%c1_72, %c1_73, %c0_74], %51 {strides = array<i32>} : memref<18x24x128xf32, #tpu.memory_space<vmem>>, vector<16x16x128xf32>,
    %c0_75 = arith.constant 0 : index
    %c0_76 = arith.constant 0 : index
    %c0_77 = arith.constant 0 : index
    %53 = vector.load %arg8[%c0_75, %c0_76, %c0_77] : memref<18x24x128xf32, #tpu.memory_space<vmem>>, vector<16x16x128xf32>
    %c0_78 = arith.constant 0 : index
    %c1_79 = arith.constant 1 : index
    %c0_80 = arith.constant 0 : index
    %54 = vector.load %arg8[%c0_78, %c1_79, %c0_80] : memref<18x24x128xf32, #tpu.memory_space<vmem>>, vector<16x16x128xf32>
    %c0_81 = arith.constant 0 : index
    %c2_82 = arith.constant 2 : index
    %c0_83 = arith.constant 0 : index
    %55 = vector.load %arg8[%c0_81, %c2_82, %c0_83] : memref<18x24x128xf32, #tpu.memory_space<vmem>>, vector<16x16x128xf32>
    %56 = tpu.concatenate %53, %54, %55 in 2 : vector<16x16x128xf32>, vector<16x16x128xf32>, vector<16x16x128xf32> -> vector<16x16x384xf32>
    %57 = vector.shape_cast %56 : vector<16x16x384xf32> to vector<256x384xf32>
    %58 = arith.truncf %57 : vector<256x384xf32> to vector<256x384xbf16>
    %c0_84 = arith.constant 0 : index
    %c0_85 = arith.constant 0 : index
    %c0_86 = arith.constant 0 : index
    %59 = vector.load %arg4[%c0_84, %c0_85, %c0_86] : memref<3x384x128xbf16, #tpu.memory_space<vmem>>, vector<1x384x128xbf16>
    %60 = vector.shape_cast %59 : vector<1x384x128xbf16> to vector<384x128xbf16>
    %cst_87 = arith.constant dense<0.000000e+00> : vector<256x128xf32>
    %61 = tpu.matmul %58, %60, %cst_87 {dimension_numbers = #tpu.dot_dimension_numbers<[1], [0], [0], [1], [0, 0, 1, 1], [], []>} : vector<256x384xbf16>, vector<384x128xbf16>, vector<256x128xf32> -> vector<256x128xf32>
    %c1_88 = arith.constant 1 : index
    %c0_89 = arith.constant 0 : index
    %c0_90 = arith.constant 0 : index
    %62 = vector.load %arg8[%c1_88, %c0_89, %c0_90] : memref<18x24x128xf32, #tpu.memory_space<vmem>>, vector<16x16x128xf32>
    %c1_91 = arith.constant 1 : index
    %c1_92 = arith.constant 1 : index
    %c0_93 = arith.constant 0 : index
    %63 = vector.load %arg8[%c1_91, %c1_92, %c0_93] : memref<18x24x128xf32, #tpu.memory_space<vmem>>, vector<16x16x128xf32>
    %c1_94 = arith.constant 1 : index
    %c2_95 = arith.constant 2 : index
    %c0_96 = arith.constant 0 : index
    %64 = vector.load %arg8[%c1_94, %c2_95, %c0_96] : memref<18x24x128xf32, #tpu.memory_space<vmem>>, vector<16x16x128xf32>
    %65 = tpu.concatenate %62, %63, %64 in 2 : vector<16x16x128xf32>, vector<16x16x128xf32>, vector<16x16x128xf32> -> vector<16x16x384xf32>
    %66 = vector.shape_cast %65 : vector<16x16x384xf32> to vector<256x384xf32>
    %67 = arith.truncf %66 : vector<256x384xf32> to vector<256x384xbf16>
    %c1_97 = arith.constant 1 : index
    %c0_98 = arith.constant 0 : index
    %c0_99 = arith.constant 0 : index
    %68 = vector.load %arg4[%c1_97, %c0_98, %c0_99] : memref<3x384x128xbf16, #tpu.memory_space<vmem>>, vector<1x384x128xbf16>
    %69 = vector.shape_cast %68 : vector<1x384x128xbf16> to vector<384x128xbf16>
    %cst_100 = arith.constant dense<0.000000e+00> : vector<256x128xf32>
    %70 = tpu.matmul %67, %69, %cst_100 {dimension_numbers = #tpu.dot_dimension_numbers<[1], [0], [0], [1], [0, 0, 1, 1], [], []>} : vector<256x384xbf16>, vector<384x128xbf16>, vector<256x128xf32> -> vector<256x128xf32>
    %71 = arith.addf %61, %70 : vector<256x128xf32>
    %c2_101 = arith.constant 2 : index
    %c0_102 = arith.constant 0 : index
    %c0_103 = arith.constant 0 : index
    %72 = vector.load %arg8[%c2_101, %c0_102, %c0_103] : memref<18x24x128xf32, #tpu.memory_space<vmem>>, vector<16x16x128xf32>
    %c2_104 = arith.constant 2 : index
    %c1_105 = arith.constant 1 : index
    %c0_106 = arith.constant 0 : index
    %73 = vector.load %arg8[%c2_104, %c1_105, %c0_106] : memref<18x24x128xf32, #tpu.memory_space<vmem>>, vector<16x16x128xf32>
    %c2_107 = arith.constant 2 : index
    %c2_108 = arith.constant 2 : index
    %c0_109 = arith.constant 0 : index
    %74 = vector.load %arg8[%c2_107, %c2_108, %c0_109] : memref<18x24x128xf32, #tpu.memory_space<vmem>>, vector<16x16x128xf32>
    %75 = tpu.concatenate %72, %73, %74 in 2 : vector<16x16x128xf32>, vector<16x16x128xf32>, vector<16x16x128xf32> -> vector<16x16x384xf32>
    %76 = vector.shape_cast %75 : vector<16x16x384xf32> to vector<256x384xf32>
    %77 = arith.truncf %76 : vector<256x384xf32> to vector<256x384xbf16>
    %c2_110 = arith.constant 2 : index
    %c0_111 = arith.constant 0 : index
    %c0_112 = arith.constant 0 : index
    %78 = vector.load %arg4[%c2_110, %c0_111, %c0_112] : memref<3x384x128xbf16, #tpu.memory_space<vmem>>, vector<1x384x128xbf16>
    %79 = vector.shape_cast %78 : vector<1x384x128xbf16> to vector<384x128xbf16>
    %cst_113 = arith.constant dense<0.000000e+00> : vector<256x128xf32>
    %80 = tpu.matmul %77, %79, %cst_113 {dimension_numbers = #tpu.dot_dimension_numbers<[1], [0], [0], [1], [0, 0, 1, 1], [], []>} : vector<256x384xbf16>, vector<384x128xbf16>, vector<256x128xf32> -> vector<256x128xf32>
    %81 = arith.addf %71, %80 : vector<256x128xf32>
    %c0_114 = arith.constant 0 : index
    %c0_115 = arith.constant 0 : index
    %82 = vector.load %arg5[%c0_114, %c0_115] : memref<1x128xf32, #tpu.memory_space<vmem>>, vector<1x128xf32>
    %83 = vector.shape_cast %82 : vector<1x128xf32> to vector<128xf32>
    %84 = vector.shape_cast %83 : vector<128xf32> to vector<1x128xf32>
    %85 = vector.broadcast %84 : vector<1x128xf32> to vector<256x128xf32>
    %86 = arith.addf %81, %85 : vector<256x128xf32>
    %87 = vector.shape_cast %13 : vector<16x16x128xf32> to vector<256x128xf32>
    %88 = arith.addf %86, %87 : vector<256x128xf32>
    %cst_116 = arith.constant 0.000000e+00 : f32
    %89 = vector.broadcast %cst_116 : f32 to vector<256x128xf32>
    %90 = arith.maximumf %88, %89 : vector<256x128xf32>
    %91 = vector.shape_cast %90 : vector<256x128xf32> to vector<1x16x16x128xf32>
    %c0_117 = arith.constant 0 : index
    %c0_118 = arith.constant 0 : index
    %c0_119 = arith.constant 0 : index
    %c0_120 = arith.constant 0 : index
    %92 = vector.load %arg6[%c0_117, %c0_118, %c0_119, %c0_120] : memref<1x16x16x128xf32, #tpu.memory_space<vmem>>, vector<1x16x16x128xf32>
    tpu.vector_store %arg6[%c0_117, %c0_118, %c0_119, %c0_120], %91 {strides = array<i32>} : memref<1x16x16x128xf32, #tpu.memory_space<vmem>>, vector<1x16x16x128xf32>,
    return
  }
  func.func @transform_0(%arg0: i32) -> (i32, i32, i32, i32) {
    %c0_i32 = arith.constant 0 : i32
    %c0_i32_0 = arith.constant 0 : i32
    %c0_i32_1 = arith.constant 0 : i32
    %c0_i32_2 = arith.constant 0 : i32
    return %arg0, %c0_i32, %c0_i32_0, %c0_i32_1 : i32, i32, i32, i32
  }
  func.func @transform_1(%arg0: i32) -> (i32, i32, i32) {
    %c0_i32 = arith.constant 0 : i32
    %c0_i32_0 = arith.constant 0 : i32
    %c0_i32_1 = arith.constant 0 : i32
    %c0_i32_2 = arith.constant 0 : i32
    return %c0_i32, %c0_i32_0, %c0_i32_1 : i32, i32, i32
  }
  func.func @transform_2(%arg0: i32) -> (i32, i32) {
    %c0_i32 = arith.constant 0 : i32
    %c0_i32_0 = arith.constant 0 : i32
    %c0_i32_1 = arith.constant 0 : i32
    return %c0_i32, %c0_i32_0 : i32, i32
  }
  func.func @transform_3(%arg0: i32) -> (i32, i32, i32) {
    %c0_i32 = arith.constant 0 : i32
    %c0_i32_0 = arith.constant 0 : i32
    %c0_i32_1 = arith.constant 0 : i32
    %c0_i32_2 = arith.constant 0 : i32
    return %c0_i32, %c0_i32_0, %c0_i32_1 : i32, i32, i32
  }
  func.func @transform_4(%arg0: i32) -> (i32, i32) {
    %c0_i32 = arith.constant 0 : i32
    %c0_i32_0 = arith.constant 0 : i32
    %c0_i32_1 = arith.constant 0 : i32
    return %c0_i32, %c0_i32_0 : i32, i32
  }
  func.func @transform_5(%arg0: i32) -> (i32, i32, i32, i32) {
    %c0_i32 = arith.constant 0 : i32
    %c0_i32_0 = arith.constant 0 : i32
    %c0_i32_1 = arith.constant 0 : i32
    %c0_i32_2 = arith.constant 0 : i32
    return %arg0, %c0_i32, %c0_i32_0, %c0_i32_1 : i32, i32, i32, i32
  }
}

</mosaic_0001>

<bundles_post_ra>
// kernel: tpu_custom_call.1
= control target key start
LH: loop header
LB: loop body
LE: loop exit
PB: predicated region body
PF: predicated region fallthrough
CT: control target
= control target key end

     0   :  { %10 = vsyncpa [#allocation5], 0  ;;  %s8312_s0 = inlined_call_operand.hbm [shape: f32[2,16,16,128], index: 0, kind: input, shape index: {}]   ;;  %s8313_s1 = inlined_call_operand.hbm [shape: bf16[3,384,128], index: 1, kind: input, shape index: {}]   ;;  %s8314_s2 = inlined_call_operand.vmem [shape: f32[1,128], index: 2, kind: input, shape index: {}]   ;;  %s8315_s3 = inlined_call_operand.hbm [shape: bf16[3,384,128], index: 3, kind: input, shape index: {}]   ;;  %s8316_s4 = inlined_call_operand.vmem [shape: f32[1,128], index: 4, kind: input, shape index: {}]   ;;  %s8317_s5 = inlined_call_operand.hbm [shape: f32[2,16,16,128], index: 5, kind: output, shape index: {}]  }
   0x1   :  { %12 = vsyncpa [#allocation5 + $0x1], 0 }
   0x2   :  { %13 = vsyncpa [#allocation8], 0 }
   0x3   :  { %14 = vsyncpa [#allocation6], 0 }
   0x4   :  { %16 = vsyncpa [#allocation6 + $0x1], 0  ;;  %s6828_s18 = smov 0   ;;  %s6830_s19 = smov 0  }
   0x5   :  { %s6832_s20 = smov 0   ;;  %s6834_s21 = smov 0  }
   0x6 LB: > { %s6849_s22 = sadd.s32 4294967295, %s6785_s21   ;;  %s4787_s23 = sadd.s32 4294967294, %s6785_s21   ;;  %s6785_s21 = sphi %s6834_s21, %s8361_s21   ;;  %s6781_s20 = sphi %s6832_s20, %s8360_s20   ;;  %s6777_s19 = sphi %s6830_s19, %s8359_s19   ;;  %s6773_s18 = sphi %s6828_s18, %s8358_s18  }
   0x7   : > { %p42_p0 = scmp.ne.s32.totalorder %s6777_s19, %s6773_s18  ;;  %p8318_p1 = scmp.eq.s32.totalorder %s6849_s22, 0 }
   0x8   : > { %p156_p3 = scmp.eq.s32.totalorder %s4787_s23, 1  ;;  %p4788_p5 = scmp.ge.s32.totalorder %s6785_s21, 1 }
   0x9   : > { %p6858_p4 = por %p8318_p1, %p42_p0  ;;  %p163_p7 = scmp.lt.s32.totalorder %s6785_s21, 3 }
   0xa   : > { %p6863_p6 = por %p156_p3, %p42_p0  ;;  %s6787_s27 = smov [#allocation7]  }
   0xb   : > { %s8321_s24 = scalar_select %p6858_p4, 1, 0 }
   0xc   : > { %s8322_s25 = scalar_select %p6863_p6, 1, 0 }
   0xd   : > { %p6868_p8 = pnand %p4788_p5, %p163_p7  ;;  %s175_s28 = sshll.u32 %s6787_s27, 4  ;;  %s6872_s28 = int_to_ptr.vmem [resolvable:$true] %s175_s28 }
   0xe   : > { %s6788_s30 = smov [#allocation9]   ;;  %s6629_s9 = scalar_lea.hbm %s8313_s1, 9216 }
   0xf   : > { %p6389_p9 = pneg %p6868_p8  ;;  %s191_s6 = sshll.u32 %s6788_s30, 4  ;;  %s6883_s6 = int_to_ptr.vmem [resolvable:$true] %s191_s6 }
  0x10   : > { %p6630_p12 = scmp.ne.s32.totalorder %s8313_s1, %s6629_s9  ;;  %p6636_p5 = scmp.lt.u32.totalorder %s6629_s9, %s8313_s1 }
  0x11   : > { %p6879_p11 = pnand %p6389_p9, %p8318_p1 }
  0x13   : > { %p6631_p13 = pneg %p6879_p11 }
  0x15   : > { %p6632_p0 = pnand %p6631_p13, %p6630_p12 }
  0x17   : > { %p6633_p3 = pneg %p6632_p0 }
  0x19   : > { %p6638_p7 = pnand %p6636_p5, %p6633_p3 }
  0x1b   : > { %6641 = shalt.err (!%p6638_p7)
}
  0x1c   : > { %s6642_s14 = scalar_lea.vmem %s6872_s28, 9216  ;;  %p6650_p2 = scmp.lt.s32.totalorder %s6872_s28, %s6872_s28 }
  0x1d   : > { %p6643_p9 = scmp.ne.s32.totalorder %s6872_s28, %s6642_s14  ;;  %p6651_p12 = scmp.lt.s32.totalorder %s6642_s14, %s6642_s14 }
  0x1f   : > { %p6645_p10 = pnand %p6643_p9, %p6631_p13  ;;  %p6652_p0 = por %p6651_p12, %p6650_p2 }
  0x21   : > { %p6646_p1 = pneg %p6645_p10 }
  0x23   : > { %p6653_p6 = pnand %p6652_p0, %p6646_p1 }
  0x25   : > { %6656 = shalt.err (!%p6653_p6)
}
  0x26   : > { %s6789_s15 = smov 64   ;;  %s6790_s16 = smov 4  }
  0x27   : > { %6392 = dma.hbm_to_vmem [thread:$0]  (!%p6879_p11), %s8313_s1, 9216, %s6872_s28, [#allocation8], %s6789_s15, %s6789_s15, %s6790_s16  }
  0x28   : > { %s6657_s7 = scalar_lea.hbm %s8315_s3, 9216 }
  0x29   : > { %p6658_p2 = scmp.ne.s32.totalorder %s8315_s3, %s6657_s7  ;;  %p6664_p10 = scmp.lt.u32.totalorder %s6657_s7, %s8315_s3 }
  0x2b   : > { %p6660_p1 = pnand %p6658_p2, %p6631_p13 }
  0x2d   : > { %p6661_p6 = pneg %p6660_p1 }
  0x2f   : > { %p6666_p3 = pnand %p6664_p10, %p6661_p6 }
  0x31   : > { %6669 = shalt.err (!%p6666_p3)
}
  0x32   : > { %s6670_s28 = scalar_lea.vmem %s6883_s6, 9216  ;;  %p6678_p12 = scmp.lt.s32.totalorder %s6883_s6, %s6883_s6 }
  0x33   : > { %p6671_p5 = scmp.ne.s32.totalorder %s6883_s6, %s6670_s28  ;;  %p6679_p0 = scmp.lt.s32.totalorder %s6670_s28, %s6670_s28 }
  0x35   : > { %p6673_p7 = pnand %p6671_p5, %p6631_p13  ;;  %p6680_p2 = por %p6679_p0, %p6678_p12 }
  0x37   : > { %p6674_p9 = pneg %p6673_p7 }
  0x39   : > { %p6681_p1 = pnand %p6680_p2, %p6674_p9 }
  0x3b   : > { %6684 = shalt.err (!%p6681_p1)
}
  0x3c   : > { %6395 = dma.hbm_to_vmem [thread:$0]  (!%p6879_p11), %s8315_s3, 9216, %s6883_s6, [#allocation8], %s6789_s15, %s6789_s15, %s6790_s16  }
  0x3d   : > { %s6938_s14 = sadd.s32 1, %s6785_s21   ;;  %s29_s29 = sadd.s32 1, %s6781_s20 }
  0x3e   : > { %s26_s17 = ssub.s32 %s6785_s21, %s6938_s14  ;;  %p36_p13 = scmp.ne.s32.totalorder %s6781_s20, %s6777_s19 }
  0x3f   : > { %p27_p6 = scmp.eq.s32.totalorder %s26_s17, 0  ;;  %p37_p10 = scmp.eq.s32.totalorder %s6785_s21, 0 }
  0x40   : > { %p8325_p3 = scmp.eq.s32.totalorder %s6849_s22, 1  ;;  %p6406_p7 = scmp.lt.s32.totalorder %s6785_s21, 2 }
  0x41   : > { %s6954_s27 = scalar_select %p27_p6, %s6781_s20, %s29_s29  }
  0x42   : > { %p6948_p5 = por %p8325_p3, %p36_p13  ;;  %p38_p9 = por %p37_p10, %p36_p13 }
  0x43   : > { %s208_s30 = sand.u32 1, %s6781_s20   ;;  %s4951_s6 = sshll.u32 %s6785_s21, 12 }
  0x44   : > { %s8326_s23 = scalar_select %p6948_p5, 1, 0 }
  0x45   : > { %s4792_s7 = sshll.u32 %s208_s30, 8  ;;  %s6961_s8 = scalar_lea.hbm %s8312_s0, %s4951_s6 }
  0x46   : > { %s212_s9 = scalar_lea.vmem [#allocation4], %s4792_s7  ;;  %p6965_p11 = pnand %p6406_p7, %p38_p9 }
  0x47   : > { %s219_s10 = sshll.u32 %s212_s9, 4  ;;  %s6969_s28 = scalar_lea.sflag [#allocation5], %s208_s30  ;;  %s6963_s10 = int_to_ptr.vmem [resolvable:$true] %s219_s10 }
  0x48   : > { %s6685_s12 = scalar_lea.hbm %s6961_s8, 4096  ;;  %p6687_p0 = pneg %p6965_p11 }
  0x49   : > { %p6686_p12 = scmp.ne.s32.totalorder %s6961_s8, %s6685_s12  ;;  %s6690_s17 = scalar_lea.hbm %s8312_s0, 8192 }
  0x4a   : > { %p6691_p13 = scmp.lt.u32.totalorder %s6961_s8, %s8312_s0  ;;  %p6692_p6 = scmp.lt.u32.totalorder %s6690_s17, %s6685_s12 }
  0x4b   : > { %p6688_p2 = pnand %p6687_p0, %p6686_p12  ;;  %p6694_p3 = scmp.lt.u32.totalorder %s6685_s12, %s6961_s8 }
  0x4c   : > { %p6693_p10 = por %p6692_p6, %p6691_p13 }
  0x4d   : > { %p6689_p1 = pneg %p6688_p2 }
  0x4e   : > { %p6695_p7 = por %p6694_p3, %p6693_p10 }
  0x50   : > { %p6696_p9 = pnand %p6695_p7, %p6689_p1 }
  0x52   : > { %6699 = shalt.err (!%p6696_p9)
}
  0x53   : > { %s6700_s30 = scalar_lea.vmem %s6963_s10, 4096  ;;  %s6791_s15 = smov [#allocation4]  }
  0x54   : > { %p6701_p12 = scmp.ne.s32.totalorder %s6963_s10, %s6700_s30  ;;  %s6705_s16 = sshll.u32 %s6791_s15, 4  ;;  %s6706_s16 = int_to_ptr.vmem [resolvable:$false] %s6705_s16 }
  0x55   : > { %s6707_s9 = scalar_lea.vmem %s6706_s16, 8192  ;;  %p6708_p4 = scmp.lt.s32.totalorder %s6963_s10, %s6706_s16 }
  0x56   : > { %p6703_p2 = pnand %p6701_p12, %p6687_p0  ;;  %p6709_p13 = scmp.lt.s32.totalorder %s6707_s9, %s6700_s30 }
  0x58   : > { %p6704_p5 = pneg %p6703_p2  ;;  %p6710_p6 = por %p6709_p13, %p6708_p4 }
  0x5a   : > { %p6711_p10 = pnand %p6710_p6, %p6704_p5 }
  0x5c   : > { %6714 = shalt.err (!%p6711_p10)
}
  0x5d   : > { %s6792_s12 = smov 128   ;;  %s6793_s13 = smov 8  }
  0x5e   : > { %6399 = dma.hbm_to_vmem [thread:$0]  (!%p6965_p11), %s6961_s8, 4096, %s6963_s10, %s6969_s28, %s6792_s12, %s6792_s12, %s6793_s13  }
  0x5f   : > { %231 = sbr.rel (%p6868_p8) target bundleno = 1204 (0x4b4), region = 40 }
  0x66   : > { %s7000_s29 = sand.u32 1, %s6777_s19   ;;  %p8328_p4 = scmp.ne.s32.totalorder %s8321_s24, 0 }
  0x67   : > { %s4796_s17 = sshll.u32 %s7000_s29, 8  ;;  %s234_s7 = scalar_lea.sflag [#allocation5], %s7000_s29 }
  0x68   : > { %s7006_s6 = scalar_lea.vmem [#allocation4], %s4796_s17 }
  0x69   : > { %6760 = dma.done.wait (%p8328_p4), %s234_s7, 4096  }
  0x6a   : > { %6762 = vsyncadd (%p8328_p4), %s234_s7, 4294963200  ;;  %p8329_p5 = scmp.eq.s32.totalorder %s6849_s22, 0 }
  0x6c   : > { %6764 = dma.done.wait (%p8329_p5), [#allocation8], 18432   ;;  %p8330_p8 = pmov %p8329_p5 }
  0x6d   : > { %v6794_v0 = vmov 0.0   ;;  %v6451_v1 = vld [vmem:[#allocation7 + $0x100] sm:$0xff]   ;;  %v6455_v5 = vld [vmem:[#allocation7 + $0x108] sm:$0xff]   ;;  %v6459_v9 = vld [vmem:[#allocation7 + $0x110] sm:$0xff]   ;;  %s8171_s11 = scalar_lea.vmem [#allocation10], %s4796_s17  ;;  %s4952_s28 = sshll.u32 %s6849_s22, 12 }
  0x6e   : > { %6766 = vsyncadd (%p8330_p8), [#allocation8], 4294948864  ;;  %281 = vst [vmem:[#allocation2 + $0x18] sm:$0x1] %v6794_v0  ;;  %v6452_v2 = vld [vmem:[#allocation7 + $0xc0] sm:$0xff]   ;;  %4953 = vmatprep.subr.bf16.mxu0 %v6451_v1  ;;  %v6456_v6 = vld [vmem:[#allocation7 + $0xc8] sm:$0xff]   ;;  %s8263_s9 = scalar_lea.hbm %s8317_s5, %s4952_s28 }
  0x6f   : > { %273 = vst [vmem:[#allocation2] sm:$0xff] %v6794_v0  ;;  %274 = vst [vmem:[#allocation2 + $0x8] sm:$0xff] %v6794_v0  ;;  %v6453_v3 = vld [vmem:[#allocation7 + $0x40] sm:$0xff]   ;;  %4954 = vmatpush3.bf16.msra.mxu0 %v6452_v2  ;;  %v6457_v7 = vld [vmem:[#allocation7 + $0x48] sm:$0xff]   ;;  %s4695_s30 = sshll.u32 %s8171_s11, 4  ;;  %s4682_s22 = scalar_lea.sflag [#allocation6], %s7000_s29  ;;  %s8265_s30 = int_to_ptr.vmem [resolvable:$true] %s4695_s30 }
  0x70   : > { %275 = vst [vmem:[#allocation2 + $0x10] sm:$0xff] %v6794_v0  ;;  %277 = vst [vmem:[#allocation2 + $0x198] sm:$0xff] %v6794_v0  ;;  %v6454_v4 = vld [vmem:[#allocation7] sm:$0xff]   ;;  %5089 = vmatprep.subr.bf16.mxu1 %v6453_v3  ;;  %4955 = vmatprep.subr.bf16.mxu0 %v6455_v5  ;;  %v6458_v8 = vld [vmem:[#allocation7 + $0x8] sm:$0xff]   ;;  %s6715_s12 = scalar_lea.vmem %s8265_s30, 4096  ;;  %p8355_p0 = scmp.ne.s32.totalorder %s8326_s23, 0 }
  0x71   : > { %278 = vst [vmem:[#allocation2 + $0x1a0] sm:$0xff] %v6794_v0  ;;  %279 = vst [vmem:[#allocation2 + $0x1a8] sm:$0xff] %v6794_v0  ;;  %5090 = vmatpush3.bf16.msra.mxu1 %v6454_v4  ;;  %v6460_v10 = vld [vmem:[#allocation7 + $0xd0] sm:$0xff]   ;;  %v6463_v13 = vld [vmem:[#allocation7 + $0x118] sm:$0xff]   ;;  %p6716_p11 = scmp.ne.s32.totalorder %s8265_s30, %s6715_s12  ;;  %s6795_s13 = smov [#allocation10]  }
  0x72   : > { %282 = vst [vmem:[#allocation2 + $0x30] sm:$0x1] %v6794_v0  ;;  %283 = vst [vmem:[#allocation2 + $0x48] sm:$0x1] %v6794_v0  ;;  %5091 = vmatprep.subr.bf16.mxu1 %v6457_v7  ;;  %v6461_v11 = vld [vmem:[#allocation7 + $0x50] sm:$0xff]   ;;  %v6464_v14 = vld [vmem:[#allocation7 + $0xd8] sm:$0xff]  }
  0x73   : > { %284 = vst [vmem:[#allocation2 + $0x60] sm:$0x1] %v6794_v0  ;;  %285 = vst [vmem:[#allocation2 + $0x78] sm:$0x1] %v6794_v0  ;;  %4956 = vmatpush3.bf16.msra.mxu0 %v6456_v6  ;;  %v6462_v12 = vld [vmem:[#allocation7 + $0x10] sm:$0xff]   ;;  %v6465_v15 = vld [vmem:[#allocation7 + $0x58] sm:$0xff]   ;;  %p6717_p1 = pnand %p6716_p11, %p8355_p0 }
  0x74   : > { %286 = vst [vmem:[#allocation2 + $0x90] sm:$0x1] %v6794_v0  ;;  %287 = vst [vmem:[#allocation2 + $0xa8] sm:$0x1] %v6794_v0  ;;  %4957 = vmatprep.subr.bf16.mxu0 %v6459_v9  ;;  %v6466_v16 = vld [vmem:[#allocation7 + $0x18] sm:$0xff]   ;;  %v6467_v17 = vld [vmem:[#allocation7 + $0x120] sm:$0xff]  }
  0x75   : > { %288 = vst [vmem:[#allocation2 + $0xc0] sm:$0x1] %v6794_v0  ;;  %289 = vst [vmem:[#allocation2 + $0xd8] sm:$0x1] %v6794_v0  ;;  %5092 = vmatpush3.bf16.msra.mxu1 %v6458_v8  ;;  %v6468_v18 = vld [vmem:[#allocation7 + $0xe0] sm:$0xff]   ;;  %v6471_v21 = vld [vmem:[#allocation7 + $0x128] sm:$0xff]   ;;  %p6718_p3 = pneg %p6717_p1 }
  0x76   : > { %290 = vst [vmem:[#allocation2 + $0xf0] sm:$0x1] %v6794_v0  ;;  %291 = vst [vmem:[#allocation2 + $0x108] sm:$0x1] %v6794_v0  ;;  %5093 = vmatprep.subr.bf16.mxu1 %v6461_v11  ;;  %v6469_v19 = vld [vmem:[#allocation7 + $0x60] sm:$0xff]   ;;  %v6472_v22 = vld [vmem:[#allocation7 + $0xe8] sm:$0xff]  }
  0x77   : > { %292 = vst [vmem:[#allocation2 + $0x120] sm:$0x1] %v6794_v0  ;;  %293 = vst [vmem:[#allocation2 + $0x138] sm:$0x1] %v6794_v0  ;;  %4958 = vmatpush3.bf16.msra.mxu0 %v6460_v10  ;;  %v6470_v20 = vld [vmem:[#allocation7 + $0x20] sm:$0xff]   ;;  %v6473_v23 = vld [vmem:[#allocation7 + $0x68] sm:$0xff]  }
  0x78   : > { %294 = vst [vmem:[#allocation2 + $0x150] sm:$0x1] %v6794_v0  ;;  %295 = vst [vmem:[#allocation2 + $0x168] sm:$0x1] %v6794_v0  ;;  %4959 = vmatprep.subr.bf16.mxu0 %v6463_v13  ;;  %v6474_v24 = vld [vmem:[#allocation7 + $0x28] sm:$0xff]   ;;  %v6475_v25 = vld [vmem:[#allocation7 + $0x130] sm:$0xff]  }
  0x79   : > { %296 = vst [vmem:[#allocation2 + $0x180] sm:$0x1] %v6794_v0  ;;  %299 = vst [vmem:[#allocation2 + $0x29] sm:$0x1] %v6794_v0  ;;  %5094 = vmatpush3.bf16.msra.mxu1 %v6462_v12  ;;  %v6476_v26 = vld [vmem:[#allocation7 + $0xf0] sm:$0xff]   ;;  %v6479_v29 = vld [vmem:[#allocation7 + $0x138] sm:$0xff]  }
  0x7a   : > { %300 = vst [vmem:[#allocation2 + $0x41] sm:$0x1] %v6794_v0  ;;  %301 = vst [vmem:[#allocation2 + $0x59] sm:$0x1] %v6794_v0  ;;  %5095 = vmatprep.subr.bf16.mxu1 %v6465_v15  ;;  %v6477_v27 = vld [vmem:[#allocation7 + $0x70] sm:$0xff]   ;;  %v6480_v30 = vld [vmem:[#allocation7 + $0xf8] sm:$0xff]  }
  0x7b   : > { %302 = vst [vmem:[#allocation2 + $0x71] sm:$0x1] %v6794_v0  ;;  %303 = vst [vmem:[#allocation2 + $0x89] sm:$0x1] %v6794_v0  ;;  %4960 = vmatpush3.bf16.msra.mxu0 %v6464_v14  ;;  %v6478_v28 = vld [vmem:[#allocation7 + $0x30] sm:$0xff]   ;;  %v6481_v31 = vld [vmem:[#allocation7 + $0x78] sm:$0xff]  }
  0x7c   : > { %304 = vst [vmem:[#allocation2 + $0xa1] sm:$0x1] %v6794_v0  ;;  %305 = vst [vmem:[#allocation2 + $0xb9] sm:$0x1] %v6794_v0  ;;  %4961 = vmatprep.subr.bf16.mxu0 %v6467_v17  ;;  %v6482_v32 = vld [vmem:[#allocation7 + $0x38] sm:$0xff]   ;;  %v359_v33 = vld [vmem:[%s7006_s6] sm:$0xff] }
  0x7d   : > { %306 = vst [vmem:[#allocation2 + $0xd1] sm:$0x1] %v6794_v0  ;;  %307 = vst [vmem:[#allocation2 + $0xe9] sm:$0x1] %v6794_v0  ;;  %5096 = vmatpush3.bf16.msra.mxu1 %v6466_v16  ;;  %v360_v34 = vld [vmem:[%s7006_s6 + $0x8] sm:$0xff]  ;;  %v6483_v36 = vld [vmem:[#allocation7 + $0x140] sm:$0xff]  }
  0x7e   : > { %308 = vst [vmem:[#allocation2 + $0x101] sm:$0x1] %v6794_v0  ;;  %309 = vst [vmem:[#allocation2 + $0x119] sm:$0x1] %v6794_v0  ;;  %5097 = vmatprep.subr.bf16.mxu1 %v6469_v19  ;;  %v713_v35 = vpack.c.bf16 %v360_v34, %v359_v33  ;;  %v456_v37 = vld [vmem:[#allocation2 + $0x1] sm:$0xff]  ;;  %v457_v38 = vld [vmem:[#allocation2 + $0x9] sm:$0xff] }
  0x7f   : > { %310 = vst [vmem:[#allocation2 + $0x131] sm:$0x1] %v6794_v0  ;;  %311 = vst [vmem:[#allocation2 + $0x149] sm:$0x1] %v6794_v0  ;;  %4962 = vmatpush3.bf16.msra.mxu0 %v6468_v18  ;;  %v361_v40 = vld [vmem:[%s7006_s6 + $0x10] sm:$0xff]  ;;  %v521_v41 = vpack.c.bf16 %v457_v38, %v456_v37  ;;  %v362_v43 = vld [vmem:[%s7006_s6 + $0x18] sm:$0xff] }
  0x80   : > { %312 = vst [vmem:[#allocation2 + $0x161] sm:$0x1] %v6794_v0  ;;  %313 = vst [vmem:[#allocation2 + $0x179] sm:$0x1] %v6794_v0  ;;  %4963 = vmatprep.subr.bf16.mxu0 %v6471_v21  ;;  %985 = vmatprep.mubr.bf16.mxu0 %v713_v35  ;;  %v363_v44 = vld [vmem:[%s7006_s6 + $0x20] sm:$0xff]  ;;  %v364_v45 = vld [vmem:[%s7006_s6 + $0x28] sm:$0xff]  ;;  %v716_v55 = vpack.c.bf16 %v362_v43, %v361_v40 }
  0x81   : > { %314 = vst [vmem:[#allocation2 + $0x191] sm:$0x1] %v6794_v0  ;;  %316 = vst [vmem:[#allocation3] sm:$0xff] %v6794_v0  ;;  %5098 = vmatpush3.bf16.msra.mxu1 %v6470_v20  ;;  %1451 = vmatprep.mubr.bf16.mxu1 %v521_v41  ;;  %v7108_v46 = vld [vmem:[%s7006_s6 + $0x30] sm:$0xff]  ;;  %v7111_v47 = vld [vmem:[%s7006_s6 + $0x38] sm:$0xff]  ;;  %v719_v3 = vpack.c.bf16 %v364_v45, %v363_v44  ;;  %s6719_s17 = sshll.u32 %s6795_s13, 4  ;;  %s6720_s17 = int_to_ptr.vmem [resolvable:$false] %s6719_s17 }
  0x82   : > { %317 = vst [vmem:[#allocation3 + $0x8] sm:$0xff] %v6794_v0  ;;  %318 = vst [vmem:[#allocation3 + $0x10] sm:$0xff] %v6794_v0  ;;  %5099 = vmatprep.subr.bf16.mxu1 %v6473_v23  ;;  %v7114_v48 = vld [vmem:[%s7006_s6 + $0x40] sm:$0xff]  ;;  %v7119_v49 = vld [vmem:[%s7006_s6 + $0x48] sm:$0xff]  ;;  %v722_v19 = vpack.c.bf16 %v7111_v47, %v7108_v46  ;;  %s6721_s7 = scalar_lea.vmem %s6720_s17, 8192  ;;  %p6722_p7 = scmp.lt.s32.totalorder %s8265_s30, %s6720_s17 }
  0x83   : > { %320 = vst [vmem:[#allocation3 + $0x198] sm:$0xff] %v6794_v0  ;;  %321 = vst [vmem:[#allocation3 + $0x1a0] sm:$0xff] %v6794_v0  ;;  %4964 = vmatpush3.bf16.msra.mxu0 %v6472_v22  ;;  %v6484_v50 = vld [vmem:[#allocation7 + $0x148] sm:$0xff]   ;;  %v7124_v51 = vld [vmem:[%s7006_s6 + $0x50] sm:$0xff]  ;;  %p6723_p9 = scmp.lt.s32.totalorder %s6721_s7, %s6715_s12 }
  0x84   : > { %322 = vst [vmem:[#allocation3 + $0x1a8] sm:$0xff] %v6794_v0  ;;  %324 = vst [vmem:[#allocation3 + $0x18] sm:$0x1] %v6794_v0  ;;  %4965 = vmatprep.subr.bf16.mxu0 %v6475_v25  ;;  %v7127_v52 = vld [vmem:[%s7006_s6 + $0x58] sm:$0xff]  ;;  %v7132_v56 = vld [vmem:[%s7006_s6 + $0x60] sm:$0xff] }
  0x85   : > { %325 = vst [vmem:[#allocation3 + $0x30] sm:$0x1] %v6794_v0  ;;  %326 = vst [vmem:[#allocation3 + $0x48] sm:$0x1] %v6794_v0  ;;  %5100 = vmatpush3.bf16.msra.mxu1 %v6474_v24  ;;  %v7135_v58 = vld [vmem:[%s7006_s6 + $0x68] sm:$0xff]  ;;  %v7140_v59 = vld [vmem:[%s7006_s6 + $0x70] sm:$0xff]  ;;  %v728_v41 = vpack.c.bf16 %v7127_v52, %v7124_v51  ;;  %p6724_p12 = por %p6723_p9, %p6722_p7 }
  0x86   : > { %327 = vst [vmem:[#allocation3 + $0x60] sm:$0x1] %v6794_v0  ;;  %328 = vst [vmem:[#allocation3 + $0x78] sm:$0x1] %v6794_v0  ;;  %5101 = vmatprep.subr.bf16.mxu1 %v6477_v27  ;;  %v7144_v62 = vld [vmem:[%s7006_s6 + $0x78] sm:$0xff]  ;;  %v7147_v63 = vld [vmem:[%s7006_s6 + $0x80] sm:$0xff] }
  0x87   : > { %329 = vst [vmem:[#allocation3 + $0x90] sm:$0x1] %v6794_v0  ;;  %330 = vst [vmem:[#allocation3 + $0xa8] sm:$0x1] %v6794_v0  ;;  %4966 = vmatpush3.bf16.msra.mxu0 %v6476_v26  ;;  %v6485_v1 = vld [vmem:[#allocation7 + $0x150] sm:$0xff]   ;;  %v6486_v4 = vld [vmem:[#allocation7 + $0x158] sm:$0xff]   ;;  %p6725_p2 = pnand %p6724_p12, %p6718_p3 }
  0x88   : > { %331 = vst [vmem:[#allocation3 + $0xc0] sm:$0x1] %v6794_v0  ;;  %332 = vst [vmem:[#allocation3 + $0xd8] sm:$0x1] %v6794_v0  ;;  %4967 = vmatprep.subr.bf16.mxu0 %v6479_v29  ;;  %v6488_v5 = vld [vmem:[#allocation7 + $0x80] sm:$0xff]   ;;  %v7156_v6 = vld [vmem:[%s7006_s6 + $0x90] sm:$0xff] }
  0x89   : > { %333 = vst [vmem:[#allocation3 + $0xf0] sm:$0x1] %v6794_v0  ;;  %334 = vst [vmem:[#allocation3 + $0x108] sm:$0x1] %v6794_v0  ;;  %5102 = vmatpush3.bf16.msra.mxu1 %v6478_v28  ;;  %v7159_v7 = vld [vmem:[%s7006_s6 + $0x98] sm:$0xff]  ;;  %v7163_v8 = vld [vmem:[%s7006_s6 + $0xa0] sm:$0xff] }
  0x8a   : > { %335 = vst [vmem:[#allocation3 + $0x120] sm:$0x1] %v6794_v0  ;;  %336 = vst [vmem:[#allocation3 + $0x138] sm:$0x1] %v6794_v0  ;;  %5103 = vmatprep.subr.bf16.mxu1 %v6481_v31  ;;  %v7167_v9 = vld [vmem:[%s7006_s6 + $0xa8] sm:$0xff]  ;;  %v6487_v12 = vld [vmem:[#allocation7 + $0x160] sm:$0xff]   ;;  %v725_v31 = vpack.c.bf16 %v7119_v49, %v7114_v48 }
  0x8b   : > { %337 = vst [vmem:[#allocation3 + $0x150] sm:$0x1] %v6794_v0  ;;  %338 = vst [vmem:[#allocation3 + $0x168] sm:$0x1] %v6794_v0  ;;  %4968 = vmatpush3.bf16.msra.mxu0 %v6480_v30  ;;  %v6490_v13 = vld [vmem:[#allocation7 + $0x88] sm:$0xff]   ;;  %v7172_v14 = vld [vmem:[%s7006_s6 + $0xb0] sm:$0xff] }
  0x8c   : > { %339 = vst [vmem:[#allocation3 + $0x180] sm:$0x1] %v6794_v0  ;;  %342 = vst [vmem:[#allocation3 + $0x29] sm:$0x1] %v6794_v0  ;;  %5769 = vmatprep.subr.bf16.mxu0 %v6483_v36  ;;  %v7175_v15 = vld [vmem:[%s7006_s6 + $0xb8] sm:$0xff]  ;;  %v7180_v17 = vld [vmem:[%s7006_s6 + $0xc0] sm:$0xff] }
  0x8d   : > { %343 = vst [vmem:[#allocation3 + $0x41] sm:$0x1] %v6794_v0  ;;  %344 = vst [vmem:[#allocation3 + $0x59] sm:$0x1] %v6794_v0  ;;  %5104 = vmatpush3.bf16.msra.mxu1 %v6482_v32  ;;  %v7183_v18 = vld [vmem:[%s7006_s6 + $0xc8] sm:$0xff]  ;;  %v6492_v21 = vld [vmem:[#allocation7 + $0x90] sm:$0xff]  }
  0x8e   : > { %345 = vst [vmem:[#allocation3 + $0x71] sm:$0x1] %v6794_v0  ;;  %346 = vst [vmem:[#allocation3 + $0x89] sm:$0x1] %v6794_v0  ;;  %5817 = vmatprep.subr.bf16.mxu1 %v6488_v5  ;;  %v6489_v20 = vld [vmem:[#allocation7 + $0x168] sm:$0xff]   ;;  %v7190_v24 = vld [vmem:[%s7006_s6 + $0xd0] sm:$0xff] }
  0x8f   : > { %347 = vst [vmem:[#allocation3 + $0xa1] sm:$0x1] %v6794_v0  ;;  %348 = vst [vmem:[#allocation3 + $0xb9] sm:$0x1] %v6794_v0  ;;  %v6491_v25 = vld [vmem:[#allocation7 + $0x170] sm:$0xff]   ;;  %v7193_v26 = vld [vmem:[%s7006_s6 + $0xd8] sm:$0xff] }
  0x90   : > { %349 = vst [vmem:[#allocation3 + $0xd1] sm:$0x1] %v6794_v0  ;;  %350 = vst [vmem:[#allocation3 + $0xe9] sm:$0x1] %v6794_v0  ;;  %v6493_v27 = vld [vmem:[#allocation7 + $0x98] sm:$0xff]   ;;  %v7198_v28 = vld [vmem:[%s7006_s6 + $0xe0] sm:$0xff] }
  0x91   : > { %351 = vst [vmem:[#allocation3 + $0x101] sm:$0x1] %v6794_v0  ;;  %352 = vst [vmem:[#allocation3 + $0x119] sm:$0x1] %v6794_v0  ;;  %v7201_v29 = vld [vmem:[%s7006_s6 + $0xe8] sm:$0xff]  ;;  %v6495_v32 = vld [vmem:[#allocation7 + $0xa0] sm:$0xff]  }
  0x92   : > { %353 = vst [vmem:[#allocation3 + $0x131] sm:$0x1] %v6794_v0  ;;  %354 = vst [vmem:[#allocation3 + $0x149] sm:$0x1] %v6794_v0 }
  0x93   : > { %355 = vst [vmem:[#allocation3 + $0x161] sm:$0x1] %v6794_v0  ;;  %356 = vst [vmem:[#allocation3 + $0x179] sm:$0x1] %v6794_v0 }
  0x94   : > { %357 = vst [vmem:[#allocation3 + $0x191] sm:$0x1] %v6794_v0  ;;  %280 = vst [vmem:[#allocation2] sm:$0x1] %v6794_v0 }
  0x95   : > { %297 = vst [vmem:[#allocation2 + $0x198] sm:$0x1] %v6794_v0  ;;  %298 = vst [vmem:[#allocation2 + $0x11] sm:$0x1] %v6794_v0 }
  0x96   : > { %315 = vst [vmem:[#allocation2 + $0x1a9] sm:$0x1] %v6794_v0  ;;  %323 = vst [vmem:[#allocation3] sm:$0x1] %v6794_v0 }
  0x97   : > { %340 = vst [vmem:[#allocation3 + $0x198] sm:$0x1] %v6794_v0  ;;  %341 = vst [vmem:[#allocation3 + $0x11] sm:$0x1] %v6794_v0 }
  0x98   : > { %358 = vst [vmem:[#allocation3 + $0x1a9] sm:$0x1] %v6794_v0  ;;  %392 = vst [vmem:[#allocation2 + $0x19] sm:$0xff] %v359_v33  ;;  %v6494_v33 = vld [vmem:[#allocation7 + $0x178] sm:$0xff]  }
  0x99   : > { %393 = vst [vmem:[#allocation2 + $0x21] sm:$0xff] %v360_v34  ;;  %394 = vst [vmem:[#allocation2 + $0x31] sm:$0xff] %v361_v40  ;;  %v7208_v34 = vld [vmem:[%s7006_s6 + $0xf0] sm:$0xff] }
  0x9a   : > { %395 = vst [vmem:[#allocation2 + $0x39] sm:$0xff] %v362_v43  ;;  %396 = vst [vmem:[#allocation2 + $0x49] sm:$0xff] %v363_v44  ;;  %v6498_v43 = vld [vmem:[#allocation7 + $0xb8] sm:$0xff]  }
  0x9b   : > { %v424_v39 = vld [vmem:[#allocation2] sm:$0xff]  ;;  %397 = vst [vmem:[#allocation2 + $0x51] sm:$0xff] %v364_v45  ;;  %398 = vst [vmem:[#allocation2 + $0x61] sm:$0xff] %v7108_v46 }
  0x9c   : > { %v520_v42 = vpack.c.bf16 %v6794_v0, %v424_v39  ;;  %399 = vst [vmem:[#allocation2 + $0x69] sm:$0xff] %v7111_v47  ;;  %400 = vst [vmem:[#allocation2 + $0x79] sm:$0xff] %v7114_v48  ;;  %v7150_v0 = vld [vmem:[%s7006_s6 + $0x88] sm:$0xff]  ;;  %v6497_v39 = vld [vmem:[#allocation7 + $0xb0] sm:$0xff]   ;;  %v731_v47 = vpack.c.bf16 %v7135_v58, %v7132_v56 }
  0x9d   : > { %401 = vst [vmem:[#allocation2 + $0x81] sm:$0xff] %v7119_v49  ;;  %402 = vst [vmem:[#allocation2 + $0x91] sm:$0xff] %v7124_v51  ;;  %v734_v51 = vpack.c.bf16 %v7144_v62, %v7140_v59 }
  0x9e   : > { %1452 = vmatmul.mubr.bf16.vlgmr.msra.gmra.mrb[0].mxu1 %v520_v42  ;;  %403 = vst [vmem:[#allocation2 + $0x99] sm:$0xff] %v7127_v52  ;;  %404 = vst [vmem:[#allocation2 + $0xa9] sm:$0xff] %v7132_v56  ;;  %v6499_v42 = vld [vmem:[#allocation7 + $0x1c0] sm:$0xff]   ;;  %v737_v56 = vpack.c.bf16 %v7150_v0, %v7147_v63 }
  0x9f   : > { %1459 = vmatprep.mubr.bf16.mxu1 %v713_v35  ;;  %v616_v53 = vld [vmem:[#allocation2 + $0x18] sm:$0xff]  ;;  %405 = vst [vmem:[#allocation2 + $0xb1] sm:$0xff] %v7135_v58  ;;  %406 = vst [vmem:[#allocation2 + $0xc1] sm:$0xff] %v7140_v59  ;;  %5818 = vmatpush3.bf16.msra.mxu1 %v6488_v5  ;;  %v6496_v35 = vld [vmem:[#allocation7 + $0xa8] sm:$0xff]  }
  0xa0   : > { %v617_v54 = vld [vmem:[#allocation2 + $0x20] sm:$0xff]  ;;  %v618_v60 = vld [vmem:[#allocation2 + $0x30] sm:$0xff]  ;;  %407 = vst [vmem:[#allocation2 + $0xc9] sm:$0xff] %v7144_v62  ;;  %408 = vst [vmem:[#allocation2 + $0xd9] sm:$0xff] %v7147_v63  ;;  %5819 = vmatprep.subr.bf16.mxu1 %v6490_v13  ;;  %v743_v63 = vpack.c.bf16 %v7167_v9, %v7163_v8 }
  0xa1   : > { %v712_v57 = vpack.c.bf16 %v617_v54, %v616_v53  ;;  %v619_v61 = vld [vmem:[#allocation2 + $0x38] sm:$0xff]  ;;  %409 = vst [vmem:[#allocation2 + $0xe1] sm:$0xff] %v7150_v0  ;;  %410 = vst [vmem:[#allocation2 + $0xf1] sm:$0xff] %v7156_v6  ;;  %v620_v10 = vld [vmem:[#allocation2 + $0x48] sm:$0xff] }
  0xa2   : > { %v715_v2 = vpack.c.bf16 %v619_v61, %v618_v60  ;;  %411 = vst [vmem:[#allocation2 + $0xf9] sm:$0xff] %v7159_v7  ;;  %412 = vst [vmem:[#allocation2 + $0x109] sm:$0xff] %v7163_v8  ;;  %v621_v11 = vld [vmem:[#allocation2 + $0x50] sm:$0xff]  ;;  %v622_v22 = vld [vmem:[#allocation2 + $0x60] sm:$0xff]  ;;  %v740_v60 = vpack.c.bf16 %v7159_v7, %v7156_v6  ;;  %v749_v8 = vpack.c.bf16 %v7183_v18, %v7180_v17 }
  0xa3   : > { %986 = vmatmul.mubr.bf16.vlgmr.msra.gmra.mrb[0].mxu0 %v712_v57  ;;  %413 = vst [vmem:[#allocation2 + $0x111] sm:$0xff] %v7167_v9  ;;  %v718_v16 = vpack.c.bf16 %v621_v11, %v620_v10  ;;  %414 = vst [vmem:[#allocation2 + $0x121] sm:$0xff] %v7172_v14  ;;  %5820 = vmatpush3.bf16.msra.mxu1 %v6490_v13  ;;  %v623_v23 = vld [vmem:[#allocation2 + $0x68] sm:$0xff]  ;;  %v624_v37 = vld [vmem:[#allocation2 + $0x78] sm:$0xff] }
  0xa4   : > { %5770 = vmatpush3.bf16.msra.mxu0 %v6483_v36  ;;  %993 = vmatprep.mubr.bf16.mxu0 %v716_v55  ;;  %415 = vst [vmem:[#allocation2 + $0x129] sm:$0xff] %v7175_v15  ;;  %416 = vst [vmem:[#allocation2 + $0x139] sm:$0xff] %v7180_v17  ;;  %v721_v30 = vpack.c.bf16 %v623_v23, %v622_v22  ;;  %v7211_v36 = vld [vmem:[%s7006_s6 + $0xf8] sm:$0xff]  ;;  %v625_v38 = vld [vmem:[#allocation2 + $0x80] sm:$0xff] }
  0xa5   : > { %5771 = vmatprep.subr.bf16.mxu0 %v6484_v50  ;;  %417 = vst [vmem:[#allocation2 + $0x141] sm:$0xff] %v7183_v18  ;;  %5821 = vmatprep.subr.bf16.mxu1 %v6492_v21  ;;  %418 = vst [vmem:[#allocation2 + $0x151] sm:$0xff] %v7190_v24  ;;  %v724_v40 = vpack.c.bf16 %v625_v38, %v624_v37  ;;  %v626_v44 = vld [vmem:[#allocation2 + $0x90] sm:$0xff]  ;;  %v627_v45 = vld [vmem:[#allocation2 + $0x98] sm:$0xff] }
  0xa6   : > { %1460 = vmatmul.mubr.bf16.gmra.mrb[4].mxu1 %v712_v57  ;;  %419 = vst [vmem:[#allocation2 + $0x159] sm:$0xff] %v7193_v26  ;;  %420 = vst [vmem:[#allocation2 + $0x169] sm:$0xff] %v7198_v28  ;;  %v727_v46 = vpack.c.bf16 %v627_v45, %v626_v44  ;;  %v628_v48 = vld [vmem:[#allocation2 + $0xa8] sm:$0xff]  ;;  %v629_v49 = vld [vmem:[#allocation2 + $0xb0] sm:$0xff] }
  0xa7   : > { %1467 = vmatprep.mubr.bf16.mxu1 %v716_v55  ;;  %5822 = vmatpush3.bf16.msra.mxu1 %v6492_v21  ;;  %421 = vst [vmem:[#allocation2 + $0x171] sm:$0xff] %v7201_v29  ;;  %422 = vst [vmem:[#allocation2 + $0x181] sm:$0xff] %v7208_v34  ;;  %v7221_v52 = vld [vmem:[#allocation7 + $0x200] sm:$0xff]   ;;  %v631_v54 = vld [vmem:[#allocation2 + $0xc8] sm:$0xff] }
  0xa8   : > { %5772 = vmatpush3.bf16.msra.mxu0 %v6484_v50  ;;  %5823 = vmatprep.subr.bf16.mxu1 %v6493_v27  ;;  %423 = vst [vmem:[#allocation2 + $0x189] sm:$0xff] %v7211_v36  ;;  %v730_v50 = vpack.c.bf16 %v629_v49, %v628_v48  ;;  %v630_v53 = vld [vmem:[#allocation2 + $0xc0] sm:$0xff]  ;;  %v632_v57 = vld [vmem:[#allocation2 + $0xd8] sm:$0xff]  ;;  %v634_v61 = vld [vmem:[#allocation2 + $0xf0] sm:$0xff] }
  0xa9   : > { %5773 = vmatprep.subr.bf16.mxu0 %v6485_v1  ;;  %v733_v55 = vpack.c.bf16 %v631_v54, %v630_v53  ;;  %v633_v58 = vld [vmem:[#allocation2 + $0xe0] sm:$0xff]  ;;  %v635_v62 = vld [vmem:[#allocation2 + $0xf8] sm:$0xff]  ;;  %v636_v0 = vld [vmem:[#allocation2 + $0x108] sm:$0xff] }
  0xaa   : > { %v736_v59 = vpack.c.bf16 %v633_v58, %v632_v57  ;;  %v638_v5 = vld [vmem:[#allocation2 + $0x120] sm:$0xff]  ;;  %v489_v22 = vld [vmem:[#allocation2 + $0xa] sm:$0xff]  ;;  %v6506_v54 = vld [vmem:[#allocation7 + $0x198] sm:$0xff]  }
  0xab   : > { %994 = vmatmul.mubr.bf16.gmra.mrb[4].mxu0 %v715_v2  ;;  %5824 = vmatpush3.bf16.msra.mxu1 %v6493_v27  ;;  %v639_v6 = vld [vmem:[#allocation2 + $0x128] sm:$0xff]  ;;  %v640_v9 = vld [vmem:[#allocation2 + $0x138] sm:$0xff]  ;;  %v6504_v49 = vld [vmem:[#allocation7 + $0x190] sm:$0xff]  }
  0xac   : > { %1001 = vmatprep.mubr.bf16.mxu0 %v719_v3  ;;  %5774 = vmatpush3.bf16.msra.mxu0 %v6485_v1  ;;  %v739_v1 = vpack.c.bf16 %v635_v62, %v634_v61  ;;  %v745_v7 = vpack.c.bf16 %v639_v6, %v638_v5  ;;  %v641_v10 = vld [vmem:[#allocation2 + $0x140] sm:$0xff]  ;;  %v642_v13 = vld [vmem:[#allocation2 + $0x150] sm:$0xff]  ;;  %v6501_v38 = vld [vmem:[#allocation7 + $0x1c8] sm:$0xff]  }
  0xad   : > { %5775 = vmatprep.subr.bf16.mxu0 %v6486_v4  ;;  %5825 = vmatprep.subr.bf16.mxu1 %v6495_v32  ;;  %v748_v11 = vpack.c.bf16 %v641_v10, %v640_v9  ;;  %v644_v17 = vld [vmem:[#allocation2 + $0x168] sm:$0xff]  ;;  %v688_v45 = vld [vmem:[#allocation2 + $0x7a] sm:$0xff]  ;;  %v693_v58 = vld [vmem:[#allocation2 + $0xb2] sm:$0xff] }
  0xae   : > { %1468 = vmatmul.mubr.bf16.gmra.mrb[8].mxu1 %v715_v2  ;;  %v637_v2 = vld [vmem:[#allocation2 + $0x110] sm:$0xff]  ;;  %v488_v21 = vld [vmem:[#allocation2 + $0x2] sm:$0xff]  ;;  %v691_v53 = vld [vmem:[#allocation2 + $0x9a] sm:$0xff] }
  0xaf   : > { %1475 = vmatprep.mubr.bf16.mxu1 %v719_v3  ;;  %5826 = vmatpush3.bf16.msra.mxu1 %v6495_v32  ;;  %v742_v3 = vpack.c.bf16 %v637_v2, %v636_v0  ;;  %v645_v18 = vld [vmem:[#allocation2 + $0x170] sm:$0xff]  ;;  %v646_v23 = vld [vmem:[#allocation2 + $0x180] sm:$0xff]  ;;  %v522_v27 = vpack.c.bf16 %v489_v22, %v488_v21  ;;  %v6510_v32 = vld [vmem:[#allocation7 + $0x208] sm:$0xff]  }
  0xb0   : > { %5776 = vmatpush3.bf16.msra.mxu0 %v6486_v4  ;;  %5827 = vmatprep.subr.bf16.mxu1 %v6496_v35  ;;  %v746_v4 = vpack.c.bf16 %v7175_v15, %v7172_v14  ;;  %v643_v14 = vld [vmem:[#allocation2 + $0x158] sm:$0xff]  ;;  %v692_v57 = vld [vmem:[#allocation2 + $0xaa] sm:$0xff]  ;;  %v6508_v61 = vld [vmem:[#allocation7 + $0x1a0] sm:$0xff]  }
  0xb1   : > { %5777 = vmatprep.subr.bf16.mxu0 %v6487_v12  ;;  %v751_v15 = vpack.c.bf16 %v643_v14, %v642_v13  ;;  %v6511_v62 = vld [vmem:[#allocation7 + $0x1e8] sm:$0xff]   ;;  %v696_v5 = vld [vmem:[#allocation2 + $0xda] sm:$0xff]  ;;  %v6516_v9 = vld [vmem:[#allocation7 + $0x1b0] sm:$0xff]  }
  0xb2   : > { %v695_v0 = vld [vmem:[#allocation2 + $0xca] sm:$0xff]  ;;  %v697_v6 = vld [vmem:[#allocation2 + $0xe2] sm:$0xff]  ;;  %v6519_v10 = vld [vmem:[#allocation7 + $0x1f8] sm:$0xff]  }
  0xb3   : > { %1002 = vmatmul.mubr.bf16.gmra.mrb[8].mxu0 %v718_v16  ;;  %5828 = vmatpush3.bf16.msra.mxu1 %v6496_v35  ;;  %v685_v35 = vld [vmem:[#allocation2 + $0x52] sm:$0xff]  ;;  %v6512_v2 = vld [vmem:[#allocation7 + $0x1a8] sm:$0xff]   ;;  %v704_v21 = vld [vmem:[#allocation2 + $0x13a] sm:$0xff] }
  0xb4   : > { %1009 = vmatprep.mubr.bf16.mxu0 %v722_v19  ;;  %5778 = vmatpush3.bf16.msra.mxu0 %v6487_v12  ;;  %v752_v12 = vpack.c.bf16 %v7193_v26, %v7190_v24  ;;  %v647_v24 = vld [vmem:[#allocation2 + $0x188] sm:$0xff]  ;;  %v6520_v13 = vld [vmem:[#allocation7 + $0x1b8] sm:$0xff]  }
  0xb5   : > { %5779 = vmatprep.subr.bf16.mxu0 %v6489_v20  ;;  %5829 = vmatprep.subr.bf16.mxu1 %v6497_v39  ;;  %v681_v26 = vld [vmem:[#allocation2 + $0x22] sm:$0xff] }
  0xb6   : > { %1476 = vmatmul.mubr.bf16.gmra.mrb[12].mxu1 %v718_v16  ;;  %v755_v16 = vpack.c.bf16 %v7201_v29, %v7198_v28  ;;  %v757_v28 = vpack.c.bf16 %v647_v24, %v646_v23  ;;  %v705_v22 = vld [vmem:[#allocation2 + $0x142] sm:$0xff]  ;;  %v706_v24 = vld [vmem:[#allocation2 + $0x152] sm:$0xff] }
  0xb7   : > { %1483 = vmatprep.mubr.bf16.mxu1 %v722_v19  ;;  %5830 = vmatpush3.bf16.msra.mxu1 %v6497_v39  ;;  %v754_v19 = vpack.c.bf16 %v645_v18, %v644_v17  ;;  %v6513_v39 = vld [vmem:[#allocation7 + $0x210] sm:$0xff]   ;;  %v702_v18 = vld [vmem:[#allocation2 + $0x122] sm:$0xff]  ;;  %v7284_v23 = vpack.c.bf16 %v705_v22, %v704_v21 }
  0xb8   : > { %5780 = vmatpush3.bf16.msra.mxu0 %v6489_v20  ;;  %5831 = vmatprep.subr.bf16.mxu1 %v6498_v43  ;;  %v758_v20 = vpack.c.bf16 %v7211_v36, %v7208_v34  ;;  %v684_v34 = vld [vmem:[#allocation2 + $0x4a] sm:$0xff]  ;;  %v6500_v36 = vld [vmem:[#allocation7 + $0x180] sm:$0xff]  }
  0xb9   : > { %5781 = vmatprep.subr.bf16.mxu0 %v6491_v25  ;;  %v7244_v37 = vpack.c.bf16 %v685_v35, %v684_v34  ;;  %v1775_v34 = vld [vmem:[#allocation2 + $0x39] sm:$0xff] }
  0xbb   : > { %1010 = vmatmul.mubr.bf16.gmra.mrb[12].mxu0 %v721_v30  ;;  %5832 = vmatpush3.bf16.msra.mxu1 %v6498_v43  ;;  %v6514_v43 = vld [vmem:[#allocation7 + $0x218] sm:$0xff]  }
  0xbc   : > { %1017 = vmatprep.mubr.bf16.mxu0 %v725_v31  ;;  %5782 = vmatpush3.bf16.msra.mxu0 %v6491_v25  ;;  %v680_v25 = vld [vmem:[#allocation2 + $0x1a] sm:$0xff] }
  0xbd   : > { %5783 = vmatprep.subr.bf16.mxu0 %v6494_v33  ;;  %5865 = vmatprep.subr.bf16.mxu1 %v7221_v52  ;;  %v714_v29 = vpack.c.bf16 %v681_v26, %v680_v25  ;;  %v707_v25 = vld [vmem:[#allocation2 + $0x15a] sm:$0xff] }
  0xbe   : > { %1484 = vmatmul.mubr.bf16.gmra.mrb[16].mxu1 %v721_v30  ;;  %v682_v30 = vld [vmem:[#allocation2 + $0x32] sm:$0xff]  ;;  %v7288_v26 = vpack.c.bf16 %v707_v25, %v706_v24 }
  0xbf   : > { %1491 = vmatprep.mubr.bf16.mxu1 %v725_v31  ;;  %v683_v31 = vld [vmem:[#allocation2 + $0x3a] sm:$0xff] }
  0xc0   : > { %5784 = vmatpush3.bf16.msra.mxu0 %v6494_v33  ;;  %v7240_v33 = vpack.c.bf16 %v683_v31, %v682_v30  ;;  %v710_v30 = vld [vmem:[#allocation2 + $0x182] sm:$0xff]  ;;  %v711_v31 = vld [vmem:[#allocation2 + $0x18a] sm:$0xff] }
  0xc1   : > { %5225 = vmatprep.subr.bf16.mxu0 %v6499_v42  ;;  %v6502_v42 = vld [vmem:[#allocation7 + $0x188] sm:$0xff]   ;;  %v7297_v35 = vpack.c.bf16 %v711_v31, %v710_v30 }
  0xc3   : > { %1018 = vmatmul.mubr.bf16.gmra.mrb[16].mxu0 %v724_v40 }
  0xc4   : > { %1025 = vmatprep.mubr.bf16.mxu0 %v728_v41 }
  0xc6   : > { %1492 = vmatmul.mubr.bf16.gmra.mrb[20].mxu1 %v724_v40  ;;  %v686_v40 = vld [vmem:[#allocation2 + $0x62] sm:$0xff] }
  0xc7   : > { %1499 = vmatprep.mubr.bf16.mxu1 %v728_v41  ;;  %v687_v41 = vld [vmem:[#allocation2 + $0x6a] sm:$0xff] }
  0xc8   : > { %v7248_v44 = vpack.c.bf16 %v687_v41, %v686_v40  ;;  %v1776_v40 = vld [vmem:[#allocation2 + $0x49] sm:$0xff]  ;;  %v1777_v41 = vld [vmem:[#allocation2 + $0x51] sm:$0xff] }
  0xcb   : > { %1026 = vmatmul.mubr.bf16.gmra.mrb[20].mxu0 %v727_v46 }
  0xcc   : > { %1033 = vmatprep.mubr.bf16.mxu0 %v731_v47 }
  0xce   : > { %1500 = vmatmul.mubr.bf16.gmra.mrb[24].mxu1 %v727_v46  ;;  %v689_v46 = vld [vmem:[#allocation2 + $0x82] sm:$0xff] }
  0xcf   : > { %1507 = vmatprep.mubr.bf16.mxu1 %v731_v47  ;;  %v6503_v47 = vld [vmem:[#allocation7 + $0x1d0] sm:$0xff]   ;;  %v7252_v48 = vpack.c.bf16 %v689_v46, %v688_v45  ;;  %v1744_v45 = vld [vmem:[#allocation2 + $0x48] sm:$0xff] }
  0xd0   : > { %v1745_v46 = vld [vmem:[#allocation2 + $0x50] sm:$0xff] }
  0xd3   : > { %1034 = vmatmul.mubr.bf16.gmra.mrb[24].mxu0 %v730_v50 }
  0xd4   : > { %1041 = vmatprep.mubr.bf16.mxu0 %v734_v51 }
  0xd6   : > { %1508 = vmatmul.mubr.bf16.gmra.mrb[28].mxu1 %v730_v50  ;;  %v6505_v50 = vld [vmem:[#allocation7 + $0x1d8] sm:$0xff]  }
  0xd7   : > { %1515 = vmatprep.mubr.bf16.mxu1 %v734_v51  ;;  %v6517_v51 = vld [vmem:[#allocation7 + $0x220] sm:$0xff]  }
  0xdb   : > { %1042 = vmatmul.mubr.bf16.gmra.mrb[28].mxu0 %v733_v55 }
  0xdc   : > { %1049 = vmatprep.mubr.bf16.mxu0 %v737_v56 }
  0xde   : > { %1516 = vmatmul.mubr.bf16.gmra.mrb[32].mxu1 %v733_v55  ;;  %v6518_v55 = vld [vmem:[#allocation7 + $0x228] sm:$0xff]  }
  0xdf   : > { %1523 = vmatprep.mubr.bf16.mxu1 %v737_v56 }
  0xe3   : > { %1050 = vmatmul.mubr.bf16.gmra.mrb[32].mxu0 %v736_v59 }
  0xe4   : > { %1057 = vmatprep.mubr.bf16.mxu0 %v740_v60 }
  0xe6   : > { %1524 = vmatmul.mubr.bf16.gmra.mrb[36].mxu1 %v736_v59  ;;  %v6507_v59 = vld [vmem:[#allocation7 + $0x1e0] sm:$0xff]  }
  0xe7   : > { %1531 = vmatprep.mubr.bf16.mxu1 %v740_v60  ;;  %v7260_v60 = vpack.c.bf16 %v693_v58, %v692_v57 }
  0xeb   : > { %1058 = vmatmul.mubr.bf16.gmra.mrb[36].mxu0 %v739_v1 }
  0xec   : > { %1065 = vmatprep.mubr.bf16.mxu0 %v743_v63 }
  0xee   : > { %1532 = vmatmul.mubr.bf16.gmra.mrb[40].mxu1 %v739_v1  ;;  %v6521_v1 = vld [vmem:[#allocation7 + $0x230] sm:$0xff]  }
  0xef   : > { %1539 = vmatprep.mubr.bf16.mxu1 %v743_v63  ;;  %v694_v63 = vld [vmem:[#allocation2 + $0xc2] sm:$0xff] }
  0xf3   : > { %1066 = vmatmul.mubr.bf16.gmra.mrb[40].mxu0 %v742_v3 }
  0xf4   : > { %1073 = vmatprep.mubr.bf16.mxu0 %v746_v4 }
  0xf6   : > { %1540 = vmatmul.mubr.bf16.gmra.mrb[44].mxu1 %v742_v3  ;;  %v6522_v3 = vld [vmem:[#allocation7 + $0x238] sm:$0xff]  }
  0xf7   : > { %1547 = vmatprep.mubr.bf16.mxu1 %v746_v4  ;;  %v7264_v4 = vpack.c.bf16 %v695_v0, %v694_v63 }
  0xfb   : > { %1074 = vmatmul.mubr.bf16.gmra.mrb[44].mxu0 %v745_v7 }
  0xfc   : > { %1081 = vmatprep.mubr.bf16.mxu0 %v749_v8 }
  0xfe   : > { %1548 = vmatmul.mubr.bf16.gmra.mrb[48].mxu1 %v745_v7  ;;  %v6515_v7 = vld [vmem:[#allocation7 + $0x1f0] sm:$0xff]  }
  0xff   : > { %1555 = vmatprep.mubr.bf16.mxu1 %v749_v8  ;;  %v7268_v8 = vpack.c.bf16 %v697_v6, %v696_v5 }
 0x103   : > { %1082 = vmatmul.mubr.bf16.gmra.mrb[48].mxu0 %v748_v11 }
 0x104   : > { %1089 = vmatprep.mubr.bf16.mxu0 %v752_v12 }
 0x106   : > { %1556 = vmatmul.mubr.bf16.gmra.mrb[52].mxu1 %v748_v11  ;;  %v698_v11 = vld [vmem:[#allocation2 + $0xf2] sm:$0xff] }
 0x107   : > { %1563 = vmatprep.mubr.bf16.mxu1 %v752_v12  ;;  %v699_v12 = vld [vmem:[#allocation2 + $0xfa] sm:$0xff] }
 0x108   : > { %v7272_v14 = vpack.c.bf16 %v699_v12, %v698_v11 }
 0x10b   : > { %1090 = vmatmul.mubr.bf16.gmra.mrb[52].mxu0 %v751_v15 }
 0x10c   : > { %1097 = vmatprep.mubr.bf16.mxu0 %v755_v16 }
 0x10e   : > { %1564 = vmatmul.mubr.bf16.gmra.mrb[56].mxu1 %v751_v15  ;;  %v700_v15 = vld [vmem:[#allocation2 + $0x10a] sm:$0xff] }
 0x10f   : > { %1571 = vmatprep.mubr.bf16.mxu1 %v755_v16  ;;  %v701_v16 = vld [vmem:[#allocation2 + $0x112] sm:$0xff] }
 0x110   : > { %v7276_v17 = vpack.c.bf16 %v701_v16, %v700_v15  ;;  %v1784_v16 = vld [vmem:[#allocation2 + $0xa9] sm:$0xff] }
 0x113   : > { %1098 = vmatmul.mubr.bf16.gmra.mrb[56].mxu0 %v754_v19 }
 0x114   : > { %1105 = vmatprep.mubr.bf16.mxu0 %v758_v20 }
 0x116   : > { %1572 = vmatmul.mubr.bf16.gmra.mrb[60].mxu1 %v754_v19  ;;  %v703_v19 = vld [vmem:[#allocation2 + $0x12a] sm:$0xff] }
 0x117   : > { %5833 = vmatprep.mubr.bf16.mxu1 %v522_v27  ;;  %v7280_v20 = vpack.c.bf16 %v703_v19, %v702_v18  ;;  %v708_v27 = vld [vmem:[#allocation2 + $0x16a] sm:$0xff] }
 0x118   : > { %v1785_v18 = vld [vmem:[#allocation2 + $0xb1] sm:$0xff] }
 0x119   : > { %v1854_v25 = vpack.c.bf16 %v1785_v18, %v1784_v16 }
 0x11b   : > { %1106 = vmatmul.mubr.bf16.gmra.mrb[60].mxu0 %v757_v28  ;;  %v709_v28 = vld [vmem:[#allocation2 + $0x172] sm:$0xff] }
 0x11c   : > { %5785 = vmatprep.mubr.bf16.mxu0 %v714_v29 }
 0x11e   : > { %5834 = vmatmul.mubr.bf16.vlgmr.msra.gmra.mrb[64].mxu1 %v714_v29  ;;  %v7292_v29 = vpack.c.bf16 %v709_v28, %v708_v27 }
 0x11f   : > { %5837 = vmatprep.mubr.bf16.mxu1 %v7240_v33  ;;  %5866 = vmatpush3.bf16.msra.mxu1 %v7221_v52  ;;  %v690_v52 = vld [vmem:[#allocation2 + $0x92] sm:$0xff] }
 0x120   : > { %5867 = vmatprep.subr.bf16.mxu1 %v6510_v32  ;;  %v7256_v56 = vpack.c.bf16 %v691_v53, %v690_v52  ;;  %v1780_v52 = vld [vmem:[#allocation2 + $0x79] sm:$0xff]  ;;  %v1781_v53 = vld [vmem:[#allocation2 + $0x81] sm:$0xff] }
 0x123   : > { %5786 = vmatmul.mubr.bf16.vlgmr.msra.gmra.mrb[64].mxu0 %v7240_v33  ;;  %5868 = vmatpush3.bf16.msra.mxu1 %v6510_v32  ;;  %v1774_v32 = vld [vmem:[#allocation2 + $0x31] sm:$0xff] }
 0x124   : > { %5226 = vmatpush3.bf16.msra.mxu0 %v6500_v36  ;;  %5789 = vmatprep.mubr.bf16.mxu0 %v7244_v37  ;;  %v1839_v36 = vpack.c.bf16 %v1775_v34, %v1774_v32 }
 0x125   : > { %5227 = vmatprep.subr.bf16.mxu0 %v6501_v38  ;;  %5869 = vmatprep.subr.bf16.mxu1 %v6513_v39  ;;  %v1742_v38 = vld [vmem:[#allocation2 + $0x30] sm:$0xff] }
 0x126   : > { %5838 = vmatmul.mubr.bf16.gmra.mrb[68].mxu1 %v7244_v37 }
 0x127   : > { %5841 = vmatprep.mubr.bf16.mxu1 %v7248_v44  ;;  %5870 = vmatpush3.bf16.msra.mxu1 %v6513_v39  ;;  %v1743_v39 = vld [vmem:[#allocation2 + $0x38] sm:$0xff] }
 0x128   : > { %5228 = vmatpush3.bf16.msra.mxu0 %v6502_v42  ;;  %5871 = vmatprep.subr.bf16.mxu1 %v6514_v43  ;;  %v1838_v42 = vpack.c.bf16 %v1743_v39, %v1742_v38  ;;  %v1752_v38 = vld [vmem:[#allocation2 + $0xa8] sm:$0xff] }
 0x129   : > { %5229 = vmatprep.subr.bf16.mxu0 %v6503_v47  ;;  %v1778_v47 = vld [vmem:[#allocation2 + $0x61] sm:$0xff] }
 0x12b   : > { %5790 = vmatmul.mubr.bf16.gmra.mrb[68].mxu0 %v7248_v44  ;;  %5872 = vmatpush3.bf16.msra.mxu1 %v6514_v43  ;;  %v1842_v43 = vpack.c.bf16 %v1777_v41, %v1776_v40  ;;  %v1786_v40 = vld [vmem:[#allocation2 + $0xc1] sm:$0xff]  ;;  %v1787_v41 = vld [vmem:[#allocation2 + $0xc9] sm:$0xff] }
 0x12c   : > { %5793 = vmatprep.mubr.bf16.mxu0 %v7252_v48  ;;  %5230 = vmatpush3.bf16.msra.mxu0 %v6504_v49  ;;  %v1841_v49 = vpack.c.bf16 %v1745_v46, %v1744_v45 }
 0x12d   : > { %5231 = vmatprep.subr.bf16.mxu0 %v6505_v50  ;;  %5873 = vmatprep.subr.bf16.mxu1 %v6517_v51 }
 0x12e   : > { %5842 = vmatmul.mubr.bf16.gmra.mrb[72].mxu1 %v7252_v48 }
 0x12f   : > { %5845 = vmatprep.mubr.bf16.mxu1 %v7256_v56  ;;  %5874 = vmatpush3.bf16.msra.mxu1 %v6517_v51  ;;  %v1746_v51 = vld [vmem:[#allocation2 + $0x60] sm:$0xff] }
 0x130   : > { %5232 = vmatpush3.bf16.msra.mxu0 %v6506_v54  ;;  %5875 = vmatprep.subr.bf16.mxu1 %v6518_v55  ;;  %v1848_v54 = vpack.c.bf16 %v1781_v53, %v1780_v52 }
 0x131   : > { %5233 = vmatprep.subr.bf16.mxu0 %v6507_v59  ;;  %v1749_v59 = vld [vmem:[#allocation2 + $0x80] sm:$0xff] }
 0x133   : > { %5794 = vmatmul.mubr.bf16.gmra.mrb[72].mxu0 %v7256_v56  ;;  %5876 = vmatpush3.bf16.msra.mxu1 %v6518_v55 }
 0x134   : > { %5797 = vmatprep.mubr.bf16.mxu0 %v7260_v60  ;;  %5234 = vmatpush3.bf16.msra.mxu0 %v6508_v61 }
 0x135   : > { %5235 = vmatprep.subr.bf16.mxu0 %v6511_v62  ;;  %5877 = vmatprep.subr.bf16.mxu1 %v6521_v1  ;;  %v1782_v62 = vld [vmem:[#allocation2 + $0x91] sm:$0xff] }
 0x136   : > { %5846 = vmatmul.mubr.bf16.gmra.mrb[76].mxu1 %v7260_v60 }
 0x137   : > { %5849 = vmatprep.mubr.bf16.mxu1 %v7264_v4  ;;  %5878 = vmatpush3.bf16.msra.mxu1 %v6521_v1  ;;  %v1783_v1 = vld [vmem:[#allocation2 + $0x99] sm:$0xff] }
 0x138   : > { %5236 = vmatpush3.bf16.msra.mxu0 %v6512_v2  ;;  %5879 = vmatprep.subr.bf16.mxu1 %v6522_v3 }
 0x139   : > { %5237 = vmatprep.subr.bf16.mxu0 %v6515_v7 }
 0x13b   : > { %5798 = vmatmul.mubr.bf16.gmra.mrb[76].mxu0 %v7264_v4  ;;  %5880 = vmatpush3.bf16.msra.mxu1 %v6522_v3 }
 0x13c   : > { %5801 = vmatprep.mubr.bf16.mxu0 %v7268_v8  ;;  %5238 = vmatpush3.bf16.msra.mxu0 %v6516_v9 }
 0x13d   : > { %5239 = vmatprep.subr.bf16.mxu0 %v6519_v10 }
 0x13e   : > { %5850 = vmatmul.mubr.bf16.gmra.mrb[80].mxu1 %v7268_v8 }
 0x13f   : > { %5853 = vmatprep.mubr.bf16.mxu1 %v7272_v14 }
 0x140   : > { %5240 = vmatpush3.bf16.msra.mxu0 %v6520_v13  ;;  %v1750_v13 = vld [vmem:[#allocation2 + $0x90] sm:$0xff] }
 0x143   : > { %5802 = vmatmul.mubr.bf16.gmra.mrb[80].mxu0 %v7272_v14 }
 0x144   : > { %5805 = vmatprep.mubr.bf16.mxu0 %v7276_v17 }
 0x146   : > { %5854 = vmatmul.mubr.bf16.gmra.mrb[84].mxu1 %v7276_v17 }
 0x147   : > { %5857 = vmatprep.mubr.bf16.mxu1 %v7280_v20 }
 0x14b   : > { %5806 = vmatmul.mubr.bf16.gmra.mrb[84].mxu0 %v7280_v20 }
 0x14c   : > { %5809 = vmatprep.mubr.bf16.mxu0 %v7284_v23 }
 0x14e   : > { %5858 = vmatmul.mubr.bf16.gmra.mrb[88].mxu1 %v7284_v23 }
 0x14f   : > { %5861 = vmatprep.mubr.bf16.mxu1 %v7288_v26 }
 0x153   : > { %5810 = vmatmul.mubr.bf16.gmra.mrb[88].mxu0 %v7288_v26 }
 0x154   : > { %5813 = vmatprep.mubr.bf16.mxu0 %v7292_v29 }
 0x156   : > { %5862 = vmatmul.mubr.bf16.gmra.mrb[92].mxu1 %v7292_v29 }
 0x157   : > { %5881 = vmatprep.mubr.bf16.mxu1 %v7240_v33  ;;  %v1779_v33 = vld [vmem:[#allocation2 + $0x69] sm:$0xff] }
 0x158   : > { %v1845_v50 = vpack.c.bf16 %v1779_v33, %v1778_v47  ;;  %v1857_v47 = vpack.c.bf16 %v1787_v41, %v1786_v40  ;;  %v1759_v40 = vld [vmem:[#allocation2 + $0xf8] sm:$0xff] }
 0x15b   : > { %5814 = vmatmul.mubr.bf16.gmra.mrb[92].mxu0 %v7297_v35 }
 0x15c   : > { %2111 = vmatprep.mubr.bf16.mxu0 %v1839_v36 }
 0x15e   : > { %5882 = vmatmul.mubr.bf16.vlgmr.msra.gmra.mrb[64].mxu1 %v7244_v37  ;;  %v1747_v37 = vld [vmem:[#allocation2 + $0x68] sm:$0xff] }
 0x15f   : > { %5885 = vmatprep.mubr.bf16.mxu1 %v7248_v44  ;;  %v1844_v44 = vpack.c.bf16 %v1747_v37, %v1746_v51 }
 0x163   : > { %2112 = vmatmul.mubr.bf16.vlgmr.msra.gmra.mrb[96].mxu0 %v1838_v42 }
 0x164   : > { %2119 = vmatprep.mubr.bf16.mxu0 %v1842_v43 }
 0x166   : > { %5886 = vmatmul.mubr.bf16.gmra.mrb[68].mxu1 %v7252_v48 }
 0x167   : > { %5889 = vmatprep.mubr.bf16.mxu1 %v7256_v56  ;;  %v1748_v56 = vld [vmem:[#allocation2 + $0x78] sm:$0xff] }
 0x168   : > { %v1847_v2 = vpack.c.bf16 %v1749_v59, %v1748_v56 }
 0x16b   : > { %2120 = vmatmul.mubr.bf16.gmra.mrb[100].mxu0 %v1841_v49 }
 0x16c   : > { %2127 = vmatprep.mubr.bf16.mxu0 %v1845_v50 }
 0x16e   : > { %5890 = vmatmul.mubr.bf16.gmra.mrb[72].mxu1 %v7260_v60 }
 0x16f   : > { %5893 = vmatprep.mubr.bf16.mxu1 %v7264_v4  ;;  %v1851_v4 = vpack.c.bf16 %v1783_v1, %v1782_v62  ;;  %v1837_v62 = vld [vmem:[#allocation2 + $0x1a2] sm:$0xff] }
 0x171   : > { %v5105_v55 = vpop.f32.mrb[0].mxu1 }
 0x172   : > { %v5106_v57 = vpop.f32.mrb[1].mxu1 }
 0x173   : > { %2128 = vmatmul.mubr.bf16.gmra.mrb[104].mxu0 %v1844_v44  ;;  %v7307_v48 = vadd.f32 %v5106_v57, %v5105_v55  ;;  %v5108_v58 = vpop.f32.mrb[2].mxu1  ;;  %v1754_v44 = vld [vmem:[#allocation2 + $0xc0] sm:$0xff] }
 0x174   : > { %2135 = vmatprep.mubr.bf16.mxu0 %v1848_v54  ;;  %v5109_v61 = vpop.f32.mrb[3].mxu1  ;;  %v1788_v55 = vld [vmem:[#allocation2 + $0xd9] sm:$0xff]  ;;  %v1789_v57 = vld [vmem:[#allocation2 + $0xe1] sm:$0xff] }
 0x175   : > { %v7309_v63 = vadd.f32 %v5109_v61, %v5108_v58  ;;  %v1836_v61 = vld [vmem:[#allocation2 + $0x19a] sm:$0xff] }
 0x176   : > { %v4969_v0 = vpop.f32.mrb[0].mxu0  ;;  %5894 = vmatmul.mubr.bf16.gmra.mrb[76].mxu1 %v7268_v8  ;;  %v1751_v8 = vld [vmem:[#allocation2 + $0x98] sm:$0xff] }
 0x177   : > { %v4970_v60 = vpop.f32.mrb[1].mxu0  ;;  %5897 = vmatprep.mubr.bf16.mxu1 %v7272_v14  ;;  %v1850_v22 = vpack.c.bf16 %v1751_v8, %v1750_v13  ;;  %v1757_v13 = vld [vmem:[#allocation2 + $0xe0] sm:$0xff]  ;;  %v1790_v8 = vld [vmem:[#allocation2 + $0xf1] sm:$0xff] }
 0x178   : > { %v4972_v3 = vpop.f32.mrb[2].mxu0  ;;  %v7313_v5 = vadd.f32 %v4970_v60, %v4969_v0  ;;  %v1860_v0 = vpack.c.bf16 %v1789_v57, %v1788_v55 }
 0x179   : > { %v4973_v6 = vpop.f32.mrb[3].mxu0  ;;  %v5111_v7 = vpop.f32.mrb[4].mxu1 }
 0x17a   : > { %v5112_v9 = vpop.f32.mrb[5].mxu1  ;;  %v7315_v10 = vadd.f32 %v4973_v6, %v4972_v3 }
 0x17b   : > { %2136 = vmatmul.mubr.bf16.gmra.mrb[108].mxu0 %v1847_v2  ;;  %v7317_v11 = vadd.f32 %v5112_v9, %v5111_v7  ;;  %v5114_v12 = vpop.f32.mrb[6].mxu1 }
 0x17c   : > { %2143 = vmatprep.mubr.bf16.mxu0 %v1851_v4  ;;  %v5115_v15 = vpop.f32.mrb[7].mxu1  ;;  %v1885_v4 = vpack.c.bf16 %v1837_v62, %v1836_v61  ;;  %v1794_v62 = vld [vmem:[#allocation2 + $0x121] sm:$0xff] }
 0x17d   : > { %v7319_v14 = vadd.f32 %v5115_v15, %v5114_v12  ;;  %v1756_v12 = vld [vmem:[#allocation2 + $0xd8] sm:$0xff] }
 0x17e   : > { %v4975_v19 = vpop.f32.mrb[4].mxu0  ;;  %5898 = vmatmul.mubr.bf16.gmra.mrb[80].mxu1 %v7276_v17  ;;  %v1753_v17 = vld [vmem:[#allocation2 + $0xb0] sm:$0xff]  ;;  %v1791_v15 = vld [vmem:[#allocation2 + $0xf9] sm:$0xff] }
 0x17f   : > { %v4976_v21 = vpop.f32.mrb[5].mxu0  ;;  %5901 = vmatprep.mubr.bf16.mxu1 %v7280_v20  ;;  %v1853_v45 = vpack.c.bf16 %v1753_v17, %v1752_v38 }
 0x180   : > { %v4978_v24 = vpop.f32.mrb[6].mxu0  ;;  %v7323_v27 = vadd.f32 %v4976_v21, %v4975_v19  ;;  %v1859_v21 = vpack.c.bf16 %v1757_v13, %v1756_v12 }
 0x181   : > { %v4979_v28 = vpop.f32.mrb[7].mxu0  ;;  %v5117_v30 = vpop.f32.mrb[8].mxu1 }
 0x182   : > { %v5118_v31 = vpop.f32.mrb[9].mxu1  ;;  %v7325_v32 = vadd.f32 %v4979_v28, %v4978_v24  ;;  %v1863_v24 = vpack.c.bf16 %v1791_v15, %v1790_v8 }
 0x183   : > { %2144 = vmatmul.mubr.bf16.gmra.mrb[112].mxu0 %v1850_v22  ;;  %v7327_v34 = vadd.f32 %v5118_v31, %v5117_v30  ;;  %v5120_v36 = vpop.f32.mrb[10].mxu1 }
 0x184   : > { %2151 = vmatprep.mubr.bf16.mxu0 %v1854_v25  ;;  %v5121_v39 = vpop.f32.mrb[11].mxu1 }
 0x185   : > { %v7329_v20 = vadd.f32 %v5121_v39, %v5120_v36  ;;  %v1758_v39 = vld [vmem:[#allocation2 + $0xf0] sm:$0xff] }
 0x186   : > { %v4981_v42 = vpop.f32.mrb[8].mxu0  ;;  %5902 = vmatmul.mubr.bf16.gmra.mrb[84].mxu1 %v7284_v23  ;;  %v1755_v23 = vld [vmem:[#allocation2 + $0xc8] sm:$0xff] }
 0x187   : > { %v4982_v43 = vpop.f32.mrb[9].mxu0  ;;  %5905 = vmatprep.mubr.bf16.mxu1 %v7288_v26  ;;  %v1856_v59 = vpack.c.bf16 %v1755_v23, %v1754_v44 }
 0x188   : > { %v4984_v46 = vpop.f32.mrb[10].mxu0  ;;  %v7333_v33 = vadd.f32 %v4982_v43, %v4981_v42  ;;  %v1792_v42 = vld [vmem:[#allocation2 + $0x109] sm:$0xff]  ;;  %v1793_v43 = vld [vmem:[#allocation2 + $0x111] sm:$0xff] }
 0x189   : > { %v4985_v49 = vpop.f32.mrb[11].mxu0  ;;  %v5123_v50 = vpop.f32.mrb[12].mxu1 }
 0x18a   : > { %v5124_v51 = vpop.f32.mrb[13].mxu1  ;;  %v7335_v37 = vadd.f32 %v4985_v49, %v4984_v46  ;;  %v1862_v49 = vpack.c.bf16 %v1759_v40, %v1758_v39  ;;  %v6524_v39 = vld [vmem:[#allocation9 + $0xc0] sm:$0xff]  }
 0x18b   : > { %2152 = vmatmul.mubr.bf16.gmra.mrb[116].mxu0 %v1853_v45  ;;  %v7337_v52 = vadd.f32 %v5124_v51, %v5123_v50  ;;  %v5126_v53 = vpop.f32.mrb[14].mxu1  ;;  %v1866_v51 = vpack.c.bf16 %v1793_v43, %v1792_v42 }
 0x18c   : > { %2159 = vmatprep.mubr.bf16.mxu0 %v1857_v47  ;;  %v5127_v54 = vpop.f32.mrb[15].mxu1 }
 0x18d   : > { %v7339_v26 = vadd.f32 %v5127_v54, %v5126_v53 }
 0x18e   : > { %v4987_v58 = vpop.f32.mrb[12].mxu0  ;;  %5906 = vmatmul.mubr.bf16.gmra.mrb[88].mxu1 %v7292_v29 }
 0x18f   : > { %v4988_v56 = vpop.f32.mrb[13].mxu0  ;;  %5909 = vmatprep.mubr.bf16.mxu1 %v7297_v35 }
 0x190   : > { %v4990_v1 = vpop.f32.mrb[14].mxu0  ;;  %v7343_v60 = vadd.f32 %v4988_v56, %v4987_v58  ;;  %v1760_v56 = vld [vmem:[#allocation2 + $0x108] sm:$0xff] }
 0x191   : > { %v4991_v2 = vpop.f32.mrb[15].mxu0  ;;  %v5129_v3 = vpop.f32.mrb[16].mxu1 }
 0x192   : > { %v5130_v6 = vpop.f32.mrb[17].mxu1  ;;  %v7345_v7 = vadd.f32 %v4991_v2, %v4990_v1  ;;  %v1795_v1 = vld [vmem:[#allocation2 + $0x129] sm:$0xff] }
 0x193   : > { %2160 = vmatmul.mubr.bf16.gmra.mrb[120].mxu0 %v1856_v59  ;;  %v7347_v9 = vadd.f32 %v5130_v6, %v5129_v3  ;;  %v5132_v29 = vpop.f32.mrb[18].mxu1  ;;  %v1761_v59 = vld [vmem:[#allocation2 + $0x110] sm:$0xff] }
 0x194   : > { %2167 = vmatprep.mubr.bf16.mxu0 %v1860_v0  ;;  %v5133_v35 = vpop.f32.mrb[19].mxu1 }
 0x195   : > { %v7349_v16 = vadd.f32 %v5133_v35, %v5132_v29  ;;  %v1869_v29 = vpack.c.bf16 %v1795_v1, %v1794_v62  ;;  %v6527_v1 = vld [vmem:[#allocation9 + $0x140] sm:$0xff]  }
 0x196   : > { %v4993_v18 = vpop.f32.mrb[16].mxu0  ;;  %5910 = vmatmul.mubr.bf16.gmra.mrb[92].mxu1 %v1885_v4  ;;  %v1865_v4 = vpack.c.bf16 %v1761_v59, %v1760_v56  ;;  %5913 = vmatprep.subr.bf16.mxu1 %v6527_v1 }
 0x197   : > { %v4994_v19 = vpop.f32.mrb[17].mxu0  ;;  %5914 = vmatpush3.bf16.msra.mxu1 %v6527_v1 }
 0x198   : > { %v4996_v22 = vpop.f32.mrb[18].mxu0  ;;  %v7351_v25 = vadd.f32 %v4994_v19, %v4993_v18 }
 0x199   : > { %v4997_v28 = vpop.f32.mrb[19].mxu0  ;;  %v5135_v30 = vpop.f32.mrb[20].mxu1 }
 0x19a   : > { %v5136_v31 = vpop.f32.mrb[21].mxu1  ;;  %v7353_v36 = vadd.f32 %v4997_v28, %v4996_v22  ;;  %v1763_v22 = vld [vmem:[#allocation2 + $0x128] sm:$0xff]  ;;  %v6523_v28 = vld [vmem:[#allocation9 + $0x100] sm:$0xff]  }
 0x19b   : > { %2168 = vmatmul.mubr.bf16.gmra.mrb[124].mxu0 %v1859_v21  ;;  %v7355_v38 = vadd.f32 %v5136_v31, %v5135_v30  ;;  %v5138_v17 = vpop.f32.mrb[22].mxu1  ;;  %v1762_v21 = vld [vmem:[#allocation2 + $0x120] sm:$0xff]  ;;  %5361 = vmatprep.subr.bf16.mxu0 %v6523_v28  ;;  %v6531_v28 = vld [vmem:[#allocation9 + $0x118] sm:$0xff]  }
 0x19c   : > { %2175 = vmatprep.mubr.bf16.mxu0 %v1863_v24  ;;  %v5139_v41 = vpop.f32.mrb[23].mxu1  ;;  %v1796_v30 = vld [vmem:[#allocation2 + $0x139] sm:$0xff]  ;;  %v1797_v31 = vld [vmem:[#allocation2 + $0x141] sm:$0xff]  ;;  %v1868_v42 = vpack.c.bf16 %v1763_v22, %v1762_v21  ;;  %5362 = vmatpush3.bf16.msra.mxu0 %v6524_v39 }
 0x19d   : > { %v7357_v45 = vadd.f32 %v5139_v41, %v5138_v17  ;;  %v6532_v39 = vld [vmem:[#allocation9 + $0xd8] sm:$0xff]  }
 0x19e   : > { %v4999_v46 = vpop.f32.mrb[20].mxu0 }
 0x19f   : > { %v5000_v47 = vpop.f32.mrb[21].mxu0 }
 0x1a0   : > { %v5002_v50 = vpop.f32.mrb[22].mxu0  ;;  %v7359_v53 = vadd.f32 %v5000_v47, %v4999_v46  ;;  %v1872_v46 = vpack.c.bf16 %v1797_v31, %v1796_v30 }
 0x1a1   : > { %v5003_v44 = vpop.f32.mrb[23].mxu0  ;;  %v5141_v23 = vpop.f32.mrb[24].mxu1 }
 0x1a2   : > { %v5142_v54 = vpop.f32.mrb[25].mxu1  ;;  %v7361_v55 = vadd.f32 %v5003_v44, %v5002_v50  ;;  %v6526_v44 = vld [vmem:[#allocation9 + $0xc8] sm:$0xff]  }
 0x1a3   : > { %2176 = vmatmul.mubr.bf16.gmra.mrb[128].mxu0 %v1862_v49  ;;  %v7363_v57 = vadd.f32 %v5142_v54, %v5141_v23  ;;  %v5144_v58 = vpop.f32.mrb[26].mxu1  ;;  %v6525_v49 = vld [vmem:[#allocation9 + $0x108] sm:$0xff]  }
 0x1a4   : > { %2183 = vmatprep.mubr.bf16.mxu0 %v1866_v51  ;;  %v5145_v61 = vpop.f32.mrb[27].mxu1  ;;  %5363 = vmatprep.subr.bf16.mxu0 %v6525_v49  ;;  %v1767_v49 = vld [vmem:[#allocation2 + $0x158] sm:$0xff] }
 0x1a5   : > { %v7365_v0 = vadd.f32 %v5145_v61, %v5144_v58  ;;  %v1764_v58 = vld [vmem:[#allocation2 + $0x138] sm:$0xff]  ;;  %v1765_v61 = vld [vmem:[#allocation2 + $0x140] sm:$0xff]  ;;  %5364 = vmatpush3.bf16.msra.mxu0 %v6526_v44 }
 0x1a6   : > { %v5005_v2 = vpop.f32.mrb[24].mxu0  ;;  %v6534_v44 = vld [vmem:[#allocation9 + $0x120] sm:$0xff]  }
 0x1a7   : > { %v5006_v3 = vpop.f32.mrb[25].mxu0 }
 0x1a8   : > { %v5008_v6 = vpop.f32.mrb[26].mxu0  ;;  %v7367_v12 = vadd.f32 %v5006_v3, %v5005_v2  ;;  %v6528_v2 = vld [vmem:[#allocation9 + $0x110] sm:$0xff]  }
 0x1a9   : > { %v5009_v13 = vpop.f32.mrb[27].mxu0  ;;  %v5147_v35 = vpop.f32.mrb[28].mxu1  ;;  %v1798_v3 = vld [vmem:[#allocation2 + $0x151] sm:$0xff]  ;;  %5365 = vmatprep.subr.bf16.mxu0 %v6528_v2 }
 0x1aa   : > { %v5148_v8 = vpop.f32.mrb[29].mxu1  ;;  %v7369_v15 = vadd.f32 %v5009_v13, %v5008_v6 }
 0x1ab   : > { %2184 = vmatmul.mubr.bf16.gmra.mrb[132].mxu0 %v1865_v4  ;;  %v7371_v18 = vadd.f32 %v5148_v8, %v5147_v35  ;;  %v5150_v19 = vpop.f32.mrb[30].mxu1  ;;  %v1799_v4 = vld [vmem:[#allocation2 + $0x159] sm:$0xff]  ;;  %v1871_v8 = vpack.c.bf16 %v1765_v61, %v1764_v58  ;;  %v1801_v58 = vld [vmem:[#allocation2 + $0x171] sm:$0xff] }
 0x1ac   : > { %2191 = vmatprep.mubr.bf16.mxu0 %v1869_v29  ;;  %v5151_v24 = vpop.f32.mrb[31].mxu1  ;;  %v6529_v29 = vld [vmem:[#allocation9 + $0xd0] sm:$0xff]   ;;  %v1875_v22 = vpack.c.bf16 %v1799_v4, %v1798_v3  ;;  %v6535_v61 = vld [vmem:[#allocation9 + $0xe0] sm:$0xff]  }
 0x1ad   : > { %v7373_v17 = vadd.f32 %v5151_v24, %v5150_v19  ;;  %5366 = vmatpush3.bf16.msra.mxu0 %v6529_v29  ;;  %v6530_v24 = vld [vmem:[#allocation9 + $0x148] sm:$0xff]  }
 0x1ae   : > { %v5011_v40 = vpop.f32.mrb[28].mxu0  ;;  %5915 = vmatprep.subr.bf16.mxu1 %v6530_v24  ;;  %5367 = vmatprep.subr.bf16.mxu0 %v6531_v28 }
 0x1af   : > { %v5012_v41 = vpop.f32.mrb[29].mxu0  ;;  %5916 = vmatpush3.bf16.msra.mxu1 %v6530_v24 }
 0x1b0   : > { %v5014_v43 = vpop.f32.mrb[30].mxu0  ;;  %v7375_v47 = vadd.f32 %v5012_v41, %v5011_v40 }
 0x1b1   : > { %v5015_v50 = vpop.f32.mrb[31].mxu0  ;;  %v5153_v51 = vpop.f32.mrb[32].mxu1  ;;  %5368 = vmatpush3.bf16.msra.mxu0 %v6532_v39 }
 0x1b2   : > { %v5154_v23 = vpop.f32.mrb[33].mxu1  ;;  %v7377_v54 = vadd.f32 %v5015_v50, %v5014_v43  ;;  %5369 = vmatprep.subr.bf16.mxu0 %v6534_v44 }
 0x1b3   : > { %2192 = vmatmul.mubr.bf16.gmra.mrb[136].mxu0 %v1868_v42  ;;  %v7379_v56 = vadd.f32 %v5154_v23, %v5153_v51  ;;  %v5156_v59 = vpop.f32.mrb[34].mxu1  ;;  %v1766_v42 = vld [vmem:[#allocation2 + $0x150] sm:$0xff] }
 0x1b4   : > { %2199 = vmatprep.mubr.bf16.mxu0 %v1872_v46  ;;  %v5157_v62 = vpop.f32.mrb[35].mxu1  ;;  %v6533_v51 = vld [vmem:[#allocation9 + $0x150] sm:$0xff]   ;;  %v1874_v2 = vpack.c.bf16 %v1767_v49, %v1766_v42 }
 0x1b5   : > { %v7381_v6 = vadd.f32 %v5157_v62, %v5156_v59  ;;  %v1800_v23 = vld [vmem:[#allocation2 + $0x169] sm:$0xff]  ;;  %5917 = vmatprep.subr.bf16.mxu1 %v6533_v51  ;;  %5370 = vmatpush3.bf16.msra.mxu0 %v6535_v61 }
 0x1b6   : > { %v5017_v13 = vpop.f32.mrb[32].mxu0  ;;  %5918 = vmatpush3.bf16.msra.mxu1 %v6533_v51  ;;  %v1878_v29 = vpack.c.bf16 %v1801_v58, %v1800_v23  ;;  %v6540_v49 = vld [vmem:[#allocation9 + $0x130] sm:$0xff]  }
 0x1b7   : > { %v5018_v35 = vpop.f32.mrb[33].mxu0  ;;  %v1803_v51 = vld [vmem:[#allocation2 + $0x189] sm:$0xff] }
 0x1b8   : > { %v7383_v19 = vadd.f32 %v5018_v35, %v5017_v13  ;;  %v5020_v21 = vpop.f32.mrb[34].mxu0  ;;  %v6536_v13 = vld [vmem:[#allocation9 + $0x158] sm:$0xff]   ;;  %v6537_v35 = vld [vmem:[#allocation9 + $0x128] sm:$0xff]   ;;  %v6541_v23 = vld [vmem:[#allocation9 + $0xf0] sm:$0xff]  }
 0x1b9   : > { %v5021_v30 = vpop.f32.mrb[35].mxu0  ;;  %v5159_v31 = vpop.f32.mrb[36].mxu1  ;;  %5919 = vmatprep.subr.bf16.mxu1 %v6536_v13  ;;  %5371 = vmatprep.subr.bf16.mxu0 %v6537_v35 }
 0x1ba   : > { %v7385_v40 = vadd.f32 %v5021_v30, %v5020_v21  ;;  %v5160_v41 = vpop.f32.mrb[37].mxu1  ;;  %v1768_v30 = vld [vmem:[#allocation2 + $0x168] sm:$0xff]  ;;  %5920 = vmatpush3.bf16.msra.mxu1 %v6536_v13  ;;  %v6543_v13 = vld [vmem:[#allocation9 + $0x138] sm:$0xff]  }
 0x1bb   : > { %2200 = vmatmul.mubr.bf16.gmra.mrb[140].mxu0 %v1871_v8  ;;  %v7387_v43 = vadd.f32 %v5160_v41, %v5159_v31  ;;  %v5162_v46 = vpop.f32.mrb[38].mxu1  ;;  %v1769_v41 = vld [vmem:[#allocation2 + $0x170] sm:$0xff] }
 0x1bc   : > { %2207 = vmatprep.mubr.bf16.mxu0 %v1875_v22  ;;  %v5163_v50 = vpop.f32.mrb[39].mxu1  ;;  %v6538_v22 = vld [vmem:[#allocation9 + $0xe8] sm:$0xff]  }
 0x1bd   : > { %v7389_v59 = vadd.f32 %v5163_v50, %v5162_v46  ;;  %5372 = vmatpush3.bf16.msra.mxu0 %v6538_v22  ;;  %v6539_v46 = vld [vmem:[#allocation9 + $0x160] sm:$0xff]  }
 0x1be   : > { %v5023_v62 = vpop.f32.mrb[36].mxu0  ;;  %v1802_v50 = vld [vmem:[#allocation2 + $0x181] sm:$0xff]  ;;  %5921 = vmatprep.subr.bf16.mxu1 %v6539_v46  ;;  %5373 = vmatprep.subr.bf16.mxu0 %v6540_v49  ;;  %v6545_v49 = vld [vmem:[#allocation9 + $0x170] sm:$0xff]  }
 0x1bf   : > { %v5024_v1 = vpop.f32.mrb[37].mxu0  ;;  %5922 = vmatpush3.bf16.msra.mxu1 %v6539_v46 }
 0x1c0   : > { %v7391_v3 = vadd.f32 %v5024_v1, %v5023_v62  ;;  %v5026_v4 = vpop.f32.mrb[38].mxu0  ;;  %v1877_v62 = vpack.c.bf16 %v1769_v41, %v1768_v30  ;;  %v1770_v41 = vld [vmem:[#allocation2 + $0x180] sm:$0xff] }
 0x1c1   : > { %v5027_v8 = vpop.f32.mrb[39].mxu0  ;;  %v5165_v21 = vpop.f32.mrb[40].mxu1  ;;  %5374 = vmatpush3.bf16.msra.mxu0 %v6541_v23 }
 0x1c2   : > { %v7393_v24 = vadd.f32 %v5027_v8, %v5026_v4  ;;  %v5166_v28 = vpop.f32.mrb[41].mxu1  ;;  %v1881_v4 = vpack.c.bf16 %v1803_v51, %v1802_v50  ;;  %5375 = vmatprep.subr.bf16.mxu0 %v6543_v13  ;;  %v1804_v50 = vld [vmem:[#allocation2 + $0x199] sm:$0xff]  ;;  %v1805_v51 = vld [vmem:[#allocation2 + $0x1a1] sm:$0xff] }
 0x1c3   : > { %2208 = vmatmul.mubr.bf16.gmra.mrb[144].mxu0 %v1874_v2  ;;  %v7395_v31 = vadd.f32 %v5166_v28, %v5165_v21  ;;  %v5168_v39 = vpop.f32.mrb[42].mxu1  ;;  %v6544_v21 = vld [vmem:[#allocation9 + $0xf8] sm:$0xff]  }
 0x1c4   : > { %2215 = vmatprep.mubr.bf16.mxu0 %v1878_v29  ;;  %v5169_v42 = vpop.f32.mrb[43].mxu1  ;;  %v6542_v29 = vld [vmem:[#allocation9 + $0x168] sm:$0xff]  }
 0x1c5   : > { %v7397_v44 = vadd.f32 %v5169_v42, %v5168_v39  ;;  %5923 = vmatprep.subr.bf16.mxu1 %v6542_v29  ;;  %v1771_v42 = vld [vmem:[#allocation2 + $0x188] sm:$0xff]  ;;  %5376 = vmatpush3.bf16.msra.mxu0 %v6544_v21 }
 0x1c6   : > { %v5029_v58 = vpop.f32.mrb[40].mxu0  ;;  %5924 = vmatpush3.bf16.msra.mxu1 %v6542_v29  ;;  %v6546_v29 = vld [vmem:[#allocation9 + $0x178] sm:$0xff]  }
 0x1c7   : > { %8331 = vst [vmem:[#allocation14_spill] sm:$0xff] %v7397_v44  ;;  %v5030_v61 = vpop.f32.mrb[41].mxu0  ;;  %5925 = vmatprep.subr.bf16.mxu1 %v6545_v49 }
 0x1c8   : > { %v7399_v1 = vadd.f32 %v5030_v61, %v5029_v58  ;;  %v5032_v2 = vpop.f32.mrb[42].mxu0 }
 0x1c9   : > { %v5033_v35 = vpop.f32.mrb[43].mxu0  ;;  %v5171_v8 = vpop.f32.mrb[44].mxu1 }
 0x1ca   : > { %v7401_v22 = vadd.f32 %v5033_v35, %v5032_v2  ;;  %v5172_v28 = vpop.f32.mrb[45].mxu1  ;;  %v1880_v2 = vpack.c.bf16 %v1771_v42, %v1770_v41  ;;  %5926 = vmatpush3.bf16.msra.mxu1 %v6545_v49  ;;  %v1884_v35 = vpack.c.bf16 %v1805_v51, %v1804_v50  ;;  %v6595_v50 = vld [vmem:[#allocation2 + $0x8] sm:$0xff] }
 0x1cb   : > { %2216 = vmatmul.mubr.bf16.gmra.mrb[148].mxu0 %v1877_v62  ;;  %v7403_v39 = vadd.f32 %v5172_v28, %v5171_v8  ;;  %v5174_v30 = vpop.f32.mrb[46].mxu1  ;;  %5927 = vmatprep.subr.bf16.mxu1 %v6546_v29 }
 0x1cc   : > { %8332 = vst [vmem:[#allocation15_spill] sm:$0xff] %v7401_v22  ;;  %2223 = vmatprep.mubr.bf16.mxu0 %v1881_v4  ;;  %v5175_v46 = vpop.f32.mrb[47].mxu1 }
 0x1cd   : > { %v7405_v23 = vadd.f32 %v5175_v46, %v5174_v30  ;;  %v1772_v46 = vld [vmem:[#allocation2 + $0x198] sm:$0xff] }
 0x1ce   : > { %v5035_v58 = vpop.f32.mrb[44].mxu0  ;;  %5928 = vmatpush3.bf16.msra.mxu1 %v6546_v29  ;;  %v1883_v51 = vpack.c.bf16 %v6595_v50, %v1772_v46 }
 0x1cf   : > { %8333 = vst [vmem:[#allocation16_spill] sm:$0xff] %v7405_v23  ;;  %v5036_v61 = vpop.f32.mrb[45].mxu0 }
 0x1d0   : > { %v7407_v62 = vadd.f32 %v5036_v61, %v5035_v58  ;;  %v5038_v13 = vpop.f32.mrb[46].mxu0 }
 0x1d1   : > { %v5039_v4 = vpop.f32.mrb[47].mxu0  ;;  %v5177_v8 = vpop.f32.mrb[48].mxu1 }
 0x1d2   : > { %v7409_v28 = vadd.f32 %v5039_v4, %v5038_v13  ;;  %v5178_v21 = vpop.f32.mrb[49].mxu1 }
 0x1d3   : > { %2224 = vmatmul.mubr.bf16.gmra.mrb[152].mxu0 %v1880_v2  ;;  %v7411_v44 = vadd.f32 %v5178_v21, %v5177_v8  ;;  %v5180_v30 = vpop.f32.mrb[50].mxu1 }
 0x1d4   : > { %2231 = vmatprep.mubr.bf16.mxu0 %v1884_v35  ;;  %v5181_v41 = vpop.f32.mrb[51].mxu1 }
 0x1d5   : > { %8334 = vst [vmem:[#allocation17_spill] sm:$0xff] %v7411_v44  ;;  %v7413_v42 = vadd.f32 %v5181_v41, %v5180_v30 }
 0x1d6   : > { %v5041_v49 = vpop.f32.mrb[48].mxu0 }
 0x1d7   : > { %8335 = vst [vmem:[#allocation18_spill] sm:$0xff] %v7413_v42  ;;  %v5042_v58 = vpop.f32.mrb[49].mxu0 }
 0x1d8   : > { %v7415_v61 = vadd.f32 %v5042_v58, %v5041_v49  ;;  %v5044_v13 = vpop.f32.mrb[50].mxu0 }
 0x1d9   : > { %v5045_v4 = vpop.f32.mrb[51].mxu0  ;;  %v5183_v23 = vpop.f32.mrb[52].mxu1 }
 0x1da   : > { %8336 = vst [vmem:[#allocation19_spill] sm:$0xff] %v7415_v61  ;;  %v7417_v22 = vadd.f32 %v5045_v4, %v5044_v13  ;;  %v5184_v2 = vpop.f32.mrb[53].mxu1 }
 0x1db   : > { %2232 = vmatmul.mubr.bf16.gmra.mrb[156].mxu0 %v1883_v51  ;;  %v7419_v8 = vadd.f32 %v5184_v2, %v5183_v23  ;;  %v5186_v35 = vpop.f32.mrb[54].mxu1 }
 0x1dc   : > { %8337 = vst [vmem:[#allocation20_spill] sm:$0xff] %v7417_v22  ;;  %v5187_v29 = vpop.f32.mrb[55].mxu1 }
 0x1dd   : > { %8338 = vst [vmem:[#allocation21_spill] sm:$0xff] %v7419_v8  ;;  %v7421_v21 = vadd.f32 %v5187_v29, %v5186_v35 }
 0x1de   : > { %v5047_v30 = vpop.f32.mrb[52].mxu0 }
 0x1df   : > { %8339 = vst [vmem:[#allocation22_spill] sm:$0xff] %v7421_v21  ;;  %v5048_v41 = vpop.f32.mrb[53].mxu0 }
 0x1e0   : > { %v7423_v42 = vadd.f32 %v5048_v41, %v5047_v30  ;;  %v5050_v46 = vpop.f32.mrb[54].mxu0 }
 0x1e1   : > { %v5051_v49 = vpop.f32.mrb[55].mxu0  ;;  %v5189_v58 = vpop.f32.mrb[56].mxu1 }
 0x1e2   : > { %v7425_v50 = vadd.f32 %v5051_v49, %v5050_v46  ;;  %v5190_v44 = vpop.f32.mrb[57].mxu1 }
 0x1e3   : > { %v7427_v13 = vadd.f32 %v5190_v44, %v5189_v58  ;;  %v5192_v4 = vpop.f32.mrb[58].mxu1 }
 0x1e4   : > { %v5193_v51 = vpop.f32.mrb[59].mxu1 }
 0x1e5   : > { %8340 = vst [vmem:[#allocation23_spill] sm:$0xff] %v7427_v13  ;;  %v7429_v23 = vadd.f32 %v5193_v51, %v5192_v4 }
 0x1e6   : > { %v5053_v2 = vpop.f32.mrb[56].mxu0 }
 0x1e7   : > { %8341 = vst [vmem:[#allocation24_spill] sm:$0xff] %v7429_v23  ;;  %v5054_v22 = vpop.f32.mrb[57].mxu0 }
 0x1e8   : > { %v7431_v35 = vadd.f32 %v5054_v22, %v5053_v2  ;;  %v5056_v29 = vpop.f32.mrb[58].mxu0 }
 0x1e9   : > { %v5057_v21 = vpop.f32.mrb[59].mxu0  ;;  %v5195_v30 = vpop.f32.mrb[60].mxu1 }
 0x1ea   : > { %8342 = vst [vmem:[#allocation25_spill] sm:$0xff] %v7431_v35  ;;  %v7433_v41 = vadd.f32 %v5057_v21, %v5056_v29  ;;  %v5196_v8 = vpop.f32.mrb[61].mxu1 }
 0x1eb   : > { %v7435_v61 = vadd.f32 %v5196_v8, %v5195_v30  ;;  %v5198_v46 = vpop.f32.mrb[62].mxu1 }
 0x1ec   : > { %v5199_v49 = vpop.f32.mrb[63].mxu1 }
 0x1ed   : > { %v7437_v44 = vadd.f32 %v5199_v49, %v5198_v46 }
 0x1ee   : > { %v5059_v58 = vpop.f32.mrb[60].mxu0 }
 0x1ef   : > { %v5060_v13 = vpop.f32.mrb[61].mxu0 }
 0x1f0   : > { %v7439_v4 = vadd.f32 %v5060_v13, %v5059_v58  ;;  %v5062_v51 = vpop.f32.mrb[62].mxu0 }
 0x1f1   : > { %v5063_v23 = vpop.f32.mrb[63].mxu0 }
 0x1f2   : > { %v7441_v22 = vadd.f32 %v5063_v23, %v5062_v51 }
 0x1f6   : > { %v5787_v2 = vpop.f32.mrb[64].mxu0 }
 0x1f7   : > { %v1157_v35 = vadd.f32 %v5787_v2, %v7323_v27  ;;  %v1148_v21 = vpop.f32.mrb[65].mxu0 }
 0x1f8   : > { %v1149_v29 = vadd.f32 %v7313_v5, %v1148_v21  ;;  %v5788_v8 = vpop.f32.mrb[66].mxu0 }
 0x1f9   : > { %v7446_v30 = vadd.f32 %v7317_v11, %v1157_v35  ;;  %v1160_v46 = vadd.f32 %v5788_v8, %v7325_v32  ;;  %v1151_v49 = vpop.f32.mrb[67].mxu0 }
 0x1fa   : > { %v7450_v13 = vadd.f32 %v7307_v48, %v1149_v29  ;;  %v1152_v58 = vadd.f32 %v7315_v10, %v1151_v49 }
 0x1fb   : > { %v7454_v23 = vadd.f32 %v7319_v14, %v1160_v46 }
 0x1fc   : > { %v7457_v27 = vadd.f32 %v7309_v63, %v1152_v58 }
 0x1fe   : > { %v5791_v51 = vpop.f32.mrb[68].mxu0 }
 0x1ff   : > { %v1173_v5 = vadd.f32 %v5791_v51, %v7343_v60  ;;  %v1164_v2 = vpop.f32.mrb[69].mxu0 }
 0x200   : > { %v1165_v11 = vadd.f32 %v7333_v33, %v1164_v2  ;;  %v5792_v35 = vpop.f32.mrb[70].mxu0 }
 0x201   : > { %v7462_v32 = vadd.f32 %v7337_v52, %v1173_v5  ;;  %v1176_v48 = vadd.f32 %v5792_v35, %v7345_v7  ;;  %v1167_v21 = vpop.f32.mrb[71].mxu0 }
 0x202   : > { %v7466_v10 = vadd.f32 %v7327_v34, %v1165_v11  ;;  %v1168_v14 = vadd.f32 %v7335_v37, %v1167_v21  ;;  %v7507_v11 = vld [vmem:[#allocation9 + $0x80] sm:$0xff]  }
 0x203   : > { %v7470_v63 = vadd.f32 %v7339_v26, %v1176_v48  ;;  %5961 = vmatprep.subr.bf16.mxu1 %v7507_v11 }
 0x204   : > { %v7473_v60 = vadd.f32 %v7329_v20, %v1168_v14 }
 0x206   : > { %v5795_v29 = vpop.f32.mrb[72].mxu0 }
 0x207   : > { %v1189_v33 = vadd.f32 %v5795_v29, %v7359_v53  ;;  %v1180_v8 = vpop.f32.mrb[73].mxu0 }
 0x208   : > { %v1181_v52 = vadd.f32 %v7351_v25, %v1180_v8  ;;  %v5796_v46 = vpop.f32.mrb[74].mxu0 }
 0x209   : > { %v7478_v7 = vadd.f32 %v7355_v38, %v1189_v33  ;;  %v1192_v34 = vadd.f32 %v5796_v46, %v7361_v55  ;;  %v1183_v49 = vpop.f32.mrb[75].mxu0 }
 0x20a   : > { %v7482_v37 = vadd.f32 %v7347_v9, %v1181_v52  ;;  %v1184_v26 = vadd.f32 %v7353_v36, %v1183_v49  ;;  %v8345_v49 = vld [vmem:[#allocation14_spill] sm:$0xff] }
 0x20b   : > { %v7486_v20 = vadd.f32 %v7357_v45, %v1192_v34 }
 0x20c   : > { %v7489_v53 = vadd.f32 %v7349_v16, %v1184_v26 }
 0x20e   : > { %v5799_v58 = vpop.f32.mrb[76].mxu0 }
 0x20f   : > { %v1205_v25 = vadd.f32 %v5799_v58, %v7375_v47  ;;  %v1196_v51 = vpop.f32.mrb[77].mxu0 }
 0x210   : > { %v1197_v38 = vadd.f32 %v7367_v12, %v1196_v51  ;;  %v5800_v5 = vpop.f32.mrb[78].mxu0 }
 0x211   : > { %v7494_v55 = vadd.f32 %v7371_v18, %v1205_v25  ;;  %v1208_v9 = vadd.f32 %v5800_v5, %v7377_v54  ;;  %v1199_v2 = vpop.f32.mrb[79].mxu0 }
 0x212   : > { %v7498_v36 = vadd.f32 %v7363_v57, %v1197_v38  ;;  %v1200_v45 = vadd.f32 %v7369_v15, %v1199_v2 }
 0x213   : > { %v7502_v16 = vadd.f32 %v7373_v17, %v1208_v9  ;;  %v8348_v9 = vld [vmem:[#allocation17_spill] sm:$0xff] }
 0x214   : > { %v7505_v47 = vadd.f32 %v7365_v0, %v1200_v45  ;;  %v8349_v45 = vld [vmem:[#allocation20_spill] sm:$0xff] }
 0x216   : > { %v5803_v12 = vpop.f32.mrb[80].mxu0 }
 0x217   : > { %v1221_v18 = vadd.f32 %v5803_v12, %v7391_v3  ;;  %v1212_v54 = vpop.f32.mrb[81].mxu0 }
 0x218   : > { %v1213_v35 = vadd.f32 %v7383_v19, %v1212_v54  ;;  %v5804_v57 = vpop.f32.mrb[82].mxu0 }
 0x219   : > { %v7513_v48 = vadd.f32 %v7387_v43, %v1221_v18  ;;  %v1224_v15 = vadd.f32 %v5804_v57, %v7393_v24  ;;  %v1215_v17 = vpop.f32.mrb[83].mxu0  ;;  %v8350_v18 = vld [vmem:[#allocation22_spill] sm:$0xff] }
 0x21a   : > { %v7517_v0 = vadd.f32 %v7379_v56, %v1213_v35  ;;  %v1216_v21 = vadd.f32 %v7385_v40, %v1215_v17  ;;  %v8351_v35 = vld [vmem:[#allocation18_spill] sm:$0xff] }
 0x21b   : > { %v7521_v14 = vadd.f32 %v7389_v59, %v1224_v15  ;;  %v8343_v59 = vld [vmem:[#allocation15_spill] sm:$0xff]  ;;  %v6552_v57 = vld [vmem:[#allocation9 + $0x40] sm:$0xff]  }
 0x21c   : > { %v7524_v3 = vadd.f32 %v7381_v6, %v1216_v21  ;;  %v8344_v6 = vld [vmem:[#allocation16_spill] sm:$0xff]  ;;  %5497 = vmatprep.subr.bf16.mxu0 %v6552_v57 }
 0x21e   : > { %v5807_v29 = vpop.f32.mrb[84].mxu0 }
 0x21f   : > { %v1237_v19 = vadd.f32 %v5807_v29, %v7407_v62  ;;  %v1228_v33 = vpop.f32.mrb[85].mxu0  ;;  %v8352_v29 = vld [vmem:[#allocation25_spill] sm:$0xff] }
 0x220   : > { %v1229_v43 = vadd.f32 %v7399_v1, %v1228_v33  ;;  %v5808_v8 = vpop.f32.mrb[86].mxu0 }
 0x221   : > { %v7529_v24 = vadd.f32 %v7403_v39, %v1237_v19  ;;  %v1240_v56 = vadd.f32 %v5808_v8, %v7409_v28  ;;  %v1231_v52 = vpop.f32.mrb[87].mxu0  ;;  %v8346_v39 = vld [vmem:[#allocation19_spill] sm:$0xff]  ;;  %v8347_v28 = vld [vmem:[#allocation21_spill] sm:$0xff] }
 0x222   : > { %v7533_v40 = vadd.f32 %v7395_v31, %v1229_v43  ;;  %v1232_v46 = vadd.f32 %v8343_v59, %v1231_v52  ;;  %v8353_v52 = vld [vmem:[#allocation23_spill] sm:$0xff] }
 0x223   : > { %v7537_v34 = vadd.f32 %v8344_v6, %v1240_v56 }
 0x224   : > { %v7540_v62 = vadd.f32 %v8345_v49, %v1232_v46 }
 0x226   : > { %v5811_v26 = vpop.f32.mrb[88].mxu0 }
 0x227   : > { %v1253_v1 = vadd.f32 %v5811_v26, %v7423_v42  ;;  %v1244_v58 = vpop.f32.mrb[89].mxu0  ;;  %v8354_v26 = vld [vmem:[#allocation24_spill] sm:$0xff] }
 0x228   : > { %v1245_v25 = vadd.f32 %v8346_v39, %v1244_v58  ;;  %v5812_v51 = vpop.f32.mrb[90].mxu0 }
 0x229   : > { %v7545_v38 = vadd.f32 %v8347_v28, %v1253_v1  ;;  %v1256_v31 = vadd.f32 %v5812_v51, %v7425_v50  ;;  %v1247_v5 = vpop.f32.mrb[91].mxu0 }
 0x22a   : > { %v7549_v2 = vadd.f32 %v8348_v9, %v1245_v25  ;;  %v1248_v12 = vadd.f32 %v8349_v45, %v1247_v5 }
 0x22b   : > { %v7553_v54 = vadd.f32 %v8350_v18, %v1256_v31 }
 0x22c   : > { %v7556_v42 = vadd.f32 %v8351_v35, %v1248_v12 }
 0x22e   : > { %v5815_v15 = vpop.f32.mrb[92].mxu0 }
 0x22f   : > { %v1269_v17 = vadd.f32 %v5815_v15, %v7439_v4  ;;  %v1260_v21 = vpop.f32.mrb[93].mxu0 }
 0x230   : > { %v1261_v50 = vadd.f32 %v8352_v29, %v1260_v21  ;;  %v5816_v19 = vpop.f32.mrb[94].mxu0 }
 0x231   : > { %v7561_v33 = vadd.f32 %v7435_v61, %v1269_v17  ;;  %v1272_v43 = vadd.f32 %v5816_v19, %v7441_v22  ;;  %v1263_v8 = vpop.f32.mrb[95].mxu0  ;;  %v5883_v56 = vpop.f32.mrb[64].mxu1 }
 0x232   : > { %v7565_v59 = vadd.f32 %v8353_v52, %v1261_v50  ;;  %v1264_v46 = vadd.f32 %v7433_v41, %v1263_v8  ;;  %v2274_v6 = vpop.f32.mrb[65].mxu1 }
 0x233   : > { %v7569_v4 = vadd.f32 %v7437_v44, %v1272_v43  ;;  %v5884_v49 = vpop.f32.mrb[66].mxu1  ;;  %v7580_v44 = vld [vmem:[%s8314_s2] ss:$0 sm:$0xff] }
 0x234   : > { %v7572_v1 = vadd.f32 %v8354_v26, %v1264_v46  ;;  %v2277_v58 = vpop.f32.mrb[67].mxu1 }
 0x236   : > { %v5241_v61 = vpop.f32.mrb[96].mxu0 }
 0x237   : > { %v5242_v39 = vpop.f32.mrb[97].mxu0 }
 0x238   : > { %v5243_v25 = vadd.f32 %v5242_v39, %v5241_v61  ;;  %v5244_v22 = vpop.f32.mrb[98].mxu0 }
 0x239   : > { %v5245_v51 = vpop.f32.mrb[99].mxu0  ;;  %v7574_v28 = vpop.f32.mrb[68].mxu1 }
 0x23a   : > { %v6063_v31 = vadd.f32 %v5243_v25, %v7450_v13  ;;  %v5246_v5 = vadd.f32 %v5245_v51, %v5244_v22  ;;  %v2290_v41 = vpop.f32.mrb[69].mxu1 }
 0x23b   : > { %v7582_v9 = vpop.f32.mrb[70].mxu1 }
 0x23c   : > { %v6064_v45 = vadd.f32 %v6063_v31, %v2274_v6  ;;  %v6071_v12 = vadd.f32 %v5246_v5, %v7457_v27  ;;  %v2293_v18 = vpop.f32.mrb[71].mxu1 }
 0x23e   : > { %v2440_v35 = vadd.f32 %v6064_v45, %v7580_v44  ;;  %v6072_v57 = vadd.f32 %v6071_v12, %v2277_v58  ;;  %v5247_v15 = vpop.f32.mrb[100].mxu0 }
 0x23f   : > { %v5248_v17 = vpop.f32.mrb[101].mxu0 }
 0x240   : > { %v2472_v21 = vmax.f32 %v2440_v35, 0.0  ;;  %v2441_v13 = vadd.f32 %v6072_v57, %v7580_v44  ;;  %v5249_v29 = vadd.f32 %v5248_v17, %v5247_v15  ;;  %v5250_v50 = vpop.f32.mrb[102].mxu0 }
 0x241   : > { %v5251_v19 = vpop.f32.mrb[103].mxu0  ;;  %v7587_v43 = vpop.f32.mrb[72].mxu1 }
 0x242   : > { %2505 = vst [vmem:[#allocation3 + $0x19] sm:$0xff] %v2472_v21  ;;  %v2473_v8 = vmax.f32 %v2441_v13, 0.0  ;;  %v6059_v52 = vadd.f32 %v5249_v29, %v7446_v30  ;;  %v5252_v46 = vadd.f32 %v5251_v19, %v5250_v50  ;;  %v7590_v27 = vpop.f32.mrb[73].mxu1 }
 0x243   : > { %v7592_v6 = vpop.f32.mrb[74].mxu1 }
 0x244   : > { %2506 = vst [vmem:[#allocation3 + $0x21] sm:$0xff] %v2473_v8  ;;  %v6060_v26 = vadd.f32 %v6059_v52, %v5883_v56  ;;  %v6067_v58 = vadd.f32 %v5252_v46, %v7454_v23  ;;  %v7595_v61 = vpop.f32.mrb[75].mxu1  ;;  %v2826_v39 = vpack.c.bf16 %v2473_v8, %v2472_v21 }
 0x246   : > { %v2442_v25 = vadd.f32 %v6060_v26, %v7580_v44  ;;  %v6068_v22 = vadd.f32 %v6067_v58, %v5884_v49  ;;  %v5253_v51 = vpop.f32.mrb[104].mxu0  ;;  %3098 = vmatprep.mubr.bf16.mxu0 %v2826_v39  ;;  %v6553_v49 = vld [vmem:[#allocation9] sm:$0xff]   ;;  %v6554_v39 = vld [vmem:[#allocation9 + $0x48] sm:$0xff]  }
 0x247   : > { %v5254_v31 = vpop.f32.mrb[105].mxu0 }
 0x248   : > { %v2474_v5 = vmax.f32 %v2442_v25, 0.0  ;;  %v2443_v30 = vadd.f32 %v6068_v22, %v7580_v44  ;;  %v5255_v45 = vadd.f32 %v5254_v31, %v5253_v51  ;;  %v5256_v12 = vpop.f32.mrb[106].mxu0 }
 0x249   : > { %v5257_v35 = vpop.f32.mrb[107].mxu0  ;;  %v7599_v57 = vpop.f32.mrb[76].mxu1  ;;  %v2729_v17 = vld [vmem:[#allocation3 + $0x18] sm:$0xff] }
 0x24a   : > { %2507 = vst [vmem:[#allocation3 + $0x31] sm:$0xff] %v2474_v5  ;;  %v2475_v56 = vmax.f32 %v2443_v30, 0.0  ;;  %v6079_v23 = vadd.f32 %v5255_v45, %v7466_v10  ;;  %v5258_v15 = vadd.f32 %v5257_v35, %v5256_v12  ;;  %v7602_v21 = vpop.f32.mrb[77].mxu1  ;;  %v6555_v30 = vld [vmem:[#allocation9 + $0x8] sm:$0xff]   ;;  %v6557_v35 = vld [vmem:[#allocation9 + $0x50] sm:$0xff]  }
 0x24b   : > { %v2793_v13 = vld [vmem:[#allocation3 + $0x1a] sm:$0xff]  ;;  %v2794_v29 = vld [vmem:[#allocation3 + $0x22] sm:$0xff]  ;;  %v7604_v19 = vpop.f32.mrb[78].mxu1 }
 0x24c   : > { %v2730_v50 = vld [vmem:[#allocation3 + $0x20] sm:$0xff]  ;;  %2508 = vst [vmem:[#allocation3 + $0x39] sm:$0xff] %v2475_v56  ;;  %v6080_v8 = vadd.f32 %v6079_v23, %v2290_v41  ;;  %v6087_v52 = vadd.f32 %v5258_v15, %v7473_v60  ;;  %v2827_v46 = vpack.c.bf16 %v2794_v29, %v2793_v13  ;;  %v7607_v58 = vpop.f32.mrb[79].mxu1  ;;  %v2829_v10 = vpack.c.bf16 %v2475_v56, %v2474_v5 }
 0x24d   : > { %v2825_v26 = vpack.c.bf16 %v2730_v50, %v2729_v17 }
 0x24e   : > { %v2444_v25 = vadd.f32 %v6080_v8, %v7580_v44  ;;  %v6088_v22 = vadd.f32 %v6087_v52, %v2293_v18  ;;  %v5259_v51 = vpop.f32.mrb[108].mxu0  ;;  %5929 = vmatprep.mubr.bf16.mxu1 %v2827_v46 }
 0x24f   : > { %3099 = vmatmul.mubr.bf16.vlgmr.msra.gmra.mrb[160].mxu0 %v2825_v26  ;;  %v5260_v31 = vpop.f32.mrb[109].mxu0 }
 0x250   : > { %3106 = vmatprep.mubr.bf16.mxu0 %v2829_v10  ;;  %5498 = vmatpush3.bf16.msra.mxu0 %v6553_v49  ;;  %v2476_v45 = vmax.f32 %v2444_v25, 0.0  ;;  %v2445_v41 = vadd.f32 %v6088_v22, %v7580_v44  ;;  %v5261_v60 = vadd.f32 %v5260_v31, %v5259_v51  ;;  %v5262_v12 = vpop.f32.mrb[110].mxu0  ;;  %v6558_v25 = vld [vmem:[#allocation9 + $0x10] sm:$0xff]   ;;  %v6559_v51 = vld [vmem:[#allocation9 + $0x58] sm:$0xff]  }
 0x251   : > { %5499 = vmatprep.subr.bf16.mxu0 %v6554_v39  ;;  %v5263_v23 = vpop.f32.mrb[111].mxu0  ;;  %v7611_v15 = vpop.f32.mrb[80].mxu1  ;;  %v2731_v17 = vld [vmem:[#allocation3 + $0x30] sm:$0xff] }
 0x252   : > { %2509 = vst [vmem:[#allocation3 + $0x49] sm:$0xff] %v2476_v45  ;;  %v2477_v5 = vmax.f32 %v2445_v41, 0.0  ;;  %v6075_v18 = vadd.f32 %v5261_v60, %v7462_v32  ;;  %v5264_v56 = vadd.f32 %v5263_v23, %v5262_v12  ;;  %v7614_v13 = vpop.f32.mrb[81].mxu1  ;;  %v6548_v32 = vld [vmem:[#allocation9 + $0x88] sm:$0xff]  }
 0x253   : > { %v2795_v49 = vld [vmem:[#allocation3 + $0x32] sm:$0xff]  ;;  %v2796_v29 = vld [vmem:[#allocation3 + $0x3a] sm:$0xff]  ;;  %v7616_v8 = vpop.f32.mrb[82].mxu1 }
 0x254   : > { %v2732_v50 = vld [vmem:[#allocation3 + $0x38] sm:$0xff]  ;;  %5500 = vmatpush3.bf16.msra.mxu0 %v6555_v30  ;;  %2510 = vst [vmem:[#allocation3 + $0x51] sm:$0xff] %v2477_v5  ;;  %v6076_v52 = vadd.f32 %v6075_v18, %v7574_v28  ;;  %v6083_v46 = vadd.f32 %v5264_v56, %v7470_v63  ;;  %v7620_v26 = vpack.c.bf16 %v2796_v29, %v2795_v49  ;;  %v7622_v10 = vpop.f32.mrb[83].mxu1 }
 0x255   : > { %v2828_v39 = vpack.c.bf16 %v2732_v50, %v2731_v17  ;;  %5501 = vmatprep.subr.bf16.mxu0 %v6557_v35  ;;  %v2832_v22 = vpack.c.bf16 %v2477_v5, %v2476_v45  ;;  %v6549_v45 = vld [vmem:[#allocation9 + $0x90] sm:$0xff]  }
 0x256   : > { %v2446_v31 = vadd.f32 %v6076_v52, %v7580_v44  ;;  %v6084_v41 = vadd.f32 %v6083_v46, %v7582_v9  ;;  %v5265_v30 = vpop.f32.mrb[112].mxu0  ;;  %5930 = vmatmul.mubr.bf16.vlgmr.msra.gmra.mrb[96].mxu1 %v7620_v26  ;;  %v6560_v9 = vld [vmem:[#allocation9 + $0x18] sm:$0xff]  }
 0x257   : > { %3107 = vmatmul.mubr.bf16.gmra.mrb[164].mxu0 %v2828_v39  ;;  %v5266_v28 = vpop.f32.mrb[113].mxu0  ;;  %5962 = vmatpush3.bf16.msra.mxu1 %v7507_v11 }
 0x258   : > { %3114 = vmatprep.mubr.bf16.mxu0 %v2832_v22  ;;  %v2478_v63 = vmax.f32 %v2446_v31, 0.0  ;;  %v2447_v60 = vadd.f32 %v6084_v41, %v7580_v44  ;;  %v5267_v12 = vadd.f32 %v5266_v28, %v5265_v30  ;;  %v5268_v35 = vpop.f32.mrb[114].mxu0  ;;  %5963 = vmatprep.subr.bf16.mxu1 %v6548_v32  ;;  %v6562_v41 = vld [vmem:[#allocation9 + $0x60] sm:$0xff]  }
 0x259   : > { %5502 = vmatpush3.bf16.msra.mxu0 %v6558_v25  ;;  %v5269_v23 = vpop.f32.mrb[115].mxu0  ;;  %v7629_v5 = vpop.f32.mrb[84].mxu1  ;;  %v2733_v49 = vld [vmem:[#allocation3 + $0x48] sm:$0xff]  ;;  %v6563_v28 = vld [vmem:[#allocation9 + $0x20] sm:$0xff]  }
 0x25a   : > { %5503 = vmatprep.subr.bf16.mxu0 %v6559_v51  ;;  %2511 = vst [vmem:[#allocation3 + $0x61] sm:$0xff] %v2478_v63  ;;  %v2479_v18 = vmax.f32 %v2447_v60, 0.0  ;;  %v6095_v56 = vadd.f32 %v5267_v12, %v7482_v37  ;;  %v5270_v17 = vadd.f32 %v5269_v23, %v5268_v35  ;;  %v7632_v11 = vpop.f32.mrb[85].mxu1  ;;  %v6550_v37 = vld [vmem:[#allocation9 + $0x98] sm:$0xff]  }
 0x25b   : > { %v2797_v29 = vld [vmem:[#allocation3 + $0x4a] sm:$0xff]  ;;  %v2798_v50 = vld [vmem:[#allocation3 + $0x52] sm:$0xff]  ;;  %v7634_v46 = vpop.f32.mrb[86].mxu1  ;;  %5964 = vmatpush3.bf16.msra.mxu1 %v6548_v32 }
 0x25c   : > { %v2734_v52 = vld [vmem:[#allocation3 + $0x50] sm:$0xff]  ;;  %2512 = vst [vmem:[#allocation3 + $0x69] sm:$0xff] %v2479_v18  ;;  %v6096_v39 = vadd.f32 %v6095_v56, %v7590_v27  ;;  %v6103_v25 = vadd.f32 %v5270_v17, %v7489_v53  ;;  %v7638_v22 = vpack.c.bf16 %v2798_v50, %v2797_v29  ;;  %v7640_v31 = vpop.f32.mrb[87].mxu1  ;;  %5965 = vmatprep.subr.bf16.mxu1 %v6549_v45  ;;  %v6564_v53 = vld [vmem:[#allocation9 + $0x68] sm:$0xff]  }
 0x25d   : > { %v2831_v51 = vpack.c.bf16 %v2734_v52, %v2733_v49  ;;  %v2835_v30 = vpack.c.bf16 %v2479_v18, %v2478_v63  ;;  %5504 = vmatpush3.bf16.msra.mxu0 %v6560_v9  ;;  %v6551_v63 = vld [vmem:[#allocation9 + $0xa0] sm:$0xff]  }
 0x25e   : > { %v2448_v60 = vadd.f32 %v6096_v39, %v7580_v44  ;;  %v6104_v32 = vadd.f32 %v6103_v25, %v7595_v61  ;;  %v5271_v12 = vpop.f32.mrb[116].mxu0  ;;  %5933 = vmatprep.mubr.bf16.mxu1 %v7638_v22  ;;  %5505 = vmatprep.subr.bf16.mxu0 %v6562_v41  ;;  %v6565_v61 = vld [vmem:[#allocation9 + $0x28] sm:$0xff]  }
 0x25f   : > { %3115 = vmatmul.mubr.bf16.gmra.mrb[168].mxu0 %v2831_v51  ;;  %v5272_v27 = vpop.f32.mrb[117].mxu0  ;;  %5966 = vmatpush3.bf16.msra.mxu1 %v6549_v45 }
 0x260   : > { %3122 = vmatprep.mubr.bf16.mxu0 %v2835_v30  ;;  %v2480_v35 = vmax.f32 %v2448_v60, 0.0  ;;  %v2449_v23 = vadd.f32 %v6104_v32, %v7580_v44  ;;  %v5273_v56 = vadd.f32 %v5272_v27, %v5271_v12  ;;  %v5274_v17 = vpop.f32.mrb[118].mxu0  ;;  %5967 = vmatprep.subr.bf16.mxu1 %v6550_v37  ;;  %v6556_v12 = vld [vmem:[#allocation9 + $0xa8] sm:$0xff]   ;;  %v6567_v27 = vld [vmem:[#allocation9 + $0x70] sm:$0xff]  }
 0x261   : > { %v5275_v9 = vpop.f32.mrb[119].mxu0  ;;  %v7646_v18 = vpop.f32.mrb[88].mxu1  ;;  %5506 = vmatpush3.bf16.msra.mxu0 %v6563_v28  ;;  %v2735_v52 = vld [vmem:[#allocation3 + $0x60] sm:$0xff] }
 0x262   : > { %2513 = vst [vmem:[#allocation3 + $0x79] sm:$0xff] %v2480_v35  ;;  %v2481_v49 = vmax.f32 %v2449_v23, 0.0  ;;  %v6091_v29 = vadd.f32 %v5273_v56, %v7478_v7  ;;  %v5276_v50 = vadd.f32 %v5275_v9, %v5274_v17  ;;  %v7649_v45 = vpop.f32.mrb[89].mxu1  ;;  %5507 = vmatprep.subr.bf16.mxu0 %v6564_v53  ;;  %v6568_v23 = vld [vmem:[#allocation9 + $0x30] sm:$0xff]  }
 0x263   : > { %v2799_v39 = vld [vmem:[#allocation3 + $0x62] sm:$0xff]  ;;  %v2800_v25 = vld [vmem:[#allocation3 + $0x6a] sm:$0xff]  ;;  %v7651_v30 = vpop.f32.mrb[90].mxu1  ;;  %5968 = vmatpush3.bf16.msra.mxu1 %v6550_v37 }
 0x264   : > { %v2736_v51 = vld [vmem:[#allocation3 + $0x68] sm:$0xff]  ;;  %2514 = vst [vmem:[#allocation3 + $0x81] sm:$0xff] %v2481_v49  ;;  %v6092_v41 = vadd.f32 %v6091_v29, %v7587_v43  ;;  %v6099_v28 = vadd.f32 %v5276_v50, %v7486_v20  ;;  %v7655_v60 = vpack.c.bf16 %v2800_v25, %v2799_v39  ;;  %v7657_v7 = vpop.f32.mrb[91].mxu1  ;;  %5969 = vmatprep.subr.bf16.mxu1 %v6551_v63 }
 0x265   : > { %v2834_v32 = vpack.c.bf16 %v2736_v51, %v2735_v52  ;;  %v2838_v53 = vpack.c.bf16 %v2481_v49, %v2480_v35  ;;  %5508 = vmatpush3.bf16.msra.mxu0 %v6565_v61  ;;  %v6569_v20 = vld [vmem:[#allocation9 + $0x78] sm:$0xff]   ;;  %v6561_v35 = vld [vmem:[#allocation9 + $0xb0] sm:$0xff]  }
 0x266   : > { %v2450_v56 = vadd.f32 %v6092_v41, %v7580_v44  ;;  %v6100_v37 = vadd.f32 %v6099_v28, %v7592_v6  ;;  %v5277_v17 = vpop.f32.mrb[120].mxu0  ;;  %5934 = vmatmul.mubr.bf16.gmra.mrb[100].mxu1 %v7655_v60  ;;  %5509 = vmatprep.subr.bf16.mxu0 %v6567_v27  ;;  %v6570_v6 = vld [vmem:[#allocation9 + $0x38] sm:$0xff]  }
 0x267   : > { %3123 = vmatmul.mubr.bf16.gmra.mrb[172].mxu0 %v2834_v32  ;;  %v5278_v43 = vpop.f32.mrb[121].mxu0  ;;  %5970 = vmatpush3.bf16.msra.mxu1 %v6551_v63 }
 0x268   : > { %3130 = vmatprep.mubr.bf16.mxu0 %v2838_v53  ;;  %v2482_v9 = vmax.f32 %v2450_v56, 0.0  ;;  %v2451_v29 = vadd.f32 %v6100_v37, %v7580_v44  ;;  %v5279_v50 = vadd.f32 %v5278_v43, %v5277_v17  ;;  %v5280_v52 = vpop.f32.mrb[122].mxu0  ;;  %5971 = vmatprep.subr.bf16.mxu1 %v6556_v12  ;;  %v6566_v43 = vld [vmem:[#allocation9 + $0xb8] sm:$0xff]  }
 0x269   : > { %v5281_v61 = vpop.f32.mrb[123].mxu0  ;;  %v7663_v49 = vpop.f32.mrb[92].mxu1  ;;  %5510 = vmatpush3.bf16.msra.mxu0 %v6568_v23  ;;  %v2737_v41 = vld [vmem:[#allocation3 + $0x78] sm:$0xff] }
 0x26a   : > { %2515 = vst [vmem:[#allocation3 + $0x91] sm:$0xff] %v2482_v9  ;;  %v2483_v39 = vmax.f32 %v2451_v29, 0.0  ;;  %v6111_v25 = vadd.f32 %v5279_v50, %v7498_v36  ;;  %v5282_v51 = vadd.f32 %v5281_v61, %v5280_v52  ;;  %v7666_v63 = vpop.f32.mrb[93].mxu1  ;;  %5511 = vmatprep.subr.bf16.mxu0 %v6569_v20 }
 0x26b   : > { %v2801_v28 = vld [vmem:[#allocation3 + $0x7a] sm:$0xff]  ;;  %v2802_v32 = vld [vmem:[#allocation3 + $0x82] sm:$0xff]  ;;  %v7668_v56 = vpop.f32.mrb[94].mxu1  ;;  %5972 = vmatpush3.bf16.msra.mxu1 %v6556_v12 }
 0x26c   : > { %v2738_v53 = vld [vmem:[#allocation3 + $0x80] sm:$0xff]  ;;  %2516 = vst [vmem:[#allocation3 + $0x99] sm:$0xff] %v2483_v39  ;;  %v6112_v27 = vadd.f32 %v6111_v25, %v7602_v21  ;;  %v6119_v23 = vadd.f32 %v5282_v51, %v7505_v47  ;;  %v7672_v37 = vpack.c.bf16 %v2802_v32, %v2801_v28  ;;  %v7674_v36 = vpop.f32.mrb[95].mxu1  ;;  %5973 = vmatprep.subr.bf16.mxu1 %v6561_v35  ;;  %v6571_v51 = vld [vmem:[#allocation9 + $0x1c0] sm:$0xff]  }
 0x26d   : > { %v2837_v17 = vpack.c.bf16 %v2738_v53, %v2737_v41  ;;  %v2841_v29 = vpack.c.bf16 %v2483_v39, %v2482_v9  ;;  %5512 = vmatpush3.bf16.msra.mxu0 %v6570_v6 }
 0x26e   : > { %v2452_v20 = vadd.f32 %v6112_v27, %v7580_v44  ;;  %v6120_v50 = vadd.f32 %v6119_v23, %v7607_v58  ;;  %v5283_v52 = vpop.f32.mrb[124].mxu0  ;;  %5937 = vmatprep.mubr.bf16.mxu1 %v7672_v37 }
 0x26f   : > { %3131 = vmatmul.mubr.bf16.gmra.mrb[176].mxu0 %v2837_v17  ;;  %v5284_v21 = vpop.f32.mrb[125].mxu0  ;;  %5974 = vmatpush3.bf16.msra.mxu1 %v6561_v35 }
 0x270   : > { %3138 = vmatprep.mubr.bf16.mxu0 %v2841_v29  ;;  %v2484_v47 = vmax.f32 %v2452_v20, 0.0  ;;  %v2453_v12 = vadd.f32 %v6120_v50, %v7580_v44  ;;  %v5285_v61 = vadd.f32 %v5284_v21, %v5283_v52  ;;  %v5286_v25 = vpop.f32.mrb[126].mxu0  ;;  %5975 = vmatprep.subr.bf16.mxu1 %v6566_v43 }
 0x271   : > { %v5287_v9 = vpop.f32.mrb[127].mxu0  ;;  %v2739_v41 = vld [vmem:[#allocation3 + $0x90] sm:$0xff] }
 0x272   : > { %2517 = vst [vmem:[#allocation3 + $0xa9] sm:$0xff] %v2484_v47  ;;  %v2485_v6 = vmax.f32 %v2453_v12, 0.0  ;;  %v6107_v39 = vadd.f32 %v5285_v61, %v7494_v55  ;;  %v5288_v58 = vadd.f32 %v5287_v9, %v5286_v25 }
 0x273   : > { %v2803_v28 = vld [vmem:[#allocation3 + $0x92] sm:$0xff]  ;;  %v2804_v32 = vld [vmem:[#allocation3 + $0x9a] sm:$0xff]  ;;  %5976 = vmatpush3.bf16.msra.mxu1 %v6566_v43 }
 0x274   : > { %v2740_v53 = vld [vmem:[#allocation3 + $0x98] sm:$0xff]  ;;  %2518 = vst [vmem:[#allocation3 + $0xb1] sm:$0xff] %v2485_v6  ;;  %v6108_v35 = vadd.f32 %v6107_v39, %v7599_v57  ;;  %v6115_v27 = vadd.f32 %v5288_v58, %v7502_v16  ;;  %v7683_v23 = vpack.c.bf16 %v2804_v32, %v2803_v28  ;;  %5633 = vmatprep.subr.bf16.mxu1 %v6571_v51 }
 0x275   : > { %v7685_v17 = vpack.c.bf16 %v2740_v53, %v2739_v41  ;;  %v2844_v29 = vpack.c.bf16 %v2485_v6, %v2484_v47 }
 0x276   : > { %v2454_v20 = vadd.f32 %v6108_v35, %v7580_v44  ;;  %v6116_v55 = vadd.f32 %v6115_v27, %v7604_v19  ;;  %v5289_v50 = vpop.f32.mrb[128].mxu0  ;;  %5938 = vmatmul.mubr.bf16.gmra.mrb[104].mxu1 %v7683_v23 }
 0x277   : > { %3139 = vmatmul.mubr.bf16.gmra.mrb[180].mxu0 %v7685_v17  ;;  %v5290_v43 = vpop.f32.mrb[129].mxu0 }
 0x278   : > { %3146 = vmatprep.mubr.bf16.mxu0 %v2844_v29  ;;  %v2486_v57 = vmax.f32 %v2454_v20, 0.0  ;;  %v2455_v16 = vadd.f32 %v6116_v55, %v7580_v44  ;;  %v5291_v52 = vadd.f32 %v5290_v43, %v5289_v50  ;;  %v5292_v21 = vpop.f32.mrb[130].mxu0 }
 0x279   : > { %v5293_v12 = vpop.f32.mrb[131].mxu0  ;;  %v2741_v51 = vld [vmem:[#allocation3 + $0xa8] sm:$0xff] }
 0x27a   : > { %2519 = vst [vmem:[#allocation3 + $0xc1] sm:$0xff] %v2486_v57  ;;  %v2487_v61 = vmax.f32 %v2455_v16, 0.0  ;;  %v6127_v47 = vadd.f32 %v5291_v52, %v7517_v0  ;;  %v5294_v25 = vadd.f32 %v5293_v12, %v5292_v21 }
 0x27b   : > { %v2805_v19 = vld [vmem:[#allocation3 + $0xaa] sm:$0xff]  ;;  %v2806_v9 = vld [vmem:[#allocation3 + $0xb2] sm:$0xff] }
 0x27c   : > { %v2742_v6 = vld [vmem:[#allocation3 + $0xb0] sm:$0xff]  ;;  %2520 = vst [vmem:[#allocation3 + $0xc9] sm:$0xff] %v2487_v61  ;;  %v6128_v39 = vadd.f32 %v6127_v47, %v7614_v13  ;;  %v6135_v58 = vadd.f32 %v5294_v25, %v7524_v3  ;;  %v7695_v41 = vpack.c.bf16 %v2806_v9, %v2805_v19  ;;  %v2847_v32 = vpack.c.bf16 %v2487_v61, %v2486_v57 }
 0x27d   : > { %v7697_v28 = vpack.c.bf16 %v2742_v6, %v2741_v51 }
 0x27e   : > { %v2456_v53 = vadd.f32 %v6128_v39, %v7580_v44  ;;  %v6136_v35 = vadd.f32 %v6135_v58, %v7622_v10  ;;  %v5295_v0 = vpop.f32.mrb[132].mxu0  ;;  %5941 = vmatprep.mubr.bf16.mxu1 %v7695_v41 }
 0x27f   : > { %3147 = vmatmul.mubr.bf16.gmra.mrb[184].mxu0 %v7697_v28  ;;  %v5296_v27 = vpop.f32.mrb[133].mxu0 }
 0x280   : > { %3154 = vmatprep.mubr.bf16.mxu0 %v2847_v32  ;;  %v2488_v29 = vmax.f32 %v2456_v53, 0.0  ;;  %v2457_v13 = vadd.f32 %v6136_v35, %v7580_v44  ;;  %v5297_v3 = vadd.f32 %v5296_v27, %v5295_v0  ;;  %v5298_v20 = vpop.f32.mrb[134].mxu0 }
 0x281   : > { %v5299_v55 = vpop.f32.mrb[135].mxu0  ;;  %v2743_v16 = vld [vmem:[#allocation3 + $0xc0] sm:$0xff] }
 0x282   : > { %2521 = vst [vmem:[#allocation3 + $0xd9] sm:$0xff] %v2488_v29  ;;  %v2489_v50 = vmax.f32 %v2457_v13, 0.0  ;;  %v6123_v43 = vadd.f32 %v5297_v3, %v7513_v48  ;;  %v5300_v57 = vadd.f32 %v5299_v55, %v5298_v20 }
 0x283   : > { %v2807_v10 = vld [vmem:[#allocation3 + $0xc2] sm:$0xff]  ;;  %v2808_v52 = vld [vmem:[#allocation3 + $0xca] sm:$0xff] }
 0x284   : > { %v2744_v21 = vld [vmem:[#allocation3 + $0xc8] sm:$0xff]  ;;  %2522 = vst [vmem:[#allocation3 + $0xe1] sm:$0xff] %v2489_v50  ;;  %v6124_v12 = vadd.f32 %v6123_v43, %v7611_v15  ;;  %v6131_v61 = vadd.f32 %v5300_v57, %v7521_v14  ;;  %v7707_v47 = vpack.c.bf16 %v2808_v52, %v2807_v10  ;;  %v2850_v51 = vpack.c.bf16 %v2489_v50, %v2488_v29 }
 0x285   : > { %v7709_v25 = vpack.c.bf16 %v2744_v21, %v2743_v16 }
 0x286   : > { %v2458_v19 = vadd.f32 %v6124_v12, %v7580_v44  ;;  %v6132_v9 = vadd.f32 %v6131_v61, %v7616_v8  ;;  %v5301_v48 = vpop.f32.mrb[136].mxu0  ;;  %5942 = vmatmul.mubr.bf16.gmra.mrb[108].mxu1 %v7707_v47 }
 0x287   : > { %3155 = vmatmul.mubr.bf16.gmra.mrb[188].mxu0 %v7709_v25  ;;  %v5302_v6 = vpop.f32.mrb[137].mxu0 }
 0x288   : > { %3162 = vmatprep.mubr.bf16.mxu0 %v2850_v51  ;;  %v2490_v39 = vmax.f32 %v2458_v19, 0.0  ;;  %v2459_v15 = vadd.f32 %v6132_v9, %v7580_v44  ;;  %v5303_v14 = vadd.f32 %v5302_v6, %v5301_v48  ;;  %v5304_v58 = vpop.f32.mrb[138].mxu0 }
 0x289   : > { %v5305_v32 = vpop.f32.mrb[139].mxu0  ;;  %v2745_v27 = vld [vmem:[#allocation3 + $0xd8] sm:$0xff] }
 0x28a   : > { %2523 = vst [vmem:[#allocation3 + $0xf1] sm:$0xff] %v2490_v39  ;;  %v2491_v53 = vmax.f32 %v2459_v15, 0.0  ;;  %v6143_v35 = vadd.f32 %v5303_v14, %v7533_v40  ;;  %v5306_v0 = vadd.f32 %v5305_v32, %v5304_v58 }
 0x28b   : > { %v2809_v8 = vld [vmem:[#allocation3 + $0xda] sm:$0xff]  ;;  %v2810_v29 = vld [vmem:[#allocation3 + $0xe2] sm:$0xff] }
 0x28c   : > { %v2746_v13 = vld [vmem:[#allocation3 + $0xe0] sm:$0xff]  ;;  %2524 = vst [vmem:[#allocation3 + $0xf9] sm:$0xff] %v2491_v53  ;;  %v6144_v3 = vadd.f32 %v6143_v35, %v7632_v11  ;;  %v6151_v20 = vadd.f32 %v5306_v0, %v7540_v62  ;;  %v7719_v55 = vpack.c.bf16 %v2810_v29, %v2809_v8  ;;  %v2853_v43 = vpack.c.bf16 %v2491_v53, %v2490_v39 }
 0x28d   : > { %v7721_v50 = vpack.c.bf16 %v2746_v13, %v2745_v27 }
 0x28e   : > { %v2460_v57 = vadd.f32 %v6144_v3, %v7580_v44  ;;  %v6152_v16 = vadd.f32 %v6151_v20, %v7640_v31  ;;  %v5307_v40 = vpop.f32.mrb[140].mxu0  ;;  %5945 = vmatprep.mubr.bf16.mxu1 %v7719_v55 }
 0x28f   : > { %3163 = vmatmul.mubr.bf16.gmra.mrb[192].mxu0 %v7721_v50  ;;  %v5308_v10 = vpop.f32.mrb[141].mxu0 }
 0x290   : > { %3170 = vmatprep.mubr.bf16.mxu0 %v2853_v43  ;;  %v2492_v52 = vmax.f32 %v2460_v57, 0.0  ;;  %v2461_v11 = vadd.f32 %v6152_v16, %v7580_v44  ;;  %v5309_v62 = vadd.f32 %v5308_v10, %v5307_v40  ;;  %v5310_v21 = vpop.f32.mrb[142].mxu0 }
 0x291   : > { %v5311_v12 = vpop.f32.mrb[143].mxu0  ;;  %v2747_v9 = vld [vmem:[#allocation3 + $0xf0] sm:$0xff] }
 0x292   : > { %2525 = vst [vmem:[#allocation3 + $0x109] sm:$0xff] %v2492_v52  ;;  %v2493_v61 = vmax.f32 %v2461_v11, 0.0  ;;  %v6139_v51 = vadd.f32 %v5309_v62, %v7529_v24  ;;  %v5312_v19 = vadd.f32 %v5311_v12, %v5310_v21 }
 0x293   : > { %v2811_v31 = vld [vmem:[#allocation3 + $0xf2] sm:$0xff]  ;;  %v2812_v48 = vld [vmem:[#allocation3 + $0xfa] sm:$0xff] }
 0x294   : > { %v2748_v6 = vld [vmem:[#allocation3 + $0xf8] sm:$0xff]  ;;  %2526 = vst [vmem:[#allocation3 + $0x111] sm:$0xff] %v2493_v61  ;;  %v6140_v39 = vadd.f32 %v6139_v51, %v7629_v5  ;;  %v6147_v15 = vadd.f32 %v5312_v19, %v7537_v34  ;;  %v7731_v14 = vpack.c.bf16 %v2812_v48, %v2811_v31  ;;  %v2856_v32 = vpack.c.bf16 %v2493_v61, %v2492_v52 }
 0x295   : > { %v7733_v58 = vpack.c.bf16 %v2748_v6, %v2747_v9 }
 0x296   : > { %v2462_v53 = vadd.f32 %v6140_v39, %v7580_v44  ;;  %v6148_v35 = vadd.f32 %v6147_v15, %v7634_v46  ;;  %v5313_v24 = vpop.f32.mrb[144].mxu0  ;;  %5946 = vmatmul.mubr.bf16.gmra.mrb[112].mxu1 %v7731_v14 }
 0x297   : > { %3171 = vmatmul.mubr.bf16.gmra.mrb[196].mxu0 %v7733_v58  ;;  %v5314_v0 = vpop.f32.mrb[145].mxu0 }
 0x298   : > { %3178 = vmatprep.mubr.bf16.mxu0 %v2856_v32  ;;  %v2494_v27 = vmax.f32 %v2462_v53, 0.0  ;;  %v2463_v5 = vadd.f32 %v6148_v35, %v7580_v44  ;;  %v5315_v34 = vadd.f32 %v5314_v0, %v5313_v24  ;;  %v5316_v8 = vpop.f32.mrb[146].mxu0 }
 0x299   : > { %v5317_v29 = vpop.f32.mrb[147].mxu0  ;;  %v2749_v43 = vld [vmem:[#allocation3 + $0x108] sm:$0xff] }
 0x29a   : > { %2527 = vst [vmem:[#allocation3 + $0x121] sm:$0xff] %v2494_v27  ;;  %v2495_v13 = vmax.f32 %v2463_v5, 0.0  ;;  %v6159_v3 = vadd.f32 %v5315_v34, %v7549_v2  ;;  %v5318_v20 = vadd.f32 %v5317_v29, %v5316_v8 }
 0x29b   : > { %v2813_v46 = vld [vmem:[#allocation3 + $0x10a] sm:$0xff]  ;;  %v2814_v57 = vld [vmem:[#allocation3 + $0x112] sm:$0xff] }
 0x29c   : > { %v2750_v16 = vld [vmem:[#allocation3 + $0x110] sm:$0xff]  ;;  %2528 = vst [vmem:[#allocation3 + $0x129] sm:$0xff] %v2495_v13  ;;  %v6160_v40 = vadd.f32 %v6159_v3, %v7649_v45  ;;  %v6167_v10 = vadd.f32 %v5318_v20, %v7556_v42  ;;  %v7743_v52 = vpack.c.bf16 %v2814_v57, %v2813_v46  ;;  %v2859_v62 = vpack.c.bf16 %v2495_v13, %v2494_v27 }
 0x29d   : > { %v7745_v11 = vpack.c.bf16 %v2750_v16, %v2749_v43 }
 0x29e   : > { %v2464_v21 = vadd.f32 %v6160_v40, %v7580_v44  ;;  %v6168_v12 = vadd.f32 %v6167_v10, %v7657_v7  ;;  %v5319_v2 = vpop.f32.mrb[148].mxu0  ;;  %5949 = vmatprep.mubr.bf16.mxu1 %v7743_v52 }
 0x29f   : > { %3179 = vmatmul.mubr.bf16.gmra.mrb[200].mxu0 %v7745_v11  ;;  %v5320_v61 = vpop.f32.mrb[149].mxu0 }
 0x2a0   : > { %3186 = vmatprep.mubr.bf16.mxu0 %v2859_v62  ;;  %v2496_v51 = vmax.f32 %v2464_v21, 0.0  ;;  %v2465_v45 = vadd.f32 %v6168_v12, %v7580_v44  ;;  %v5321_v42 = vadd.f32 %v5320_v61, %v5319_v2  ;;  %v5322_v19 = vpop.f32.mrb[150].mxu0 }
 0x2a1   : > { %v5323_v9 = vpop.f32.mrb[151].mxu0  ;;  %v2751_v39 = vld [vmem:[#allocation3 + $0x120] sm:$0xff] }
 0x2a2   : > { %2529 = vst [vmem:[#allocation3 + $0x139] sm:$0xff] %v2496_v51  ;;  %v2497_v31 = vmax.f32 %v2465_v45, 0.0  ;;  %v6155_v48 = vadd.f32 %v5321_v42, %v7545_v38  ;;  %v5324_v6 = vadd.f32 %v5323_v9, %v5322_v19 }
 0x2a3   : > { %v2815_v7 = vld [vmem:[#allocation3 + $0x122] sm:$0xff]  ;;  %v2816_v15 = vld [vmem:[#allocation3 + $0x12a] sm:$0xff] }
 0x2a4   : > { %v2752_v32 = vld [vmem:[#allocation3 + $0x128] sm:$0xff]  ;;  %2530 = vst [vmem:[#allocation3 + $0x141] sm:$0xff] %v2497_v31  ;;  %v6156_v53 = vadd.f32 %v6155_v48, %v7646_v18  ;;  %v6163_v35 = vadd.f32 %v5324_v6, %v7553_v54  ;;  %v7755_v24 = vpack.c.bf16 %v2816_v15, %v2815_v7  ;;  %v2862_v27 = vpack.c.bf16 %v2497_v31, %v2496_v51 }
 0x2a5   : > { %v7757_v0 = vpack.c.bf16 %v2752_v32, %v2751_v39 }
 0x2a6   : > { %v2466_v5 = vadd.f32 %v6156_v53, %v7580_v44  ;;  %v6164_v34 = vadd.f32 %v6163_v35, %v7651_v30  ;;  %v5325_v38 = vpop.f32.mrb[152].mxu0  ;;  %5950 = vmatmul.mubr.bf16.gmra.mrb[116].mxu1 %v7755_v24 }
 0x2a7   : > { %3187 = vmatmul.mubr.bf16.gmra.mrb[204].mxu0 %v7757_v0  ;;  %v5326_v8 = vpop.f32.mrb[153].mxu0 }
 0x2a8   : > { %3194 = vmatprep.mubr.bf16.mxu0 %v2862_v27  ;;  %v2498_v29 = vmax.f32 %v2466_v5, 0.0  ;;  %v2467_v18 = vadd.f32 %v6164_v34, %v7580_v44  ;;  %v5327_v54 = vadd.f32 %v5326_v8, %v5325_v38  ;;  %v5328_v13 = vpop.f32.mrb[154].mxu0 }
 0x2a9   : > { %v5329_v3 = vpop.f32.mrb[155].mxu0  ;;  %v2753_v30 = vld [vmem:[#allocation3 + $0x138] sm:$0xff] }
 0x2aa   : > { %2531 = vst [vmem:[#allocation3 + $0x151] sm:$0xff] %v2498_v29  ;;  %v7764_v20 = vmax.f32 %v2467_v18, 0.0  ;;  %v6175_v43 = vadd.f32 %v5327_v54, %v7565_v59  ;;  %v5330_v46 = vadd.f32 %v5329_v3, %v5328_v13 }
 0x2ab   : > { %v2817_v57 = vld [vmem:[#allocation3 + $0x13a] sm:$0xff]  ;;  %v2818_v16 = vld [vmem:[#allocation3 + $0x142] sm:$0xff] }
 0x2ac   : > { %v2754_v40 = vld [vmem:[#allocation3 + $0x140] sm:$0xff]  ;;  %2532 = vst [vmem:[#allocation3 + $0x159] sm:$0xff] %v7764_v20  ;;  %v6176_v10 = vadd.f32 %v6175_v43, %v7666_v63  ;;  %v6183_v62 = vadd.f32 %v5330_v46, %v7572_v1  ;;  %v7770_v21 = vpack.c.bf16 %v2818_v16, %v2817_v57  ;;  %v2865_v2 = vpack.c.bf16 %v7764_v20, %v2498_v29  ;;  %v2602_v46 = vld [vmem:[#allocation3 + $0xa] sm:$0xff] }
 0x2ad   : > { %v7772_v12 = vpack.c.bf16 %v2754_v40, %v2753_v30  ;;  %v2601_v43 = vld [vmem:[#allocation3 + $0x2] sm:$0xff] }
 0x2ae   : > { %v2468_v61 = vadd.f32 %v6176_v10, %v7580_v44  ;;  %v6184_v59 = vadd.f32 %v6183_v62, %v7674_v36  ;;  %v5331_v51 = vpop.f32.mrb[156].mxu0  ;;  %5953 = vmatprep.mubr.bf16.mxu1 %v7770_v21  ;;  %v2570_v30 = vld [vmem:[#allocation3 + $0x9] sm:$0xff]  ;;  %v2635_v62 = vpack.c.bf16 %v2602_v46, %v2601_v43 }
 0x2af   : > { %3195 = vmatmul.mubr.bf16.gmra.mrb[208].mxu0 %v7772_v12  ;;  %v5332_v45 = vpop.f32.mrb[157].mxu0  ;;  %v2575_v43 = vld [vmem:[#allocation3 + $0x49] sm:$0xff] }
 0x2b0   : > { %3202 = vmatprep.mubr.bf16.mxu0 %v2865_v2  ;;  %v2500_v63 = vmax.f32 %v2468_v61, 0.0  ;;  %v2469_v1 = vadd.f32 %v6184_v59, %v7580_v44  ;;  %v5333_v42 = vadd.f32 %v5332_v45, %v5331_v51  ;;  %v5334_v19 = vpop.f32.mrb[158].mxu0  ;;  %v2537_v51 = vld [vmem:[#allocation3] sm:$0xff]  ;;  %v6580_v46 = vld [vmem:[#allocation9 + $0x1a0] sm:$0xff]  }
 0x2b1   : > { %v5335_v9 = vpop.f32.mrb[159].mxu0  ;;  %v2755_v36 = vld [vmem:[#allocation3 + $0x150] sm:$0xff]  ;;  %v2603_v45 = vld [vmem:[#allocation3 + $0x1a] sm:$0xff] }
 0x2b2   : > { %2533 = vst [vmem:[#allocation3 + $0x169] sm:$0xff] %v2500_v63  ;;  %v7780_v31 = vmax.f32 %v2469_v1, 0.0  ;;  %v6171_v48 = vadd.f32 %v5333_v42, %v7561_v33  ;;  %v5336_v6 = vadd.f32 %v5335_v9, %v5334_v19  ;;  %v7805_v1 = vld [vmem:[#allocation2 + $0x8] sm:$0xff]  ;;  %v6572_v19 = vld [vmem:[#allocation9 + $0x180] sm:$0xff]   ;;  %v2572_v9 = vld [vmem:[#allocation3 + $0x21] sm:$0xff] }
 0x2b3   : > { %v2819_v39 = vld [vmem:[#allocation3 + $0x152] sm:$0xff]  ;;  %v2820_v7 = vld [vmem:[#allocation3 + $0x15a] sm:$0xff]  ;;  %v2633_v42 = vpack.c.bf16 %v7805_v1, %v2537_v51  ;;  %v2546_v51 = vld [vmem:[#allocation3 + $0x68] sm:$0xff] }
 0x2b4   : > { %v2756_v15 = vld [vmem:[#allocation3 + $0x158] sm:$0xff]  ;;  %2534 = vst [vmem:[#allocation3 + $0x171] sm:$0xff] %v7780_v31  ;;  %v6172_v32 = vadd.f32 %v6171_v48, %v7663_v49  ;;  %v6179_v53 = vadd.f32 %v5336_v6, %v7569_v4  ;;  %v7786_v35 = vpack.c.bf16 %v2820_v7, %v2819_v39  ;;  %v2868_v5 = vpack.c.bf16 %v7780_v31, %v2500_v63  ;;  %v2604_v63 = vld [vmem:[#allocation3 + $0x22] sm:$0xff] }
 0x2b5   : > { %v7788_v27 = vpack.c.bf16 %v2756_v15, %v2755_v36  ;;  %v2638_v48 = vpack.c.bf16 %v2604_v63, %v2603_v45  ;;  %v6573_v6 = vld [vmem:[#allocation9 + $0x1c8] sm:$0xff]   ;;  %v6575_v15 = vld [vmem:[#allocation9 + $0x1d0] sm:$0xff]   ;;  %v6587_v45 = vld [vmem:[#allocation9 + $0x200] sm:$0xff]  }
 0x2b6   : > { %v2470_v34 = vadd.f32 %v6172_v32, %v7580_v44  ;;  %v6180_v33 = vadd.f32 %v6179_v53, %v7668_v56  ;;  %5954 = vmatmul.mubr.bf16.gmra.mrb[120].mxu1 %v7786_v35  ;;  %v2571_v36 = vld [vmem:[#allocation3 + $0x19] sm:$0xff]  ;;  %v2580_v63 = vld [vmem:[#allocation3 + $0x81] sm:$0xff] }
 0x2b7   : > { %3203 = vmatmul.mubr.bf16.gmra.mrb[212].mxu0 %v7788_v27  ;;  %v2637_v39 = vpack.c.bf16 %v2572_v9, %v2571_v36  ;;  %v6574_v7 = vld [vmem:[#allocation9 + $0x188] sm:$0xff]   ;;  %v2540_v32 = vld [vmem:[#allocation3 + $0x20] sm:$0xff] }
 0x2b8   : > { %3210 = vmatprep.mubr.bf16.mxu0 %v2868_v5  ;;  %v2502_v38 = vmax.f32 %v2470_v34, 0.0  ;;  %v2471_v49 = vadd.f32 %v6180_v33, %v7580_v44  ;;  %v2569_v44 = vld [vmem:[#allocation3 + $0x1] sm:$0xff]  ;;  %v2574_v53 = vld [vmem:[#allocation3 + $0x39] sm:$0xff]  ;;  %v2573_v33 = vld [vmem:[#allocation3 + $0x31] sm:$0xff] }
 0x2b9   : > { %v2757_v8 = vld [vmem:[#allocation3 + $0x168] sm:$0xff]  ;;  %v2634_v2 = vpack.c.bf16 %v2570_v30, %v2569_v44  ;;  %v2539_v5 = vld [vmem:[#allocation3 + $0x18] sm:$0xff]  ;;  %v2544_v30 = vld [vmem:[#allocation3 + $0x50] sm:$0xff] }
 0x2ba   : > { %2535 = vst [vmem:[#allocation3 + $0x181] sm:$0xff] %v2502_v38  ;;  %v2503_v4 = vmax.f32 %v2471_v49, 0.0  ;;  %v2636_v34 = vpack.c.bf16 %v2540_v32, %v2539_v5  ;;  %v7809_v49 = vpack.c.bf16 %v2574_v53, %v2573_v33  ;;  %v2579_v9 = vld [vmem:[#allocation3 + $0x79] sm:$0xff]  ;;  %v2586_v32 = vld [vmem:[#allocation3 + $0xc9] sm:$0xff] }
 0x2bb   : > { %v2821_v29 = vld [vmem:[#allocation3 + $0x16a] sm:$0xff]  ;;  %v2822_v18 = vld [vmem:[#allocation3 + $0x172] sm:$0xff] }
 0x2bc   : > { %v2758_v54 = vld [vmem:[#allocation3 + $0x170] sm:$0xff]  ;;  %2536 = vst [vmem:[#allocation3 + $0x189] sm:$0xff] %v2503_v4  ;;  %v7796_v13 = vpack.c.bf16 %v2822_v18, %v2821_v29  ;;  %v2871_v56 = vpack.c.bf16 %v2503_v4, %v2502_v38  ;;  %v6576_v38 = vld [vmem:[#allocation9 + $0x190] sm:$0xff]   ;;  %v6577_v4 = vld [vmem:[#allocation9 + $0x1d8] sm:$0xff]  }
 0x2bd   : > { %v7798_v3 = vpack.c.bf16 %v2758_v54, %v2757_v8  ;;  %v2542_v8 = vld [vmem:[#allocation3 + $0x38] sm:$0xff]  ;;  %v6579_v29 = vld [vmem:[#allocation9 + $0x1e0] sm:$0xff]   ;;  %v6590_v33 = vld [vmem:[#allocation9 + $0x218] sm:$0xff]  }
 0x2be   : > { %5957 = vmatprep.mubr.bf16.mxu1 %v7796_v13  ;;  %v2576_v18 = vld [vmem:[#allocation3 + $0x51] sm:$0xff]  ;;  %v2587_v5 = vld [vmem:[#allocation3 + $0xd9] sm:$0xff] }
 0x2bf   : > { %3211 = vmatmul.mubr.bf16.gmra.mrb[216].mxu0 %v7798_v3  ;;  %v2541_v54 = vld [vmem:[#allocation3 + $0x30] sm:$0xff]  ;;  %v7816_v44 = vpack.c.bf16 %v2576_v18, %v2575_v43 }
 0x2c0   : > { %3218 = vmatprep.mubr.bf16.mxu0 %v2871_v56  ;;  %v7814_v56 = vpack.c.bf16 %v2542_v8, %v2541_v54  ;;  %v6593_v8 = vld [vmem:[#allocation9 + $0x230] sm:$0xff]   ;;  %v2594_v18 = vld [vmem:[#allocation3 + $0x129] sm:$0xff] }
 0x2c1   : > { %v2759_v57 = vld [vmem:[#allocation3 + $0x180] sm:$0xff] }
 0x2c3   : > { %v2823_v16 = vld [vmem:[#allocation3 + $0x182] sm:$0xff]  ;;  %v2824_v40 = vld [vmem:[#allocation3 + $0x18a] sm:$0xff] }
 0x2c4   : > { %v2760_v10 = vld [vmem:[#allocation3 + $0x188] sm:$0xff]  ;;  %v2872_v61 = vpack.c.bf16 %v2824_v40, %v2823_v16 }
 0x2c5   : > { %v7802_v59 = vpack.c.bf16 %v2760_v10, %v2759_v57  ;;  %v6583_v57 = vld [vmem:[#allocation9 + $0x1f0] sm:$0xff]   ;;  %v2578_v16 = vld [vmem:[#allocation3 + $0x69] sm:$0xff] }
 0x2c6   : > { %5958 = vmatmul.mubr.bf16.gmra.mrb[124].mxu1 %v2872_v61  ;;  %v2543_v40 = vld [vmem:[#allocation3 + $0x48] sm:$0xff] }
 0x2c7   : > { %3219 = vmatmul.mubr.bf16.gmra.mrb[220].mxu0 %v7802_v59  ;;  %5977 = vmatprep.mubr.bf16.mxu1 %v2635_v62  ;;  %v7822_v10 = vpack.c.bf16 %v2544_v30, %v2543_v40  ;;  %v2577_v62 = vld [vmem:[#allocation3 + $0x61] sm:$0xff]  ;;  %v3864_v30 = vld [vmem:[#allocation3 + $0x98] sm:$0xff] }
 0x2c8   : > { %3564 = vmatprep.mubr.bf16.mxu0 %v2634_v2  ;;  %v6584_v2 = vld [vmem:[#allocation9 + $0x1b0] sm:$0xff]   ;;  %v7824_v61 = vpack.c.bf16 %v2578_v16, %v2577_v62  ;;  %v3863_v62 = vld [vmem:[#allocation3 + $0x90] sm:$0xff] }
 0x2c9   : > { %v2596_v16 = vld [vmem:[#allocation3 + $0x141] sm:$0xff] }
 0x2ce   : > { %5978 = vmatmul.mubr.bf16.vlgmr.msra.gmra.mrb[96].mxu1 %v2638_v48  ;;  %v2649_v48 = vpack.c.bf16 %v2580_v63, %v2579_v9 }
 0x2cf   : > { %3565 = vmatmul.mubr.bf16.vlgmr.msra.gmra.mrb[224].mxu0 %v2633_v42  ;;  %5981 = vmatprep.mubr.bf16.mxu1 %v7620_v26  ;;  %v6578_v26 = vld [vmem:[#allocation9 + $0x198] sm:$0xff]   ;;  %v2545_v42 = vld [vmem:[#allocation3 + $0x60] sm:$0xff] }
 0x2d0   : > { %5634 = vmatpush3.bf16.msra.mxu1 %v6572_v19  ;;  %3572 = vmatprep.mubr.bf16.mxu0 %v2637_v39  ;;  %v2645_v19 = vpack.c.bf16 %v2546_v51, %v2545_v42  ;;  %v2581_v39 = vld [vmem:[#allocation3 + $0x91] sm:$0xff] }
 0x2d1   : > { %5635 = vmatprep.subr.bf16.mxu1 %v6573_v6  ;;  %v2547_v6 = vld [vmem:[#allocation3 + $0x78] sm:$0xff] }
 0x2d2   : > { %v7887_v42 = vld [vmem:[#allocation3 + $0x151] sm:$0xff] }
 0x2d4   : > { %5636 = vmatpush3.bf16.msra.mxu1 %v6574_v7 }
 0x2d5   : > { %5637 = vmatprep.subr.bf16.mxu1 %v6575_v15  ;;  %v2583_v15 = vld [vmem:[#allocation3 + $0xa9] sm:$0xff] }
 0x2d6   : > { %5982 = vmatmul.mubr.bf16.gmra.mrb[100].mxu1 %v7638_v22  ;;  %v6581_v22 = vld [vmem:[#allocation9 + $0x1e8] sm:$0xff]  }
 0x2d7   : > { %3573 = vmatmul.mubr.bf16.gmra.mrb[228].mxu0 %v2636_v34  ;;  %5985 = vmatprep.mubr.bf16.mxu1 %v7655_v60  ;;  %v6582_v60 = vld [vmem:[#allocation9 + $0x1a8] sm:$0xff]  }
 0x2d8   : > { %3580 = vmatprep.mubr.bf16.mxu0 %v7809_v49  ;;  %5638 = vmatpush3.bf16.msra.mxu1 %v6576_v38  ;;  %v2592_v38 = vld [vmem:[#allocation3 + $0x111] sm:$0xff] }
 0x2d9   : > { %5639 = vmatprep.subr.bf16.mxu1 %v6577_v4 }
 0x2dc   : > { %5640 = vmatpush3.bf16.msra.mxu1 %v6578_v26  ;;  %v6592_v26 = vld [vmem:[#allocation9 + $0x228] sm:$0xff]  }
 0x2dd   : > { %5641 = vmatprep.subr.bf16.mxu1 %v6579_v29 }
 0x2de   : > { %5986 = vmatmul.mubr.bf16.gmra.mrb[104].mxu1 %v7672_v37  ;;  %v6585_v37 = vld [vmem:[#allocation9 + $0x1f8] sm:$0xff]  }
 0x2df   : > { %3581 = vmatmul.mubr.bf16.gmra.mrb[232].mxu0 %v7814_v56  ;;  %5989 = vmatprep.mubr.bf16.mxu1 %v7683_v23  ;;  %v6586_v23 = vld [vmem:[#allocation9 + $0x1b8] sm:$0xff]  }
 0x2e0   : > { %3588 = vmatprep.mubr.bf16.mxu0 %v7816_v44  ;;  %5642 = vmatpush3.bf16.msra.mxu1 %v6580_v46  ;;  %v2593_v46 = vld [vmem:[#allocation3 + $0x121] sm:$0xff] }
 0x2e1   : > { %5643 = vmatprep.subr.bf16.mxu1 %v6581_v22  ;;  %v7872_v22 = vpack.c.bf16 %v2594_v18, %v2593_v46 }
 0x2e4   : > { %5644 = vmatpush3.bf16.msra.mxu1 %v6582_v60 }
 0x2e5   : > { %5645 = vmatprep.subr.bf16.mxu1 %v6583_v57 }
 0x2e6   : > { %5990 = vmatmul.mubr.bf16.gmra.mrb[108].mxu1 %v7695_v41  ;;  %v2548_v41 = vld [vmem:[#allocation3 + $0x80] sm:$0xff] }
 0x2e7   : > { %3589 = vmatmul.mubr.bf16.gmra.mrb[236].mxu0 %v7822_v10  ;;  %5993 = vmatprep.mubr.bf16.mxu1 %v7707_v47  ;;  %v2582_v47 = vld [vmem:[#allocation3 + $0x99] sm:$0xff]  ;;  %v7832_v36 = vpack.c.bf16 %v2548_v41, %v2547_v6 }
 0x2e8   : > { %3596 = vmatprep.mubr.bf16.mxu0 %v7824_v61  ;;  %5646 = vmatpush3.bf16.msra.mxu1 %v6584_v2  ;;  %v7834_v7 = vpack.c.bf16 %v2582_v47, %v2581_v39  ;;  %v3868_v39 = vld [vmem:[#allocation3 + $0xc8] sm:$0xff] }
 0x2e9   : > { %5647 = vmatprep.subr.bf16.mxu1 %v6585_v37  ;;  %v2595_v37 = vld [vmem:[#allocation3 + $0x139] sm:$0xff] }
 0x2ec   : > { %5648 = vmatpush3.bf16.msra.mxu1 %v6586_v23 }
 0x2ed   : > { %6009 = vmatprep.subr.bf16.mxu1 %v6587_v45 }
 0x2ee   : > { %5994 = vmatmul.mubr.bf16.gmra.mrb[112].mxu1 %v7719_v55  ;;  %v2584_v55 = vld [vmem:[#allocation3 + $0xb1] sm:$0xff] }
 0x2ef   : > { %3597 = vmatmul.mubr.bf16.gmra.mrb[240].mxu0 %v2645_v19  ;;  %5997 = vmatprep.mubr.bf16.mxu1 %v7731_v14  ;;  %v7840_v14 = vpack.c.bf16 %v2584_v55, %v2583_v15  ;;  %v7897_v55 = vld [vmem:[#allocation3 + $0x169] sm:$0xff] }
 0x2f0   : > { %3604 = vmatprep.mubr.bf16.mxu0 %v2649_v48 }
 0x2f6   : > { %5998 = vmatmul.mubr.bf16.gmra.mrb[116].mxu1 %v7743_v52  ;;  %v2585_v52 = vld [vmem:[#allocation3 + $0xc1] sm:$0xff] }
 0x2f7   : > { %3605 = vmatmul.mubr.bf16.gmra.mrb[244].mxu0 %v7832_v36  ;;  %6001 = vmatprep.mubr.bf16.mxu1 %v7755_v24  ;;  %v7846_v53 = vpack.c.bf16 %v2586_v32, %v2585_v52  ;;  %v2588_v24 = vld [vmem:[#allocation3 + $0xe1] sm:$0xff] }
 0x2f8   : > { %3612 = vmatprep.mubr.bf16.mxu0 %v7834_v7  ;;  %v3867_v32 = vld [vmem:[#allocation3 + $0xc0] sm:$0xff] }
 0x2fe   : > { %6002 = vmatmul.mubr.bf16.gmra.mrb[120].mxu1 %v7770_v21  ;;  %v6588_v21 = vld [vmem:[#allocation9 + $0x208] sm:$0xff]  }
 0x2ff   : > { %3613 = vmatmul.mubr.bf16.gmra.mrb[248].mxu0 %v7685_v17  ;;  %6005 = vmatprep.mubr.bf16.mxu1 %v7786_v35  ;;  %v7854_v17 = vpack.c.bf16 %v2588_v24, %v2587_v5  ;;  %v2590_v35 = vld [vmem:[#allocation3 + $0xf9] sm:$0xff]  ;;  %v3969_v24 = vpack.c.bf16 %v3868_v39, %v3867_v32 }
 0x300   : > { %3620 = vmatprep.mubr.bf16.mxu0 %v7840_v14 }
 0x306   : > { %6006 = vmatmul.mubr.bf16.gmra.mrb[124].mxu1 %v7796_v13  ;;  %v2589_v13 = vld [vmem:[#allocation3 + $0xf1] sm:$0xff] }
 0x307   : > { %3621 = vmatmul.mubr.bf16.gmra.mrb[252].mxu0 %v7697_v28  ;;  %4224 = vmatprep.mubr.bf16.mxu1 %v7809_v49  ;;  %v6589_v28 = vld [vmem:[#allocation9 + $0x210] sm:$0xff]   ;;  %v7858_v34 = vpack.c.bf16 %v2590_v35, %v2589_v13  ;;  %v2591_v49 = vld [vmem:[#allocation3 + $0x109] sm:$0xff]  ;;  %v3869_v13 = vld [vmem:[#allocation3 + $0xd8] sm:$0xff] }
 0x308   : > { %3628 = vmatprep.mubr.bf16.mxu0 %v7846_v53  ;;  %v7864_v4 = vpack.c.bf16 %v2592_v38, %v2591_v49 }
 0x30e   : > { %4225 = vmatmul.mubr.bf16.vlgmr.msra.gmra.mrb[128].mxu1 %v7814_v56 }
 0x30f   : > { %3629 = vmatmul.mubr.bf16.gmra.mrb[0].mxu0 %v7709_v25  ;;  %4232 = vmatprep.mubr.bf16.mxu1 %v7816_v44  ;;  %v6591_v25 = vld [vmem:[#allocation9 + $0x220] sm:$0xff]  }
 0x310   : > { %6010 = vmatpush3.bf16.msra.mxu1 %v6587_v45  ;;  %3636 = vmatprep.mubr.bf16.mxu0 %v7854_v17  ;;  %v3866_v45 = vld [vmem:[#allocation3 + $0xb0] sm:$0xff] }
 0x311   : > { %6011 = vmatprep.subr.bf16.mxu1 %v6588_v21 }
 0x314   : > { %6012 = vmatpush3.bf16.msra.mxu1 %v6588_v21 }
 0x315   : > { %6013 = vmatprep.subr.bf16.mxu1 %v6589_v28 }
 0x316   : > { %4233 = vmatmul.mubr.bf16.gmra.mrb[132].mxu1 %v7822_v10 }
 0x317   : > { %3637 = vmatmul.mubr.bf16.gmra.mrb[4].mxu0 %v7721_v50  ;;  %4240 = vmatprep.mubr.bf16.mxu1 %v7824_v61  ;;  %v3963_v61 = vpack.c.bf16 %v3864_v30, %v3863_v62 }
 0x318   : > { %3644 = vmatprep.mubr.bf16.mxu0 %v7858_v34  ;;  %6014 = vmatpush3.bf16.msra.mxu1 %v6589_v28 }
 0x319   : > { %6015 = vmatprep.subr.bf16.mxu1 %v6590_v33 }
 0x31c   : > { %6016 = vmatpush3.bf16.msra.mxu1 %v6590_v33 }
 0x31d   : > { %6017 = vmatprep.subr.bf16.mxu1 %v6591_v25 }
 0x31e   : > { %4241 = vmatmul.mubr.bf16.gmra.mrb[136].mxu1 %v2645_v19 }
 0x31f   : > { %3645 = vmatmul.mubr.bf16.gmra.mrb[8].mxu0 %v7733_v58  ;;  %4248 = vmatprep.mubr.bf16.mxu1 %v2649_v48  ;;  %v6594_v58 = vld [vmem:[#allocation9 + $0x238] sm:$0xff]  }
 0x320   : > { %3652 = vmatprep.mubr.bf16.mxu0 %v7864_v4  ;;  %6018 = vmatpush3.bf16.msra.mxu1 %v6591_v25  ;;  %v3865_v48 = vld [vmem:[#allocation3 + $0xa8] sm:$0xff] }
 0x321   : > { %6019 = vmatprep.subr.bf16.mxu1 %v6592_v26  ;;  %v3966_v47 = vpack.c.bf16 %v3866_v45, %v3865_v48 }
 0x322   : > { %v5377_v50 = vpop.f32.mrb[160].mxu0 }
 0x323   : > { %v5378_v29 = vpop.f32.mrb[161].mxu0 }
 0x324   : > { %v7868_v54 = vadd.f32 %v5378_v29, %v5377_v50  ;;  %v5380_v56 = vpop.f32.mrb[162].mxu0  ;;  %6020 = vmatpush3.bf16.msra.mxu1 %v6592_v26  ;;  %v3871_v50 = vld [vmem:[#allocation3 + $0xf0] sm:$0xff] }
 0x325   : > { %v5381_v43 = vpop.f32.mrb[163].mxu0  ;;  %6021 = vmatprep.subr.bf16.mxu1 %v6593_v8 }
 0x326   : > { %v7870_v44 = vadd.f32 %v5381_v43, %v5380_v56  ;;  %4249 = vmatmul.mubr.bf16.gmra.mrb[140].mxu1 %v7832_v36  ;;  %v3874_v43 = vld [vmem:[#allocation3 + $0x110] sm:$0xff] }
 0x327   : > { %3653 = vmatmul.mubr.bf16.gmra.mrb[12].mxu0 %v7745_v11  ;;  %4256 = vmatprep.mubr.bf16.mxu1 %v7834_v7  ;;  %v7882_v11 = vpack.c.bf16 %v2596_v16, %v2595_v37 }
 0x328   : > { %3660 = vmatprep.mubr.bf16.mxu0 %v7872_v22  ;;  %6022 = vmatpush3.bf16.msra.mxu1 %v6593_v8 }
 0x329   : > { %6023 = vmatprep.subr.bf16.mxu1 %v6594_v58 }
 0x32a   : > { %v5383_v60 = vpop.f32.mrb[164].mxu0 }
 0x32b   : > { %v5384_v57 = vpop.f32.mrb[165].mxu0 }
 0x32c   : > { %v7878_v40 = vadd.f32 %v5384_v57, %v5383_v60  ;;  %v5386_v10 = vpop.f32.mrb[166].mxu0  ;;  %6024 = vmatpush3.bf16.msra.mxu1 %v6594_v58  ;;  %v3873_v58 = vld [vmem:[#allocation3 + $0x108] sm:$0xff] }
 0x32d   : > { %v5387_v2 = vpop.f32.mrb[167].mxu0  ;;  %v3978_v30 = vpack.c.bf16 %v3874_v43, %v3873_v58 }
 0x32e   : > { %v7880_v23 = vadd.f32 %v5387_v2, %v5386_v10  ;;  %4257 = vmatmul.mubr.bf16.gmra.mrb[144].mxu1 %v3963_v61  ;;  %v3876_v10 = vld [vmem:[#allocation3 + $0x128] sm:$0xff]  ;;  %v3875_v61 = vld [vmem:[#allocation3 + $0x120] sm:$0xff] }
 0x32f   : > { %3661 = vmatmul.mubr.bf16.gmra.mrb[16].mxu0 %v7757_v0  ;;  %4264 = vmatprep.mubr.bf16.mxu1 %v7840_v14  ;;  %v2676_v0 = vpack.c.bf16 %v7764_v20, %v7887_v42  ;;  %v2679_v20 = vpack.c.bf16 %v7780_v31, %v7897_v55 }
 0x330   : > { %3668 = vmatprep.mubr.bf16.mxu0 %v7882_v11 }
 0x332   : > { %v5389_v51 = vpop.f32.mrb[168].mxu0 }
 0x333   : > { %v5390_v63 = vpop.f32.mrb[169].mxu0 }
 0x334   : > { %v7889_v19 = vadd.f32 %v5390_v63, %v5389_v51  ;;  %v5392_v9 = vpop.f32.mrb[170].mxu0  ;;  %v3981_v51 = vpack.c.bf16 %v3876_v10, %v3875_v61  ;;  %v3885_v61 = vld [vmem:[#allocation3 + $0x198] sm:$0xff] }
 0x335   : > { %v5393_v41 = vpop.f32.mrb[171].mxu0 }
 0x336   : > { %v7891_v6 = vadd.f32 %v5393_v41, %v5392_v9  ;;  %4265 = vmatmul.mubr.bf16.gmra.mrb[148].mxu1 %v3966_v47  ;;  %v3878_v9 = vld [vmem:[#allocation3 + $0x140] sm:$0xff] }
 0x337   : > { %3669 = vmatmul.mubr.bf16.gmra.mrb[20].mxu0 %v7772_v12  ;;  %4272 = vmatprep.mubr.bf16.mxu1 %v7846_v53  ;;  %v3870_v53 = vld [vmem:[#allocation3 + $0xe0] sm:$0xff] }
 0x338   : > { %3676 = vmatprep.mubr.bf16.mxu0 %v2676_v0  ;;  %v3972_v25 = vpack.c.bf16 %v3870_v53, %v3869_v13  ;;  %v3912_v41 = vld [vmem:[#allocation3 + $0x159] sm:$0xff]  ;;  %v3879_v53 = vld [vmem:[#allocation3 + $0x150] sm:$0xff] }
 0x339   : > { %v3877_v0 = vld [vmem:[#allocation3 + $0x138] sm:$0xff] }
 0x33a   : > { %v5395_v36 = vpop.f32.mrb[172].mxu0  ;;  %v3984_v39 = vpack.c.bf16 %v3878_v9, %v3877_v0  ;;  %v3919_v9 = vld [vmem:[#allocation3 + $0x32] sm:$0xff] }
 0x33b   : > { %v5396_v7 = vpop.f32.mrb[173].mxu0 }
 0x33c   : > { %v7899_v15 = vadd.f32 %v5396_v7, %v5395_v36  ;;  %v5398_v14 = vpop.f32.mrb[174].mxu0 }
 0x33d   : > { %v5399_v52 = vpop.f32.mrb[175].mxu0 }
 0x33e   : > { %v7901_v21 = vadd.f32 %v5399_v52, %v5398_v14  ;;  %4273 = vmatmul.mubr.bf16.gmra.mrb[152].mxu1 %v3969_v24  ;;  %v3988_v14 = vpack.c.bf16 %v3912_v41, %v7887_v42  ;;  %v3880_v52 = vld [vmem:[#allocation3 + $0x158] sm:$0xff]  ;;  %v3882_v42 = vld [vmem:[#allocation3 + $0x170] sm:$0xff] }
 0x33f   : > { %3677 = vmatmul.mubr.bf16.gmra.mrb[24].mxu0 %v7788_v27  ;;  %4280 = vmatprep.mubr.bf16.mxu1 %v7854_v17  ;;  %v3872_v27 = vld [vmem:[#allocation3 + $0xf8] sm:$0xff] }
 0x340   : > { %3684 = vmatprep.mubr.bf16.mxu0 %v2679_v20  ;;  %v3975_v29 = vpack.c.bf16 %v3872_v27, %v3871_v50  ;;  %v3916_v27 = vld [vmem:[#allocation3 + $0x189] sm:$0xff] }
 0x341   : > { %v3881_v50 = vld [vmem:[#allocation3 + $0x168] sm:$0xff] }
 0x342   : > { %v5401_v12 = vpop.f32.mrb[176].mxu0 }
 0x343   : > { %v5402_v5 = vpop.f32.mrb[177].mxu0 }
 0x344   : > { %v7907_v28 = vadd.f32 %v5402_v5, %v5401_v12  ;;  %v5404_v35 = vpop.f32.mrb[178].mxu0 }
 0x345   : > { %v5405_v33 = vpop.f32.mrb[179].mxu0 }
 0x346   : > { %v7909_v38 = vadd.f32 %v5405_v33, %v5404_v35  ;;  %4281 = vmatmul.mubr.bf16.gmra.mrb[156].mxu1 %v3972_v25  ;;  %v3987_v35 = vpack.c.bf16 %v3880_v52, %v3879_v53 }
 0x347   : > { %3685 = vmatmul.mubr.bf16.gmra.mrb[28].mxu0 %v7798_v3  ;;  %4288 = vmatprep.mubr.bf16.mxu1 %v7858_v34 }
 0x34a   : > { %v5407_v31 = vpop.f32.mrb[180].mxu0 }
 0x34b   : > { %v5408_v17 = vpop.f32.mrb[181].mxu0 }
 0x34c   : > { %v7913_v49 = vadd.f32 %v5408_v17, %v5407_v31  ;;  %v5410_v26 = vpop.f32.mrb[182].mxu0 }
 0x34d   : > { %v5411_v8 = vpop.f32.mrb[183].mxu0 }
 0x34e   : > { %v7915_v18 = vadd.f32 %v5411_v8, %v5410_v26  ;;  %4289 = vmatmul.mubr.bf16.gmra.mrb[160].mxu1 %v3975_v29  ;;  %v3990_v29 = vpack.c.bf16 %v3882_v42, %v3881_v50  ;;  %v3925_v42 = vld [vmem:[#allocation3 + $0x7a] sm:$0xff] }
 0x34f   : > { %4296 = vmatprep.mubr.bf16.mxu1 %v7864_v4  ;;  %v3928_v50 = vld [vmem:[#allocation3 + $0x9a] sm:$0xff] }
 0x352   : > { %v5413_v56 = vpop.f32.mrb[184].mxu0 }
 0x353   : > { %v5414_v46 = vpop.f32.mrb[185].mxu0 }
 0x354   : > { %v7918_v3 = vadd.f32 %v5414_v46, %v5413_v56  ;;  %v5416_v34 = vpop.f32.mrb[186].mxu0  ;;  %v3915_v56 = vld [vmem:[#allocation3 + $0x181] sm:$0xff] }
 0x355   : > { %v5417_v60 = vpop.f32.mrb[187].mxu0  ;;  %v3994_v46 = vpack.c.bf16 %v3916_v27, %v3915_v56 }
 0x356   : > { %v7920_v57 = vadd.f32 %v5417_v60, %v5416_v34  ;;  %4297 = vmatmul.mubr.bf16.gmra.mrb[164].mxu1 %v3978_v30  ;;  %v3917_v34 = vld [vmem:[#allocation3 + $0x199] sm:$0xff] }
 0x357   : > { %4304 = vmatprep.mubr.bf16.mxu1 %v7872_v22 }
 0x35a   : > { %v5419_v16 = vpop.f32.mrb[188].mxu0 }
 0x35b   : > { %v5420_v62 = vpop.f32.mrb[189].mxu0 }
 0x35c   : > { %v7923_v2 = vadd.f32 %v5420_v62, %v5419_v16  ;;  %v5422_v4 = vpop.f32.mrb[190].mxu0 }
 0x35d   : > { %v5423_v37 = vpop.f32.mrb[191].mxu0 }
 0x35e   : > { %v7925_v45 = vadd.f32 %v5423_v37, %v5422_v4  ;;  %4305 = vmatmul.mubr.bf16.gmra.mrb[168].mxu1 %v3981_v51 }
 0x35f   : > { %4312 = vmatprep.mubr.bf16.mxu1 %v7882_v11  ;;  %v3914_v11 = vld [vmem:[#allocation3 + $0x171] sm:$0xff] }
 0x360   : > { %v3991_v33 = vpack.c.bf16 %v3914_v11, %v7897_v55  ;;  %v3918_v55 = vld [vmem:[#allocation3 + $0x1a1] sm:$0xff]  ;;  %v3924_v11 = vld [vmem:[#allocation3 + $0x6a] sm:$0xff] }
 0x361   : > { %v3997_v10 = vpack.c.bf16 %v3918_v55, %v3917_v34 }
 0x362   : > { %v5425_v63 = vpop.f32.mrb[192].mxu0 }
 0x363   : > { %v5426_v48 = vpop.f32.mrb[193].mxu0 }
 0x364   : > { %v7928_v47 = vadd.f32 %v5426_v48, %v5425_v63  ;;  %v5428_v22 = vpop.f32.mrb[194].mxu0  ;;  %v3996_v63 = vpack.c.bf16 %v7805_v1, %v3885_v61  ;;  %v3920_v48 = vld [vmem:[#allocation3 + $0x3a] sm:$0xff]  ;;  %v3932_v61 = vld [vmem:[#allocation3 + $0xca] sm:$0xff] }
 0x365   : > { %v5429_v36 = vpop.f32.mrb[195].mxu0 }
 0x366   : > { %v7930_v7 = vadd.f32 %v5429_v36, %v5428_v22  ;;  %4313 = vmatmul.mubr.bf16.gmra.mrb[172].mxu1 %v3984_v39  ;;  %v3953_v39 = vpack.c.bf16 %v3920_v48, %v3919_v9 }
 0x367   : > { %4320 = vmatprep.mubr.bf16.mxu1 %v3988_v14 }
 0x36a   : > { %v5431_v32 = vpop.f32.mrb[196].mxu0 }
 0x36b   : > { %v5432_v24 = vpop.f32.mrb[197].mxu0 }
 0x36c   : > { %v7933_v20 = vadd.f32 %v5432_v24, %v5431_v32  ;;  %v5434_v12 = vpop.f32.mrb[198].mxu0  ;;  %v3921_v32 = vld [vmem:[#allocation3 + $0x4a] sm:$0xff]  ;;  %v3923_v24 = vld [vmem:[#allocation3 + $0x62] sm:$0xff] }
 0x36d   : > { %v5435_v5 = vpop.f32.mrb[199].mxu0 }
 0x36e   : > { %v7935_v13 = vadd.f32 %v5435_v5, %v5434_v12  ;;  %4321 = vmatmul.mubr.bf16.gmra.mrb[176].mxu1 %v3987_v35 }
 0x36f   : > { %4328 = vmatprep.mubr.bf16.mxu1 %v3991_v33  ;;  %v3959_v33 = vpack.c.bf16 %v3924_v11, %v3923_v24 }
 0x372   : > { %v5437_v25 = vpop.f32.mrb[200].mxu0 }
 0x373   : > { %v5438_v31 = vpop.f32.mrb[201].mxu0 }
 0x374   : > { %v7938_v17 = vadd.f32 %v5438_v31, %v5437_v25  ;;  %v5440_v26 = vpop.f32.mrb[202].mxu0  ;;  %v3926_v31 = vld [vmem:[#allocation3 + $0x82] sm:$0xff] }
 0x375   : > { %v5441_v8 = vpop.f32.mrb[203].mxu0 }
 0x376   : > { %v7940_v43 = vadd.f32 %v5441_v8, %v5440_v26  ;;  %4329 = vmatmul.mubr.bf16.gmra.mrb[180].mxu1 %v3990_v29  ;;  %v3927_v26 = vld [vmem:[#allocation3 + $0x92] sm:$0xff] }
 0x377   : > { %4336 = vmatprep.mubr.bf16.mxu1 %v3994_v46  ;;  %v3962_v46 = vpack.c.bf16 %v3926_v31, %v3925_v42  ;;  %v3965_v55 = vpack.c.bf16 %v3928_v50, %v3927_v26  ;;  %v3938_v26 = vld [vmem:[#allocation3 + $0x112] sm:$0xff] }
 0x37a   : > { %v5443_v58 = vpop.f32.mrb[204].mxu0 }
 0x37b   : > { %v5444_v60 = vpop.f32.mrb[205].mxu0 }
 0x37c   : > { %v7942_v30 = vadd.f32 %v5444_v60, %v5443_v58  ;;  %v5446_v16 = vpop.f32.mrb[206].mxu0  ;;  %v3929_v60 = vld [vmem:[#allocation3 + $0xaa] sm:$0xff] }
 0x37d   : > { %v5447_v62 = vpop.f32.mrb[207].mxu0 }
 0x37e   : > { %v7944_v4 = vadd.f32 %v5447_v62, %v5446_v16  ;;  %4337 = vmatmul.mubr.bf16.gmra.mrb[184].mxu1 %v7802_v59  ;;  %v3922_v59 = vld [vmem:[#allocation3 + $0x52] sm:$0xff]  ;;  %v3931_v62 = vld [vmem:[#allocation3 + $0xc2] sm:$0xff] }
 0x37f   : > { %4344 = vmatprep.mubr.bf16.mxu1 %v3997_v10  ;;  %v3956_v5 = vpack.c.bf16 %v3922_v59, %v3921_v32  ;;  %v3930_v16 = vld [vmem:[#allocation3 + $0xb2] sm:$0xff] }
 0x380   : > { %v3968_v9 = vpack.c.bf16 %v3930_v16, %v3929_v60  ;;  %v3935_v59 = vld [vmem:[#allocation3 + $0xf2] sm:$0xff] }
 0x382   : > { %v5449_v37 = vpop.f32.mrb[208].mxu0 }
 0x383   : > { %v5450_v51 = vpop.f32.mrb[209].mxu0 }
 0x384   : > { %v7948_v41 = vadd.f32 %v5450_v51, %v5449_v37  ;;  %v5452_v22 = vpop.f32.mrb[210].mxu0 }
 0x385   : > { %v5453_v0 = vpop.f32.mrb[211].mxu0 }
 0x386   : > { %v7950_v36 = vadd.f32 %v5453_v0, %v5452_v22  ;;  %4345 = vmatmul.mubr.bf16.gmra.mrb[188].mxu1 %v3996_v63  ;;  %v3971_v22 = vpack.c.bf16 %v3932_v61, %v3931_v62  ;;  %v3941_v61 = vld [vmem:[#allocation3 + $0x13a] sm:$0xff] }
 0x387   : > { %6025 = vmatprep.mubr.bf16.mxu1 %v3953_v39  ;;  %v3933_v39 = vld [vmem:[#allocation3 + $0xda] sm:$0xff] }
 0x38a   : > { %v5455_v14 = vpop.f32.mrb[212].mxu0 }
 0x38b   : > { %v5456_v52 = vpop.f32.mrb[213].mxu0 }
 0x38c   : > { %v7952_v12 = vadd.f32 %v5456_v52, %v5455_v14  ;;  %v5458_v1 = vpop.f32.mrb[214].mxu0  ;;  %v3934_v14 = vld [vmem:[#allocation3 + $0xe2] sm:$0xff]  ;;  %v3936_v52 = vld [vmem:[#allocation3 + $0xfa] sm:$0xff] }
 0x38d   : > { %v5459_v53 = vpop.f32.mrb[215].mxu0 }
 0x38e   : > { %v7954_v35 = vadd.f32 %v5459_v53, %v5458_v1  ;;  %6026 = vmatmul.mubr.bf16.vlgmr.msra.gmra.mrb[96].mxu1 %v3956_v5  ;;  %v3974_v53 = vpack.c.bf16 %v3934_v14, %v3933_v39 }
 0x38f   : > { %6029 = vmatprep.mubr.bf16.mxu1 %v3959_v33 }
 0x392   : > { %v5461_v25 = vpop.f32.mrb[216].mxu0 }
 0x393   : > { %v5462_v27 = vpop.f32.mrb[217].mxu0 }
 0x394   : > { %v7956_v8 = vadd.f32 %v5462_v27, %v5461_v25  ;;  %v5464_v29 = vpop.f32.mrb[218].mxu0  ;;  %v3977_v25 = vpack.c.bf16 %v3936_v52, %v3935_v59  ;;  %v3937_v27 = vld [vmem:[#allocation3 + $0x10a] sm:$0xff] }
 0x395   : > { %v5465_v56 = vpop.f32.mrb[219].mxu0  ;;  %v3980_v60 = vpack.c.bf16 %v3938_v26, %v3937_v27 }
 0x396   : > { %v7958_v34 = vadd.f32 %v5465_v56, %v5464_v29  ;;  %6030 = vmatmul.mubr.bf16.gmra.mrb[100].mxu1 %v3962_v46  ;;  %v3939_v29 = vld [vmem:[#allocation3 + $0x122] sm:$0xff]  ;;  %v3940_v56 = vld [vmem:[#allocation3 + $0x12a] sm:$0xff] }
 0x397   : > { %6033 = vmatprep.mubr.bf16.mxu1 %v3965_v55 }
 0x39a   : > { %v5467_v58 = vpop.f32.mrb[220].mxu0 }
 0x39b   : > { %v5468_v10 = vpop.f32.mrb[221].mxu0 }
 0x39c   : > { %v7960_v37 = vadd.f32 %v5468_v10, %v5467_v58  ;;  %v5470_v51 = vpop.f32.mrb[222].mxu0  ;;  %v3983_v10 = vpack.c.bf16 %v3940_v56, %v3939_v29 }
 0x39d   : > { %v5471_v63 = vpop.f32.mrb[223].mxu0 }
 0x39e   : > { %v7962_v48 = vadd.f32 %v5471_v63, %v5470_v51  ;;  %6034 = vmatmul.mubr.bf16.gmra.mrb[104].mxu1 %v3968_v9  ;;  %v3942_v51 = vld [vmem:[#allocation3 + $0x142] sm:$0xff]  ;;  %v3943_v9 = vld [vmem:[#allocation3 + $0x152] sm:$0xff] }
 0x39f   : > { %6037 = vmatprep.mubr.bf16.mxu1 %v3971_v22  ;;  %v3944_v22 = vld [vmem:[#allocation3 + $0x15a] sm:$0xff] }
 0x3a0   : > { %v3989_v52 = vpack.c.bf16 %v3944_v22, %v3943_v9 }
 0x3a2   : > { %v5513_v0 = vpop.f32.mrb[224].mxu0 }
 0x3a3   : > { %v5514_v32 = vpop.f32.mrb[225].mxu0 }
 0x3a4   : > { %v5515_v24 = vadd.f32 %v5514_v32, %v5513_v0  ;;  %v5516_v11 = vpop.f32.mrb[226].mxu0  ;;  %v3986_v32 = vpack.c.bf16 %v3942_v51, %v3941_v61 }
 0x3a5   : > { %v5517_v1 = vpop.f32.mrb[227].mxu0 }
 0x3a6   : > { %v7965_v5 = vadd.f32 %v5515_v24, %v7868_v54  ;;  %v5518_v33 = vadd.f32 %v5517_v1, %v5516_v11  ;;  %6038 = vmatmul.mubr.bf16.gmra.mrb[108].mxu1 %v3974_v53  ;;  %v3945_v11 = vld [vmem:[#allocation3 + $0x16a] sm:$0xff]  ;;  %v3946_v1 = vld [vmem:[#allocation3 + $0x172] sm:$0xff] }
 0x3a7   : > { %6041 = vmatprep.mubr.bf16.mxu1 %v3977_v25  ;;  %v3948_v25 = vld [vmem:[#allocation3 + $0x18a] sm:$0xff] }
 0x3a8   : > { %v7968_v42 = vadd.f32 %v5518_v33, %v7870_v44  ;;  %v3947_v33 = vld [vmem:[#allocation3 + $0x182] sm:$0xff] }
 0x3a9   : > { %v3995_v56 = vpack.c.bf16 %v3948_v25, %v3947_v33 }
 0x3aa   : > { %v5519_v31 = vpop.f32.mrb[228].mxu0 }
 0x3ab   : > { %v5520_v50 = vpop.f32.mrb[229].mxu0 }
 0x3ac   : > { %v5521_v46 = vadd.f32 %v5520_v50, %v5519_v31  ;;  %v5522_v55 = vpop.f32.mrb[230].mxu0  ;;  %v3992_v50 = vpack.c.bf16 %v3946_v1, %v3945_v11 }
 0x3ad   : > { %v5523_v58 = vpop.f32.mrb[231].mxu0 }
 0x3ae   : > { %v7971_v54 = vadd.f32 %v5521_v46, %v7878_v40  ;;  %v5524_v16 = vadd.f32 %v5523_v58, %v5522_v55  ;;  %6042 = vmatmul.mubr.bf16.gmra.mrb[112].mxu1 %v3980_v60  ;;  %v3949_v46 = vld [vmem:[#allocation3 + $0x19a] sm:$0xff]  ;;  %v3950_v55 = vld [vmem:[#allocation3 + $0x1a2] sm:$0xff] }
 0x3af   : > { %6045 = vmatprep.mubr.bf16.mxu1 %v3983_v10 }
 0x3b0   : > { %v7974_v44 = vadd.f32 %v5524_v16, %v7880_v23  ;;  %v3998_v16 = vpack.c.bf16 %v3950_v55, %v3949_v46 }
 0x3b2   : > { %v5525_v62 = vpop.f32.mrb[232].mxu0 }
 0x3b3   : > { %v5526_v63 = vpop.f32.mrb[233].mxu0 }
 0x3b4   : > { %v5527_v0 = vadd.f32 %v5526_v63, %v5525_v62  ;;  %v5528_v39 = vpop.f32.mrb[234].mxu0 }
 0x3b5   : > { %v5529_v14 = vpop.f32.mrb[235].mxu0 }
 0x3b6   : > { %v7977_v40 = vadd.f32 %v5527_v0, %v7889_v19  ;;  %v5530_v59 = vadd.f32 %v5529_v14, %v5528_v39  ;;  %6046 = vmatmul.mubr.bf16.gmra.mrb[116].mxu1 %v3986_v32 }
 0x3b7   : > { %6049 = vmatprep.mubr.bf16.mxu1 %v3989_v52 }
 0x3b8   : > { %v7980_v23 = vadd.f32 %v5530_v59, %v7891_v6 }
 0x3ba   : > { %v5531_v24 = vpop.f32.mrb[236].mxu0 }
 0x3bb   : > { %v5532_v53 = vpop.f32.mrb[237].mxu0 }
 0x3bc   : > { %v5533_v31 = vadd.f32 %v5532_v53, %v5531_v24  ;;  %v5534_v27 = vpop.f32.mrb[238].mxu0 }
 0x3bd   : > { %v5535_v26 = vpop.f32.mrb[239].mxu0 }
 0x3be   : > { %v7983_v19 = vadd.f32 %v5533_v31, %v7899_v15  ;;  %v5536_v29 = vadd.f32 %v5535_v26, %v5534_v27  ;;  %6050 = vmatmul.mubr.bf16.gmra.mrb[120].mxu1 %v3992_v50 }
 0x3bf   : > { %6053 = vmatprep.mubr.bf16.mxu1 %v3995_v56 }
 0x3c0   : > { %v7986_v6 = vadd.f32 %v5536_v29, %v7901_v21 }
 0x3c2   : > { %v5537_v58 = vpop.f32.mrb[240].mxu0 }
 0x3c3   : > { %v5538_v60 = vpop.f32.mrb[241].mxu0 }
 0x3c4   : > { %v5539_v10 = vadd.f32 %v5538_v60, %v5537_v58  ;;  %v5540_v62 = vpop.f32.mrb[242].mxu0 }
 0x3c5   : > { %v5541_v61 = vpop.f32.mrb[243].mxu0 }
 0x3c6   : > { %v7989_v51 = vadd.f32 %v5539_v10, %v7907_v28  ;;  %v5542_v15 = vadd.f32 %v5541_v61, %v5540_v62  ;;  %6054 = vmatmul.mubr.bf16.gmra.mrb[124].mxu1 %v3998_v16 }
 0x3c8   : > { %v7992_v63 = vadd.f32 %v5542_v15, %v7909_v38 }
 0x3ca   : > { %v5543_v9 = vpop.f32.mrb[244].mxu0 }
 0x3cb   : > { %v5544_v21 = vpop.f32.mrb[245].mxu0 }
 0x3cc   : > { %v5545_v22 = vadd.f32 %v5544_v21, %v5543_v9  ;;  %v5546_v0 = vpop.f32.mrb[246].mxu0 }
 0x3cd   : > { %v5547_v39 = vpop.f32.mrb[247].mxu0 }
 0x3ce   : > { %v7995_v14 = vadd.f32 %v5545_v22, %v7913_v49  ;;  %v5548_v32 = vadd.f32 %v5547_v39, %v5546_v0 }
 0x3d0   : > { %v7998_v59 = vadd.f32 %v5548_v32, %v7915_v18 }
 0x3d2   : > { %v5549_v52 = vpop.f32.mrb[248].mxu0 }
 0x3d3   : > { %v5550_v28 = vpop.f32.mrb[249].mxu0 }
 0x3d4   : > { %v5551_v24 = vadd.f32 %v5550_v28, %v5549_v52  ;;  %v5552_v11 = vpop.f32.mrb[250].mxu0 }
 0x3d5   : > { %v5553_v1 = vpop.f32.mrb[251].mxu0 }
 0x3d6   : > { %v8001_v38 = vadd.f32 %v5551_v24, %v7918_v3  ;;  %v5554_v53 = vadd.f32 %v5553_v1, %v5552_v11 }
 0x3d8   : > { %v8004_v33 = vadd.f32 %v5554_v53, %v7920_v57 }
 0x3da   : > { %v5555_v25 = vpop.f32.mrb[252].mxu0 }
 0x3db   : > { %v5556_v31 = vpop.f32.mrb[253].mxu0 }
 0x3dc   : > { %v5557_v49 = vadd.f32 %v5556_v31, %v5555_v25  ;;  %v5558_v27 = vpop.f32.mrb[254].mxu0 }
 0x3dd   : > { %v5559_v26 = vpop.f32.mrb[255].mxu0 }
 0x3de   : > { %v8007_v18 = vadd.f32 %v5557_v49, %v7923_v2  ;;  %v5560_v50 = vadd.f32 %v5559_v26, %v5558_v27 }
 0x3e0   : > { %v8010_v29 = vadd.f32 %v5560_v50, %v7925_v45 }
 0x3e1   : > { %v5649_v56 = vpop.f32.mrb[128].mxu1 }
 0x3e2   : > { %v5561_v46 = vpop.f32.mrb[0].mxu0  ;;  %v5650_v3 = vpop.f32.mrb[129].mxu1 }
 0x3e3   : > { %v5562_v55 = vpop.f32.mrb[1].mxu0  ;;  %v5651_v58 = vadd.f32 %v5650_v3, %v5649_v56  ;;  %v5652_v57 = vpop.f32.mrb[130].mxu1 }
 0x3e4   : > { %v5563_v60 = vadd.f32 %v5562_v55, %v5561_v46  ;;  %v5564_v16 = vpop.f32.mrb[2].mxu0  ;;  %v5653_v10 = vpop.f32.mrb[131].mxu1 }
 0x3e5   : > { %v5565_v62 = vpop.f32.mrb[3].mxu0  ;;  %v5654_v15 = vadd.f32 %v5653_v10, %v5652_v57  ;;  %v8016_v9 = vadd.f32 %v7965_v5, %v5651_v58 }
 0x3e6   : > { %v8013_v61 = vadd.f32 %v5563_v60, %v7928_v47  ;;  %v5566_v2 = vadd.f32 %v5565_v62, %v5564_v16 }
 0x3e7   : > { %v8022_v21 = vadd.f32 %v7968_v42, %v5654_v15 }
 0x3e8   : > { %v8019_v45 = vadd.f32 %v5566_v2, %v7930_v7 }
 0x3e9   : > { %v5655_v22 = vpop.f32.mrb[132].mxu1 }
 0x3ea   : > { %v5567_v0 = vpop.f32.mrb[4].mxu0  ;;  %v5656_v39 = vpop.f32.mrb[133].mxu1 }
 0x3eb   : > { %v5568_v32 = vpop.f32.mrb[5].mxu0  ;;  %v5657_v52 = vadd.f32 %v5656_v39, %v5655_v22  ;;  %v5658_v24 = vpop.f32.mrb[134].mxu1 }
 0x3ec   : > { %v5569_v28 = vadd.f32 %v5568_v32, %v5567_v0  ;;  %v5570_v47 = vpop.f32.mrb[6].mxu0  ;;  %v5659_v11 = vpop.f32.mrb[135].mxu1 }
 0x3ed   : > { %v5571_v1 = vpop.f32.mrb[7].mxu0  ;;  %v5660_v5 = vadd.f32 %v5659_v11, %v5658_v24  ;;  %v8028_v7 = vadd.f32 %v7971_v54, %v5657_v52 }
 0x3ee   : > { %v8025_v53 = vadd.f32 %v5569_v28, %v7933_v20  ;;  %v5572_v25 = vadd.f32 %v5571_v1, %v5570_v47 }
 0x3ef   : > { %v8034_v31 = vadd.f32 %v7974_v44, %v5660_v5 }
 0x3f0   : > { %v8031_v42 = vadd.f32 %v5572_v25, %v7935_v13 }
 0x3f1   : > { %v5661_v49 = vpop.f32.mrb[136].mxu1 }
 0x3f2   : > { %v5573_v27 = vpop.f32.mrb[8].mxu0  ;;  %v5662_v26 = vpop.f32.mrb[137].mxu1 }
 0x3f3   : > { %v5574_v50 = vpop.f32.mrb[9].mxu0  ;;  %v5663_v56 = vadd.f32 %v5662_v26, %v5661_v49  ;;  %v5664_v3 = vpop.f32.mrb[138].mxu1 }
 0x3f4   : > { %v5575_v46 = vadd.f32 %v5574_v50, %v5573_v27  ;;  %v5576_v20 = vpop.f32.mrb[10].mxu0  ;;  %v5665_v55 = vpop.f32.mrb[139].mxu1 }
 0x3f5   : > { %v5577_v58 = vpop.f32.mrb[11].mxu0  ;;  %v5666_v54 = vadd.f32 %v5665_v55, %v5664_v3  ;;  %v8040_v13 = vadd.f32 %v7977_v40, %v5663_v56 }
 0x3f6   : > { %v8037_v60 = vadd.f32 %v5575_v46, %v7938_v17  ;;  %v5578_v57 = vadd.f32 %v5577_v58, %v5576_v20 }
 0x3f7   : > { %v8046_v16 = vadd.f32 %v7980_v23, %v5666_v54 }
 0x3f8   : > { %v8043_v44 = vadd.f32 %v5578_v57, %v7940_v43 }
 0x3f9   : > { %v5667_v10 = vpop.f32.mrb[140].mxu1 }
 0x3fa   : > { %v5579_v62 = vpop.f32.mrb[12].mxu0  ;;  %v5668_v15 = vpop.f32.mrb[141].mxu1 }
 0x3fb   : > { %v5580_v2 = vpop.f32.mrb[13].mxu0  ;;  %v5669_v22 = vadd.f32 %v5668_v15, %v5667_v10  ;;  %v5670_v39 = vpop.f32.mrb[142].mxu1 }
 0x3fc   : > { %v5581_v0 = vadd.f32 %v5580_v2, %v5579_v62  ;;  %v5582_v17 = vpop.f32.mrb[14].mxu0  ;;  %v5671_v32 = vpop.f32.mrb[143].mxu1 }
 0x3fd   : > { %v5583_v52 = vpop.f32.mrb[15].mxu0  ;;  %v5672_v40 = vadd.f32 %v5671_v32, %v5670_v39  ;;  %v8052_v43 = vadd.f32 %v7983_v19, %v5669_v22 }
 0x3fe   : > { %v8049_v28 = vadd.f32 %v5581_v0, %v7942_v30  ;;  %v5584_v24 = vadd.f32 %v5583_v52, %v5582_v17 }
 0x3ff   : > { %v8058_v47 = vadd.f32 %v7986_v6, %v5672_v40 }
 0x400   : > { %v8055_v23 = vadd.f32 %v5584_v24, %v7944_v4 }
 0x401   : > { %v5673_v11 = vpop.f32.mrb[144].mxu1 }
 0x402   : > { %v5585_v1 = vpop.f32.mrb[16].mxu0  ;;  %v5674_v5 = vpop.f32.mrb[145].mxu1 }
 0x403   : > { %v5586_v25 = vpop.f32.mrb[17].mxu0  ;;  %v5675_v49 = vadd.f32 %v5674_v5, %v5673_v11  ;;  %v5676_v26 = vpop.f32.mrb[146].mxu1 }
 0x404   : > { %v5587_v27 = vadd.f32 %v5586_v25, %v5585_v1  ;;  %v5588_v30 = vpop.f32.mrb[18].mxu0  ;;  %v5677_v50 = vpop.f32.mrb[147].mxu1 }
 0x405   : > { %v5589_v56 = vpop.f32.mrb[19].mxu0  ;;  %v5678_v19 = vadd.f32 %v5677_v50, %v5676_v26  ;;  %v8064_v4 = vadd.f32 %v7989_v51, %v5675_v49 }
 0x406   : > { %v8061_v46 = vadd.f32 %v5587_v27, %v7948_v41  ;;  %v5590_v3 = vadd.f32 %v5589_v56, %v5588_v30 }
 0x407   : > { %v8070_v20 = vadd.f32 %v7992_v63, %v5678_v19 }
 0x408   : > { %v8067_v6 = vadd.f32 %v5590_v3, %v7950_v36 }
 0x409   : > { %v5679_v55 = vpop.f32.mrb[148].mxu1 }
 0x40a   : > { %v5591_v58 = vpop.f32.mrb[20].mxu0  ;;  %v5680_v54 = vpop.f32.mrb[149].mxu1 }
 0x40b   : > { %v5592_v57 = vpop.f32.mrb[21].mxu0  ;;  %v5681_v10 = vadd.f32 %v5680_v54, %v5679_v55  ;;  %v5682_v15 = vpop.f32.mrb[150].mxu1 }
 0x40c   : > { %v5593_v62 = vadd.f32 %v5592_v57, %v5591_v58  ;;  %v5594_v41 = vpop.f32.mrb[22].mxu0  ;;  %v5683_v2 = vpop.f32.mrb[151].mxu1 }
 0x40d   : > { %v5595_v22 = vpop.f32.mrb[23].mxu0  ;;  %v5684_v51 = vadd.f32 %v5683_v2, %v5682_v15  ;;  %v8076_v36 = vadd.f32 %v7995_v14, %v5681_v10 }
 0x40e   : > { %v8073_v0 = vadd.f32 %v5593_v62, %v7952_v12  ;;  %v5596_v39 = vadd.f32 %v5595_v22, %v5594_v41 }
 0x40f   : > { %v8082_v17 = vadd.f32 %v7998_v59, %v5684_v51 }
 0x410   : > { %v8079_v63 = vadd.f32 %v5596_v39, %v7954_v35 }
 0x411   : > { %v5685_v32 = vpop.f32.mrb[152].mxu1 }
 0x412   : > { %v5597_v52 = vpop.f32.mrb[24].mxu0  ;;  %v5686_v40 = vpop.f32.mrb[153].mxu1 }
 0x413   : > { %v5598_v24 = vpop.f32.mrb[25].mxu0  ;;  %v5687_v11 = vadd.f32 %v5686_v40, %v5685_v32  ;;  %v5688_v5 = vpop.f32.mrb[154].mxu1 }
 0x414   : > { %v5599_v1 = vadd.f32 %v5598_v24, %v5597_v52  ;;  %v5600_v12 = vpop.f32.mrb[26].mxu0  ;;  %v5689_v25 = vpop.f32.mrb[155].mxu1 }
 0x415   : > { %v5601_v49 = vpop.f32.mrb[27].mxu0  ;;  %v5690_v14 = vadd.f32 %v5689_v25, %v5688_v5  ;;  %v8088_v35 = vadd.f32 %v8001_v38, %v5687_v11 }
 0x416   : > { %v8085_v27 = vadd.f32 %v5599_v1, %v7956_v8  ;;  %v5602_v26 = vadd.f32 %v5601_v49, %v5600_v12 }
 0x417   : > { %v8094_v30 = vadd.f32 %v8004_v33, %v5690_v14 }
 0x418   : > { %v8091_v59 = vadd.f32 %v5602_v26, %v7958_v34 }
 0x419   : > { %v5691_v50 = vpop.f32.mrb[156].mxu1 }
 0x41a   : > { %v5603_v56 = vpop.f32.mrb[28].mxu0  ;;  %v5692_v19 = vpop.f32.mrb[157].mxu1 }
 0x41b   : > { %v5604_v3 = vpop.f32.mrb[29].mxu0  ;;  %v5693_v55 = vadd.f32 %v5692_v19, %v5691_v50  ;;  %v5694_v54 = vpop.f32.mrb[158].mxu1 }
 0x41c   : > { %v5605_v58 = vadd.f32 %v5604_v3, %v5603_v56  ;;  %v5606_v8 = vpop.f32.mrb[30].mxu0  ;;  %v5695_v57 = vpop.f32.mrb[159].mxu1 }
 0x41d   : > { %v5607_v10 = vpop.f32.mrb[31].mxu0  ;;  %v5696_v38 = vadd.f32 %v5695_v57, %v5694_v54  ;;  %v8100_v34 = vadd.f32 %v8007_v18, %v5693_v55 }
 0x41e   : > { %v8097_v62 = vadd.f32 %v5605_v58, %v7960_v37  ;;  %v5608_v15 = vadd.f32 %v5607_v10, %v5606_v8 }
 0x41f   : > { %v8106_v41 = vadd.f32 %v8010_v29, %v5696_v38 }
 0x420   : > { %v8103_v33 = vadd.f32 %v5608_v15, %v7962_v48 }
 0x421   : > { %v5697_v2 = vpop.f32.mrb[160].mxu1 }
 0x422   : > { %v5698_v22 = vpop.f32.mrb[161].mxu1 }
 0x423   : > { %v5699_v51 = vadd.f32 %v5698_v22, %v5697_v2  ;;  %v5700_v39 = vpop.f32.mrb[162].mxu1 }
 0x424   : > { %v5701_v32 = vpop.f32.mrb[163].mxu1 }
 0x425   : > { %v5702_v52 = vadd.f32 %v5701_v32, %v5700_v39  ;;  %v8109_v37 = vadd.f32 %v8013_v61, %v5699_v51 }
 0x427   : > { %v8112_v40 = vadd.f32 %v8019_v45, %v5702_v52 }
 0x429   : > { %v5703_v18 = vpop.f32.mrb[164].mxu1 }
 0x42a   : > { %v5704_v24 = vpop.f32.mrb[165].mxu1 }
 0x42b   : > { %v5705_v11 = vadd.f32 %v5704_v24, %v5703_v18  ;;  %v5706_v48 = vpop.f32.mrb[166].mxu1 }
 0x42c   : > { %v5707_v1 = vpop.f32.mrb[167].mxu1 }
 0x42d   : > { %v5708_v5 = vadd.f32 %v5707_v1, %v5706_v48  ;;  %v8115_v29 = vadd.f32 %v8025_v53, %v5705_v11 }
 0x42f   : > { %v8118_v12 = vadd.f32 %v8031_v42, %v5708_v5 }
 0x431   : > { %v5709_v25 = vpop.f32.mrb[168].mxu1 }
 0x432   : > { %v5710_v49 = vpop.f32.mrb[169].mxu1 }
 0x433   : > { %v5711_v14 = vadd.f32 %v5710_v49, %v5709_v25  ;;  %v5712_v61 = vpop.f32.mrb[170].mxu1 }
 0x434   : > { %v5713_v26 = vpop.f32.mrb[171].mxu1 }
 0x435   : > { %v5714_v50 = vadd.f32 %v5713_v26, %v5712_v61  ;;  %v8121_v45 = vadd.f32 %v8037_v60, %v5711_v14 }
 0x437   : > { %v8124_v56 = vadd.f32 %v8043_v44, %v5714_v50 }
 0x439   : > { %v5715_v19 = vpop.f32.mrb[172].mxu1 }
 0x43a   : > { %v5716_v3 = vpop.f32.mrb[173].mxu1 }
 0x43b   : > { %v5717_v55 = vadd.f32 %v5716_v3, %v5715_v19  ;;  %v5718_v53 = vpop.f32.mrb[174].mxu1 }
 0x43c   : > { %v5719_v58 = vpop.f32.mrb[175].mxu1 }
 0x43d   : > { %v5720_v54 = vadd.f32 %v5719_v58, %v5718_v53  ;;  %v8127_v42 = vadd.f32 %v8049_v28, %v5717_v55 }
 0x43f   : > { %v8130_v8 = vadd.f32 %v8055_v23, %v5720_v54 }
 0x441   : > { %v5721_v57 = vpop.f32.mrb[176].mxu1 }
 0x442   : > { %v5722_v10 = vpop.f32.mrb[177].mxu1 }
 0x443   : > { %v5723_v38 = vadd.f32 %v5722_v10, %v5721_v57  ;;  %v5724_v60 = vpop.f32.mrb[178].mxu1 }
 0x444   : > { %v5725_v15 = vpop.f32.mrb[179].mxu1 }
 0x445   : > { %v5726_v2 = vadd.f32 %v5725_v15, %v5724_v60  ;;  %v8133_v44 = vadd.f32 %v8061_v46, %v5723_v38  ;;  %v6597_v60 = vld [vmem:[#allocation2 + $0x31] sm:$0xff] }
 0x447   : > { %v8136_v22 = vadd.f32 %v8067_v6, %v5726_v2 }
 0x449   : > { %v5727_v51 = vpop.f32.mrb[180].mxu1 }
 0x44a   : > { %v5728_v39 = vpop.f32.mrb[181].mxu1 }
 0x44b   : > { %v5729_v32 = vadd.f32 %v5728_v39, %v5727_v51  ;;  %v5730_v28 = vpop.f32.mrb[182].mxu1  ;;  %v6598_v51 = vld [vmem:[#allocation2 + $0x19] sm:$0xff] }
 0x44c   : > { %v5731_v52 = vpop.f32.mrb[183].mxu1 }
 0x44d   : > { %v5732_v18 = vadd.f32 %v5731_v52, %v5730_v28  ;;  %v8139_v23 = vadd.f32 %v8073_v0, %v5729_v32  ;;  %v6599_v32 = vld [vmem:[#allocation2 + $0x39] sm:$0xff] }
 0x44f   : > { %v8142_v24 = vadd.f32 %v8079_v63, %v5732_v18  ;;  %v6600_v18 = vld [vmem:[#allocation2 + $0x21] sm:$0xff] }
 0x451   : > { %v5733_v11 = vpop.f32.mrb[184].mxu1 }
 0x452   : > { %v5734_v48 = vpop.f32.mrb[185].mxu1 }
 0x453   : > { %v5735_v1 = vadd.f32 %v5734_v48, %v5733_v11  ;;  %v5736_v46 = vpop.f32.mrb[186].mxu1 }
 0x454   : > { %v5737_v5 = vpop.f32.mrb[187].mxu1 }
 0x455   : > { %v5738_v25 = vadd.f32 %v5737_v5, %v5736_v46  ;;  %v8145_v6 = vadd.f32 %v8085_v27, %v5735_v1  ;;  %v8159_v27 = vld [vmem:[%s8316_s4] ss:$0 sm:$0xff] }
 0x457   : > { %v8148_v49 = vadd.f32 %v8091_v59, %v5738_v25 }
 0x459   : > { %v5739_v14 = vpop.f32.mrb[188].mxu1 }
 0x45a   : > { %v5740_v61 = vpop.f32.mrb[189].mxu1 }
 0x45b   : > { %v5741_v26 = vadd.f32 %v5740_v61, %v5739_v14  ;;  %v5742_v0 = vpop.f32.mrb[190].mxu1 }
 0x45c   : > { %v5743_v50 = vpop.f32.mrb[191].mxu1 }
 0x45d   : > { %v5744_v19 = vadd.f32 %v5743_v50, %v5742_v0  ;;  %v8151_v63 = vadd.f32 %v8097_v62, %v5741_v26 }
 0x45f   : > { %v8154_v3 = vadd.f32 %v8103_v33, %v5744_v19  ;;  %v6601_v19 = vld [vmem:[#allocation2 + $0x61] sm:$0xff] }
 0x461   : > { %v6027_v55 = vpop.f32.mrb[96].mxu1 }
 0x462   : > { %v6187_v59 = vadd.f32 %v8028_v7, %v6027_v55  ;;  %v4387_v53 = vpop.f32.mrb[97].mxu1 }
 0x463   : > { %v6190_v58 = vadd.f32 %v8016_v9, %v4387_v53  ;;  %v6028_v54 = vpop.f32.mrb[98].mxu1 }
 0x464   : > { %v4555_v57 = vadd.f32 %v6187_v59, %v8159_v27  ;;  %v6193_v62 = vadd.f32 %v8034_v31, %v6028_v54  ;;  %v4390_v10 = vpop.f32.mrb[99].mxu1  ;;  %v6602_v59 = vld [vmem:[#allocation2 + $0x49] sm:$0xff] }
 0x465   : > { %v4553_v33 = vadd.f32 %v6190_v58, %v8159_v27  ;;  %v6196_v38 = vadd.f32 %v8022_v21, %v4390_v10  ;;  %v6603_v54 = vld [vmem:[#allocation2 + $0x69] sm:$0xff] }
 0x466   : > { %v4587_v15 = vadd.f32 %v6597_v60, %v4555_v57  ;;  %v4556_v2 = vadd.f32 %v6193_v62, %v8159_v27  ;;  %v6604_v62 = vld [vmem:[#allocation2 + $0x51] sm:$0xff] }
 0x467   : > { %v4585_v7 = vadd.f32 %v6598_v51, %v4553_v33  ;;  %v4554_v39 = vadd.f32 %v6196_v38, %v8159_v27 }
 0x468   : > { %v4619_v9 = vmax.f32 %v4587_v15, 0.0  ;;  %v4588_v28 = vadd.f32 %v6599_v32, %v4556_v2 }
 0x469   : > { %v4617_v52 = vmax.f32 %v4585_v7, 0.0  ;;  %v4586_v31 = vadd.f32 %v6600_v18, %v4554_v39  ;;  %v6031_v11 = vpop.f32.mrb[100].mxu1 }
 0x46a   : > { %4651 = vst [vmem:[%s8171_s11 + $0x10] sm:$0xff] %v4619_v9  ;;  %v4620_v21 = vmax.f32 %v4588_v28, 0.0  ;;  %v6199_v48 = vadd.f32 %v8052_v43, %v6031_v11  ;;  %v4403_v1 = vpop.f32.mrb[101].mxu1 }
 0x46b   : > { %4649 = vst [vmem:[%s8171_s11] sm:$0xff] %v4617_v52  ;;  %v4618_v46 = vmax.f32 %v4586_v31, 0.0  ;;  %v6202_v5 = vadd.f32 %v8040_v13, %v4403_v1  ;;  %v6032_v25 = vpop.f32.mrb[102].mxu1  ;;  %v6605_v52 = vld [vmem:[#allocation2 + $0x91] sm:$0xff]  ;;  %v6606_v31 = vld [vmem:[#allocation2 + $0x79] sm:$0xff] }
 0x46c   : > { %4652 = vst [vmem:[%s8171_s11 + $0x18] sm:$0xff] %v4620_v21  ;;  %v4559_v14 = vadd.f32 %v6199_v48, %v8159_v27  ;;  %v6205_v61 = vadd.f32 %v8058_v47, %v6032_v25  ;;  %v4406_v26 = vpop.f32.mrb[103].mxu1  ;;  %v6607_v48 = vld [vmem:[#allocation2 + $0x99] sm:$0xff] }
 0x46d   : > { %4650 = vst [vmem:[%s8171_s11 + $0x8] sm:$0xff] %v4618_v46  ;;  %v4557_v0 = vadd.f32 %v6202_v5, %v8159_v27  ;;  %v6208_v50 = vadd.f32 %v8046_v16, %v4406_v26  ;;  %v6608_v46 = vld [vmem:[#allocation2 + $0x81] sm:$0xff] }
 0x46e   : > { %v4591_v43 = vadd.f32 %v6601_v19, %v4559_v14  ;;  %v4560_v55 = vadd.f32 %v6205_v61, %v8159_v27 }
 0x46f   : > { %v4589_v13 = vadd.f32 %v6602_v59, %v4557_v0  ;;  %v4558_v53 = vadd.f32 %v6208_v50, %v8159_v27 }
 0x470   : > { %v4623_v58 = vmax.f32 %v4591_v43, 0.0  ;;  %v4592_v47 = vadd.f32 %v6603_v54, %v4560_v55  ;;  %v6610_v54 = vld [vmem:[#allocation2 + $0xa9] sm:$0xff] }
 0x471   : > { %v4621_v57 = vmax.f32 %v4589_v13, 0.0  ;;  %v4590_v10 = vadd.f32 %v6604_v62, %v4558_v53  ;;  %v6035_v33 = vpop.f32.mrb[104].mxu1  ;;  %v6609_v53 = vld [vmem:[#allocation2 + $0xc1] sm:$0xff]  ;;  %v6611_v62 = vld [vmem:[#allocation2 + $0xc9] sm:$0xff] }
 0x472   : > { %4655 = vst [vmem:[%s8171_s11 + $0x30] sm:$0xff] %v4623_v58  ;;  %v4624_v16 = vmax.f32 %v4592_v47, 0.0  ;;  %v6211_v38 = vadd.f32 %v8076_v36, %v6035_v33  ;;  %v4419_v60 = vpop.f32.mrb[105].mxu1  ;;  %v6612_v33 = vld [vmem:[#allocation2 + $0xb1] sm:$0xff] }
 0x473   : > { %4653 = vst [vmem:[%s8171_s11 + $0x20] sm:$0xff] %v4621_v57  ;;  %v4622_v15 = vmax.f32 %v4590_v10, 0.0  ;;  %v6214_v2 = vadd.f32 %v8064_v4, %v4419_v60  ;;  %v6036_v51 = vpop.f32.mrb[106].mxu1 }
 0x474   : > { %4656 = vst [vmem:[%s8171_s11 + $0x38] sm:$0xff] %v4624_v16  ;;  %v4563_v7 = vadd.f32 %v6211_v38, %v8159_v27  ;;  %v6217_v39 = vadd.f32 %v8082_v17, %v6036_v51  ;;  %v4422_v9 = vpop.f32.mrb[107].mxu1 }
 0x475   : > { %4654 = vst [vmem:[%s8171_s11 + $0x28] sm:$0xff] %v4622_v15  ;;  %v4561_v32 = vadd.f32 %v6214_v2, %v8159_v27  ;;  %v6220_v28 = vadd.f32 %v8070_v20, %v4422_v9 }
 0x476   : > { %v4595_v36 = vadd.f32 %v6605_v52, %v4563_v7  ;;  %v4564_v18 = vadd.f32 %v6217_v39, %v8159_v27 }
 0x477   : > { %v4593_v4 = vadd.f32 %v6606_v31, %v4561_v32  ;;  %v4562_v11 = vadd.f32 %v6220_v28, %v8159_v27  ;;  %v6614_v31 = vld [vmem:[#allocation2 + $0xd9] sm:$0xff] }
 0x478   : > { %v4627_v21 = vmax.f32 %v4595_v36, 0.0  ;;  %v4596_v17 = vadd.f32 %v6607_v48, %v4564_v18  ;;  %v6613_v36 = vld [vmem:[#allocation2 + $0xf1] sm:$0xff] }
 0x479   : > { %v4625_v1 = vmax.f32 %v4593_v4, 0.0  ;;  %v4594_v5 = vadd.f32 %v6608_v46, %v4562_v11  ;;  %v6039_v25 = vpop.f32.mrb[108].mxu1 }
 0x47a   : > { %4659 = vst [vmem:[%s8171_s11 + $0x50] sm:$0xff] %v4627_v21  ;;  %v4628_v20 = vmax.f32 %v4596_v17, 0.0  ;;  %v6223_v14 = vadd.f32 %v8100_v34, %v6039_v25  ;;  %v4435_v61 = vpop.f32.mrb[109].mxu1  ;;  %v6615_v21 = vld [vmem:[#allocation2 + $0xf9] sm:$0xff]  ;;  %v6616_v17 = vld [vmem:[#allocation2 + $0xe1] sm:$0xff] }
 0x47b   : > { %4657 = vst [vmem:[%s8171_s11 + $0x40] sm:$0xff] %v4625_v1  ;;  %v4626_v26 = vmax.f32 %v4594_v5, 0.0  ;;  %v6226_v0 = vadd.f32 %v8088_v35, %v4435_v61  ;;  %v6040_v50 = vpop.f32.mrb[110].mxu1 }
 0x47c   : > { %4660 = vst [vmem:[%s8171_s11 + $0x58] sm:$0xff] %v4628_v20  ;;  %v4567_v19 = vadd.f32 %v6223_v14, %v8159_v27  ;;  %v6229_v43 = vadd.f32 %v8106_v41, %v6040_v50  ;;  %v4438_v55 = vpop.f32.mrb[111].mxu1 }
 0x47d   : > { %4658 = vst [vmem:[%s8171_s11 + $0x48] sm:$0xff] %v4626_v26  ;;  %v4565_v59 = vadd.f32 %v6226_v0, %v8159_v27  ;;  %v6232_v13 = vadd.f32 %v8094_v30, %v4438_v55  ;;  %v6617_v55 = vld [vmem:[#allocation2 + $0x121] sm:$0xff] }
 0x47e   : > { %v4599_v34 = vadd.f32 %v6609_v53, %v4567_v19  ;;  %v4568_v58 = vadd.f32 %v6229_v43, %v8159_v27 }
 0x47f   : > { %v4597_v35 = vadd.f32 %v6610_v54, %v4565_v59  ;;  %v4566_v47 = vadd.f32 %v6232_v13, %v8159_v27  ;;  %v6618_v13 = vld [vmem:[#allocation2 + $0x109] sm:$0xff] }
 0x480   : > { %v4631_v57 = vmax.f32 %v4599_v34, 0.0  ;;  %v4600_v41 = vadd.f32 %v6611_v62, %v4568_v58  ;;  %v6619_v58 = vld [vmem:[#allocation2 + $0x129] sm:$0xff] }
 0x481   : > { %v4629_v10 = vmax.f32 %v4597_v35, 0.0  ;;  %v4598_v16 = vadd.f32 %v6612_v33, %v4566_v47  ;;  %v6043_v38 = vpop.f32.mrb[112].mxu1  ;;  %v6620_v35 = vld [vmem:[#allocation2 + $0x111] sm:$0xff] }
 0x482   : > { %4663 = vst [vmem:[%s8171_s11 + $0x70] sm:$0xff] %v4631_v57  ;;  %v4632_v30 = vmax.f32 %v4600_v41, 0.0  ;;  %v6235_v60 = vadd.f32 %v8115_v29, %v6043_v38  ;;  %v4451_v15 = vpop.f32.mrb[113].mxu1 }
 0x483   : > { %4661 = vst [vmem:[%s8171_s11 + $0x60] sm:$0xff] %v4629_v10  ;;  %v4630_v2 = vmax.f32 %v4598_v16, 0.0  ;;  %v6238_v51 = vadd.f32 %v8109_v37, %v4451_v15  ;;  %v6044_v7 = vpop.f32.mrb[114].mxu1 }
 0x484   : > { %4664 = vst [vmem:[%s8171_s11 + $0x78] sm:$0xff] %v4632_v30  ;;  %v4571_v39 = vadd.f32 %v6235_v60, %v8159_v27  ;;  %v6241_v9 = vadd.f32 %v8118_v12, %v6044_v7  ;;  %v4454_v32 = vpop.f32.mrb[115].mxu1 }
 0x485   : > { %4662 = vst [vmem:[%s8171_s11 + $0x68] sm:$0xff] %v4630_v2  ;;  %v4569_v28 = vadd.f32 %v6238_v51, %v8159_v27  ;;  %v6244_v52 = vadd.f32 %v8112_v40, %v4454_v32  ;;  %v6621_v51 = vld [vmem:[#allocation2 + $0x151] sm:$0xff] }
 0x486   : > { %v4603_v29 = vadd.f32 %v6613_v36, %v4571_v39  ;;  %v4572_v18 = vadd.f32 %v6241_v9, %v8159_v27  ;;  %v6622_v39 = vld [vmem:[#allocation2 + $0x139] sm:$0xff]  ;;  %v6624_v36 = vld [vmem:[#allocation2 + $0x141] sm:$0xff] }
 0x487   : > { %v4601_v37 = vadd.f32 %v6614_v31, %v4569_v28  ;;  %v4570_v4 = vadd.f32 %v6244_v52, %v8159_v27  ;;  %v6623_v28 = vld [vmem:[#allocation2 + $0x159] sm:$0xff] }
 0x488   : > { %v4635_v11 = vmax.f32 %v4603_v29, 0.0  ;;  %v4604_v12 = vadd.f32 %v6615_v21, %v4572_v18 }
 0x489   : > { %v4633_v48 = vmax.f32 %v4601_v37, 0.0  ;;  %v4602_v1 = vadd.f32 %v6616_v17, %v4570_v4  ;;  %v6047_v46 = vpop.f32.mrb[116].mxu1 }
 0x48a   : > { %4667 = vst [vmem:[%s8171_s11 + $0x90] sm:$0xff] %v4635_v11  ;;  %v4636_v40 = vmax.f32 %v4604_v12, 0.0  ;;  %v6247_v5 = vadd.f32 %v8127_v42, %v6047_v46  ;;  %v4467_v25 = vpop.f32.mrb[117].mxu1  ;;  %v6625_v46 = vld [vmem:[#allocation2 + $0x181] sm:$0xff] }
 0x48b   : > { %4665 = vst [vmem:[%s8171_s11 + $0x80] sm:$0xff] %v4633_v48  ;;  %v4634_v20 = vmax.f32 %v4602_v1, 0.0  ;;  %v6250_v14 = vadd.f32 %v8121_v45, %v4467_v25  ;;  %v6048_v61 = vpop.f32.mrb[118].mxu1 }
 0x48c   : > { %4668 = vst [vmem:[%s8171_s11 + $0x98] sm:$0xff] %v4636_v40  ;;  %v4575_v26 = vadd.f32 %v6247_v5, %v8159_v27  ;;  %v6253_v0 = vadd.f32 %v8130_v8, %v6048_v61  ;;  %v4470_v50 = vpop.f32.mrb[119].mxu1 }
 0x48d   : > { %4666 = vst [vmem:[%s8171_s11 + $0x88] sm:$0xff] %v4634_v20  ;;  %v4573_v19 = vadd.f32 %v6250_v14, %v8159_v27  ;;  %v6256_v43 = vadd.f32 %v8124_v56, %v4470_v50  ;;  %v6627_v14 = vld [vmem:[#allocation2 + $0x189] sm:$0xff] }
 0x48e   : > { %v4607_v42 = vadd.f32 %v6617_v55, %v4575_v26  ;;  %v4576_v59 = vadd.f32 %v6253_v0, %v8159_v27 }
 0x48f   : > { %v4605_v45 = vadd.f32 %v6618_v13, %v4573_v19  ;;  %v4574_v53 = vadd.f32 %v6256_v43, %v8159_v27 }
 0x490   : > { %v4639_v34 = vmax.f32 %v4607_v42, 0.0  ;;  %v4608_v8 = vadd.f32 %v6619_v58, %v4576_v59 }
 0x491   : > { %v4637_v54 = vmax.f32 %v4605_v45, 0.0  ;;  %v4606_v47 = vadd.f32 %v6620_v35, %v4574_v53  ;;  %v6051_v57 = vpop.f32.mrb[120].mxu1 }
 0x492   : > { %4671 = vst [vmem:[%s8171_s11 + $0xb0] sm:$0xff] %v4639_v34  ;;  %v4640_v56 = vmax.f32 %v4608_v8, 0.0  ;;  %v6259_v62 = vadd.f32 %v8139_v23, %v6051_v57  ;;  %v4483_v41 = vpop.f32.mrb[121].mxu1 }
 0x493   : > { %4669 = vst [vmem:[%s8171_s11 + $0xa0] sm:$0xff] %v4637_v54  ;;  %v4638_v10 = vmax.f32 %v4606_v47, 0.0  ;;  %v6262_v33 = vadd.f32 %v8133_v44, %v4483_v41  ;;  %v6052_v16 = vpop.f32.mrb[122].mxu1 }
 0x494   : > { %4672 = vst [vmem:[%s8171_s11 + $0xb8] sm:$0xff] %v4640_v56  ;;  %v4579_v38 = vadd.f32 %v6259_v62, %v8159_v27  ;;  %v6265_v30 = vadd.f32 %v8142_v24, %v6052_v16  ;;  %v4486_v60 = vpop.f32.mrb[123].mxu1 }
 0x495   : > { %4670 = vst [vmem:[%s8171_s11 + $0xa8] sm:$0xff] %v4638_v10  ;;  %v4577_v15 = vadd.f32 %v6262_v33, %v8159_v27  ;;  %v6268_v2 = vadd.f32 %v8136_v22, %v4486_v60 }
 0x496   : > { %v4611_v23 = vadd.f32 %v6621_v51, %v4579_v38  ;;  %v4580_v7 = vadd.f32 %v6265_v30, %v8159_v27 }
 0x497   : > { %v4609_v44 = vadd.f32 %v6622_v39, %v4577_v15  ;;  %v4578_v9 = vadd.f32 %v6268_v2, %v8159_v27 }
 0x498   : > { %v4643_v32 = vmax.f32 %v4611_v23, 0.0  ;;  %v4612_v24 = vadd.f32 %v6623_v28, %v4580_v7 }
 0x499   : > { %v4641_v52 = vmax.f32 %v4609_v44, 0.0  ;;  %v4610_v29 = vadd.f32 %v6624_v36, %v4578_v9  ;;  %v6055_v18 = vpop.f32.mrb[124].mxu1 }
 0x49a   : > { %4675 = vst [vmem:[%s8171_s11 + $0xd0] sm:$0xff] %v4643_v32  ;;  %v4644_v22 = vmax.f32 %v4612_v24, 0.0  ;;  %v6271_v31 = vadd.f32 %v8151_v63, %v6055_v18  ;;  %v4499_v37 = vpop.f32.mrb[125].mxu1 }
 0x49b   : > { %4673 = vst [vmem:[%s8171_s11 + $0xc0] sm:$0xff] %v4641_v52  ;;  %v4642_v4 = vmax.f32 %v4610_v29, 0.0  ;;  %v6274_v11 = vadd.f32 %v8145_v6, %v4499_v37  ;;  %v6056_v21 = vpop.f32.mrb[126].mxu1  ;;  %v6626_v6 = vld [vmem:[#allocation2 + $0x169] sm:$0xff] }
 0x49c   : > { %4676 = vst [vmem:[%s8171_s11 + $0xd8] sm:$0xff] %v4644_v22  ;;  %v4583_v12 = vadd.f32 %v6271_v31, %v8159_v27  ;;  %v6277_v48 = vadd.f32 %v8154_v3, %v6056_v21  ;;  %v4502_v17 = vpop.f32.mrb[127].mxu1 }
 0x49d   : > { %4674 = vst [vmem:[%s8171_s11 + $0xc8] sm:$0xff] %v4642_v4  ;;  %v4581_v1 = vadd.f32 %v6274_v11, %v8159_v27  ;;  %v6280_v63 = vadd.f32 %v8148_v49, %v4502_v17  ;;  %v6628_v49 = vld [vmem:[#allocation2 + $0x171] sm:$0xff] }
 0x49e   : > { %v4615_v40 = vadd.f32 %v6625_v46, %v4583_v12  ;;  %v4584_v5 = vadd.f32 %v6277_v48, %v8159_v27 }
 0x49f   : > { %v4613_v25 = vadd.f32 %v6626_v6, %v4581_v1  ;;  %v4582_v20 = vadd.f32 %v6280_v63, %v8159_v27 }
 0x4a0   : > { %v4647_v3 = vmax.f32 %v4615_v40, 0.0  ;;  %v4616_v61 = vadd.f32 %v6627_v14, %v4584_v5 }
 0x4a1   : > { %v4645_v26 = vmax.f32 %v4613_v25, 0.0  ;;  %v4614_v0 = vadd.f32 %v6628_v49, %v4582_v20 }
 0x4a2   : > { %4679 = vst [vmem:[%s8171_s11 + $0xf0] sm:$0xff] %v4647_v3  ;;  %v4648_v50 = vmax.f32 %v4616_v61, 0.0 }
 0x4a3   : > { %4677 = vst [vmem:[%s8171_s11 + $0xe0] sm:$0xff] %v4645_v26  ;;  %v4646_v27 = vmax.f32 %v4614_v0, 0.0 }
 0x4a4   : > { %4680 = vst [vmem:[%s8171_s11 + $0xf8] sm:$0xff] %v4648_v50 }
 0x4a5   : > { %4678 = vst [vmem:[%s8171_s11 + $0xe8] sm:$0xff] %v4646_v27 }
 0x4a6   : > { %6728 = shalt.err (!%p6725_p2)
}
 0x4a7   : > { %s6729_s6 = scalar_lea.hbm %s8263_s9, 4096  ;;  %s6733_s8 = scalar_lea.hbm %s8317_s5, 8192 }
 0x4a8   : > { %p6730_p13 = scmp.ne.s32.totalorder %s8263_s9, %s6729_s6  ;;  %p6734_p4 = scmp.lt.u32.totalorder %s8263_s9, %s8317_s5 }
 0x4a9   : > { %p6735_p5 = scmp.lt.u32.totalorder %s6733_s8, %s6729_s6  ;;  %p6737_p11 = scmp.lt.u32.totalorder %s6729_s6, %s8263_s9 }
 0x4aa   : > { %p6731_p6 = pnand %p6730_p13, %p8355_p0 }
 0x4ab   : > { %p6736_p8 = por %p6735_p5, %p6734_p4 }
 0x4ac   : > { %p6732_p10 = pneg %p6731_p6 }
 0x4ad   : > { %p6738_p1 = por %p6737_p11, %p6736_p8 }
 0x4af   : > { %p6739_p3 = pnand %p6738_p1, %p6732_p10 }
 0x4b1   : > { %6742 = shalt.err (!%p6739_p3)
}
 0x4b2   : > { %s6796_s28 = smov 128   ;;  %s6797_s15 = smov 8  }
 0x4b3   : > { %6387 = dma.vmem_to_hbm [thread:$0]  (%p8355_p0), %s8265_s30, 4096, %s8263_s9, %s4682_s22, %s6796_s28, %s6796_s28, %s6797_s15  }
 0x4b4 PF: > { %s4710_s16 = sand.u32 1, %s6773_s18   ;;  %p8356_p7 = scmp.ne.s32.totalorder %s8322_s25, 0 }
 0x4b5   : > { %p8357_p9 = scmp.ge.s32.totalorder %s6785_s21, 2  ;;  %s4711_s12 = scalar_lea.sflag [#allocation6], %s4710_s16 }
 0x4b7   : > { %p6401_p12 = pnand %p8357_p9, %p8356_p7 }
 0x4b9   : > { %6768 = dma.done.wait (!%p6401_p12), %s4711_s12, 4096  }
 0x4ba   : > { %6770 = vsyncadd (!%p6401_p12), %s4711_s12, 4294963200  ;;  %p19_p2 = scmp.ge.s32.totalorder %s6938_s14, 4   ;;  %s8358_s18 = smov %s6777_s19 }
 0x4bb   : > { %s8359_s19 = smov %s6781_s20  ;;  %s8360_s20 = smov %s6954_s27 }
 0x4bc   : > { %s8361_s21 = smov %s6938_s14  ;;  %21 = sbr.rel (!%p19_p2) target bundleno = 6 (0x6), region = 103 }
 0x4c3   :  { %4716 = vsyncpa [#allocation5], 1 }
 0x4c4   :  { %4718 = vsyncpa [#allocation5 + $0x1], 1 }
 0x4c5   :  { %4719 = vsyncpa [#allocation8], 1 }
 0x4c6   :  { %4720 = vsyncpa [#allocation6], 1 }
 0x4c7   :  { %4722 = vsyncpa [#allocation6 + $0x1], 1 }

</bundles_post_ra>
